<compile_context>
chip_gen: v7x
topology: tpu7x:2x2x1
jax: 0.10.0
libtpu: 0.0.40
codegen_flags: <defaults>
</compile_context>

<pallas_src>
import functools

import jax
import jax.numpy as jnp
import numpy as np
from jax.experimental import pallas as pl
from jax.experimental.pallas import tpu as pltpu

LN_EPS = 1e-5
BN_EPS = 1e-5


# ----------------------------- shared math helpers -----------------------------
def _layer_norm(x, g, b, eps=LN_EPS):
    mu = jnp.mean(x, axis=-1, keepdims=True)
    var = jnp.mean(jnp.square(x - mu), axis=-1, keepdims=True)
    return (x - mu) * jax.lax.rsqrt(var + eps) * g + b


def _gelu_tanh(x):
    # TODO(synk): torch F.gelu defaults to the exact erf form; the tanh approximation
    # is used (in kernel AND reference) for a guaranteed EUP lowering.
    c = np.float32(np.sqrt(2.0 / np.pi))
    return 0.5 * x * (1.0 + jnp.tanh(c * (x + 0.044715 * x * x * x)))


def _elu(x):
    return jnp.where(x > 0, x, jnp.exp(jnp.minimum(x, 0.0)) - 1.0)


def _pool_len(L):
    # MaxPool1d(kernel=3, stride=2, padding=1) output length
    return (L - 1) // 2 + 1


# ------------------------------ fused encoder kernel ------------------------------
def fused_encoder_kernel(x_ref, mk_ref, vec_ref, wv_e_ref, wm_e_ref, posb_ref,
                         *refs, n_layer, n_heads):
    """Whole Encoder forward for one batch tile; activations stay VMEM-resident.

    refs = per-layer [conv_w(3,C,C), wq(H,D,dk), bq(H,1,dk), wk, bk, wv, bv,
                      wo(H,dv,D), w1(D,dff), b1(1,dff), w2(dff,D)] * n_layer, out_ref.
    vec_ref packs every (1, d_model) vector: per layer
      [conv_b, bo, ln1_g, ln1_b, b2, ln2_g, ln2_b], then [final_g, final_b].
    """
    o_ref = refs[-1]
    lrefs = refs[:-1]
    bt, L, Df = x_ref.shape
    Dm = mk_ref.shape[-1]
    D = wv_e_ref.shape[-1]
    H = n_heads
    f32 = jnp.float32

    def vec(row):                              # (1, D) row of the packed slab
        return vec_ref[row:row + 1, :]

    # ---- DataEmbedding (batch folded into the matmul M dimension) ----
    x2 = x_ref[...].reshape(bt * L, Df)
    m2 = mk_ref[...].reshape(bt * L, Dm)
    y2 = (jnp.dot(x2, wv_e_ref[...], preferred_element_type=f32)
          + jnp.dot(m2, wm_e_ref[...], preferred_element_type=f32))
    # positional table (with value/temporal biases pre-folded), broadcast per sequence
    y3 = y2.reshape(bt, L, D) + posb_ref[...]

    for l in range(n_layer):
        (cw_r, wq_r, bq_r, wk_r, bk_r, wvp_r, bv_r, wo_r,
         w1_r, b1_r, w2_r) = lrefs[11 * l: 11 * (l + 1)]
        vrow = 7 * l

        # ---- ConvLayer: circular Conv1d(k=3) (+folded BN) -> ELU -> MaxPool1d(3,2,1) ----
        Lc = y3.shape[1]
        ym1 = jnp.roll(y3, 1, axis=1).reshape(bt * Lc, D)    # y[(l-1) mod L]
        yp1 = jnp.roll(y3, -1, axis=1).reshape(bt * Lc, D)   # y[(l+1) mod L]
        yc = y3.reshape(bt * Lc, D)
        z = (jnp.dot(ym1, cw_r[0], preferred_element_type=f32)
             + jnp.dot(yc, cw_r[1], preferred_element_type=f32)
             + jnp.dot(yp1, cw_r[2], preferred_element_type=f32)
             + vec(vrow + 0))
        z = _elu(z)

        # Vectorized MaxPool1d(3, stride=2, padding=1), per sequence:
        #   out[p] = max(m[2p], m[2p+1]),  m[l] = max(z[l-1], z[l]),  z[-1]=z[L]=-inf
        z3 = z.reshape(bt, Lc, D)
        neg = jnp.full((bt, 1, D), -jnp.inf, dtype=z.dtype)
        mx = jnp.maximum(z3, jnp.concatenate([neg, z3[:, :Lc - 1, :]], axis=1))
        Lp = _pool_len(Lc)
        if Lc % 2 == 1:
            mx = jnp.concatenate([mx, neg], axis=1)
        mp = mx.reshape(bt * Lp, 2, D)
        y2 = jnp.maximum(mp[:, 0, :], mp[:, 1, :])           # (bt*Lp, D)

        # ---- EncoderLayer: MHA (+res+LN), then 1x1-conv FFN (+res+LN) ----
        # Per-head weights were split host-side: no in-kernel lane slicing or lane
        # concatenation; the head axis lives in the cheap leading dim.
        q3 = jnp.stack([jnp.dot(y2, wq_r[h], preferred_element_type=f32)
                        for h in range(H)], axis=0) + bq_r[...]   # (H, bt*Lp, dk), scale folded
        k3 = jnp.stack([jnp.dot(y2, wk_r[h], preferred_element_type=f32)
                        for h in range(H)], axis=0) + bk_r[...]
        v3 = jnp.stack([jnp.dot(y2, wvp_r[h], preferred_element_type=f32)
                        for h in range(H)], axis=0) + bv_r[...]

        deltas = []
        for b in range(bt):        # static, tiny; scores must not mix sequences
            lo, hi = b * Lp, (b + 1) * Lp
            s = jnp.einsum("hqd,hkd->hqk", q3[:, lo:hi, :], k3[:, lo:hi, :],
                           preferred_element_type=f32)
            s = s - jnp.max(s, axis=-1, keepdims=True)
            p = jnp.exp(s)
            # Exact reciprocal keeps numerics identical to the reference;
            # approx=True would push the divide onto the otherwise-idle EUP slot.
            p = p * pl.reciprocal(jnp.sum(p, axis=-1, keepdims=True), approx=False)
            ctx = jnp.einsum("hqk,hkd->hqd", p, v3[:, lo:hi, :],
                             preferred_element_type=f32)
            d = jnp.dot(ctx[0], wo_r[0], preferred_element_type=f32)
            for h in range(1, H):
                d = d + jnp.dot(ctx[h], wo_r[h], preferred_element_type=f32)
            deltas.append(d)
        attn_delta = deltas[0] if bt == 1 else jnp.concatenate(deltas, axis=0)

        attn = _layer_norm(y2 + attn_delta + vec(vrow + 1), vec(vrow + 2), vec(vrow + 3))
        h1 = _gelu_tanh(jnp.dot(attn, w1_r[...], preferred_element_type=f32) + b1_r[...])
        ff = jnp.dot(h1, w2_r[...], preferred_element_type=f32) + vec(vrow + 4)
        y2 = _layer_norm(attn + ff, vec(vrow + 5), vec(vrow + 6))
        y3 = y2.reshape(bt, Lp, D)

    # Final LayerNorm; one contiguous whole-block store.
    o_ref[...] = _layer_norm(y2, vec(7 * n_layer), vec(7 * n_layer + 1)).reshape(o_ref.shape)


# --------------------------------- parameter prep ---------------------------------
def prepare_fused_params(params, seq_len, n_heads, d_k, d_v):
    """Flatten parameters in kernel order: fold eval-mode BatchNorm into the conv,
    fold the embedding biases into the positional table, fold 1/sqrt(d_k) into
    Wq/bq, split attention weights per head, pack (1, D) vectors into one slab."""
    e = params["embed"]
    D = e["wv"].shape[-1]
    scale = np.float32(1.0 / np.sqrt(d_k))

    vec_rows = []
    mats = [e["wv"], e["wm"], e["pos"][:seq_len] + e["bv"] + e["bm"]]
    for layer in params["layers"]:
        c, en = layer["conv"], layer["enc"]
        cw = c["w_t"] * c["bn_scale"]                            # (3, C, C), BN folded
        cb = c["bias"] * c["bn_scale"] + c["bn_shift"]           # (1, C)
        wq_h = en["wq"].reshape(D, n_heads, d_k).transpose(1, 0, 2) * scale
        bq_h = en["bq"].reshape(n_heads, 1, d_k) * scale
        wk_h = en["wk"].reshape(D, n_heads, d_k).transpose(1, 0, 2)
        bk_h = en["bk"].reshape(n_heads, 1, d_k)
        wv_h = en["wv"].reshape(D, n_heads, d_v).transpose(1, 0, 2)
        bv_h = en["bv"].reshape(n_heads, 1, d_v)
        wo_h = en["wo"].reshape(n_heads, d_v, D)
        vec_rows += [cb, en["bo"], en["ln1_g"], en["ln1_b"],
                     en["b2"], en["ln2_g"], en["ln2_b"]]
        mats += [cw, wq_h, bq_h, wk_h, bk_h, wv_h, bv_h, wo_h,
                 en["w1"], en["b1"], en["w2"]]
    vec_rows += [params["norm"]["g"], params["norm"]["b"]]
    slab = jnp.concatenate(vec_rows, axis=0)                     # (7*n_layer + 2, D)
    return [slab] + mats


# --------------------------------- pallas wrapper ---------------------------------
def encoder_forward(enc_x, enc_mark, params, n_heads, d_k, d_v, *, batch_tiles=1):
    B, L, Df = enc_x.shape
    Dm = enc_mark.shape[-1]
    D = params["embed"]["wv"].shape[-1]
    n_layer = len(params["layers"])
    assert B % batch_tiles == 0, "batch_tiles must divide the batch"
    Bt = B // batch_tiles           # sequences batched into the matmul M dimension

    flat = prepare_fused_params(params, L, n_heads, d_k, d_v)
    assert len(flat) == 4 + 11 * n_layer

    L_out = L
    for _ in range(n_layer):
        L_out = _pool_len(L_out)

    kern = functools.partial(fused_encoder_kernel, n_layer=n_layer, n_heads=n_heads)

    def const_spec(w):
        # Whole array as one block, constant block index -> loaded once, resident.
        return pl.BlockSpec(w.shape, lambda t, _nd=w.ndim: (0,) * _nd)

    in_specs = [pl.BlockSpec((Bt, L, Df), lambda t: (t, 0, 0)),
                pl.BlockSpec((Bt, L, Dm), lambda t: (t, 0, 0))]
    in_specs += [const_spec(w) for w in flat]

    return pl.pallas_call(
        kern,
        out_shape=jax.ShapeDtypeStruct((B, L_out, D), jnp.float32),
        grid=(batch_tiles,),
        in_specs=in_specs,
        out_specs=pl.BlockSpec((Bt, L_out, D), lambda t: (t, 0, 0)),
        compiler_params=pltpu.CompilerParams(
            dimension_semantics=("parallel",),
            vmem_limit_bytes=32 * 1024 * 1024),
    )(enc_x, enc_mark, *flat)


# ------------------------------ pure-JAX reference ------------------------------
def _ref_conv_layer(x, p):
    conv = (jnp.einsum("blc,cd->bld", jnp.roll(x, 1, axis=1), p["w_t"][0])
            + jnp.einsum("blc,cd->bld", x, p["w_t"][1])
            + jnp.einsum("blc,cd->bld", jnp.roll(x, -1, axis=1), p["w_t"][2])
            + p["bias"])
    y = _elu(conv * p["bn_scale"] + p["bn_shift"])
    B, L, C = y.shape
    Lp = _pool_len(L)
    ypad = jnp.pad(y, ((0, 0), (1, 1), (0, 0)), constant_values=-jnp.inf)
    return jnp.stack(
        [jnp.max(ypad[:, 2 * lp:2 * lp + 3, :], axis=1) for lp in range(Lp)], axis=1)


def _ref_encoder_layer(x, p, n_heads, d_k, d_v):
    B, L, _ = x.shape
    scale = np.float32(1.0 / np.sqrt(d_k))
    q = (x @ p["wq"] + p["bq"]).reshape(B, L, n_heads, d_k).transpose(0, 2, 1, 3)
    k = (x @ p["wk"] + p["bk"]).reshape(B, L, n_heads, d_k).transpose(0, 2, 1, 3)
    v = (x @ p["wv"] + p["bv"]).reshape(B, L, n_heads, d_v).transpose(0, 2, 1, 3)
    s = jnp.einsum("bhqd,bhkd->bhqk", q, k) * scale
    s = s - jnp.max(s, axis=-1, keepdims=True)
    a = jnp.exp(s)
    a = a / jnp.sum(a, axis=-1, keepdims=True)
    ctx = jnp.einsum("bhqk,bhkd->bhqd", a, v).transpose(0, 2, 1, 3).reshape(B, L, n_heads * d_v)
    attn = _layer_norm(x + ctx @ p["wo"] + p["bo"], p["ln1_g"], p["ln1_b"])
    h = _gelu_tanh(attn @ p["w1"] + p["b1"])
    y = h @ p["w2"] + p["b2"]
    return _layer_norm(attn + y, p["ln2_g"], p["ln2_b"])


def encoder_forward_ref(enc_x, enc_mark, params, n_heads, d_k, d_v):
    e = params["embed"]
    L = enc_x.shape[1]
    y = enc_x @ e["wv"] + e["bv"] + enc_mark @ e["wm"] + e["bm"] + e["pos"][:L]
    for layer in params["layers"]:
        y = _ref_conv_layer(y, layer["conv"])
        y = _ref_encoder_layer(y, layer["enc"], n_heads, d_k, d_v)
    return _layer_norm(y, params["norm"]["g"], params["norm"]["b"])


# --------------------------------- parameter init ---------------------------------
def init_params(key, d_feature, d_mark, d_model, d_ff, n_heads, d_k, d_v, n_layer, max_len):
    keys = iter(jax.random.split(key, 8 + 8 * n_layer))

    def dense(fan_in, shape):
        return (jax.random.normal(next(keys), shape, jnp.float32) / np.sqrt(fan_in)).astype(jnp.float32)

    # sinusoidal positional embedding
    pos = np.arange(max_len)[:, None].astype(np.float32)
    div = np.exp(np.arange(0, d_model, 2).astype(np.float32) * (-np.log(10000.0) / d_model))
    pe = np.zeros((max_len, d_model), np.float32)
    pe[:, 0::2] = np.sin(pos * div)
    pe[:, 1::2] = np.cos(pos * div)

    embed = dict(
        wv=dense(d_feature, (d_feature, d_model)), bv=jnp.zeros((1, d_model), jnp.float32),
        wm=dense(d_mark, (d_mark, d_model)), bm=jnp.zeros((1, d_model), jnp.float32),
        pos=jnp.asarray(pe),
    )

    layers = []
    for _ in range(n_layer):
        conv = dict(
            w_t=dense(3 * d_model, (3, d_model, d_model)),     # transposed Conv1d weight
            bias=jnp.zeros((1, d_model), jnp.float32),
            # eval-mode BatchNorm1d with default stats: gamma=1, beta=0, rm=0, rv=1
            bn_scale=jnp.full((1, d_model), 1.0 / np.sqrt(1.0 + BN_EPS), jnp.float32),
            bn_shift=jnp.zeros((1, d_model), jnp.float32),
        )
        enc = dict(
            wq=dense(d_model, (d_model, n_heads * d_k)), bq=jnp.zeros((1, n_heads * d_k), jnp.float32),
            wk=dense(d_model, (d_model, n_heads * d_k)), bk=jnp.zeros((1, n_heads * d_k), jnp.float32),
            wv=dense(d_model, (d_model, n_heads * d_v)), bv=jnp.zeros((1, n_heads * d_v), jnp.float32),
            wo=dense(n_heads * d_v, (n_heads * d_v, d_model)), bo=jnp.zeros((1, d_model), jnp.float32),
            ln1_g=jnp.ones((1, d_model), jnp.float32), ln1_b=jnp.zeros((1, d_model), jnp.float32),
            w1=dense(d_model, (d_model, d_ff)), b1=jnp.zeros((1, d_ff), jnp.float32),
            w2=dense(d_ff, (d_ff, d_model)), b2=jnp.zeros((1, d_model), jnp.float32),
            ln2_g=jnp.ones((1, d_model), jnp.float32), ln2_b=jnp.zeros((1, d_model), jnp.float32),
        )
        layers.append(dict(conv=conv, enc=enc))

    norm = dict(g=jnp.ones((1, d_model), jnp.float32), b=jnp.zeros((1, d_model), jnp.float32))
    return dict(embed=embed, layers=layers, norm=norm)


# -------------------------------------- main --------------------------------------
if __name__ == "__main__":
    B, L = 2, 16
    d_feature, d_mark = 4, 4
    d_model, d_ff = 32, 64
    n_heads, d_k, d_v = 4, 8, 8
    n_layer = 2

    key = jax.random.PRNGKey(0)
    kx, km, kp = jax.random.split(key, 3)
    enc_x = jax.random.normal(kx, (B, L, d_feature), jnp.float32)
    enc_mark = jax.random.normal(km, (B, L, d_mark), jnp.float32)
    params = init_params(kp, d_feature, d_mark, d_model, d_ff, n_heads, d_k, d_v, n_layer, L)

    # batch_tiles=1: single grid step, whole batch folded into matmul M (v5e/v6e);
    # use batch_tiles=2 on v7x so both TensorCores get a grid step.
    out = jax.block_until_ready(
        encoder_forward(enc_x, enc_mark, params, n_heads, d_k, d_v, batch_tiles=1))
    ref = jax.block_until_ready(
        encoder_forward_ref(enc_x, enc_mark, params, n_heads, d_k, d_v))

    L_out = L
    for _ in range(n_layer):
        L_out = _pool_len(L_out)
    assert out.shape == (B, L_out, d_model), out.shape
    np.testing.assert_allclose(np.asarray(out), np.asarray(ref), rtol=2e-4, atol=2e-4)
    print("KERNEL_OK")
</pallas_src>

<mosaic_0001>
module attributes {stable_mosaic.version = 11 : i64} {
  func.func @fused_encoder_kernel(%arg0: i32, %arg1: memref<2x16x4xf32, #tpu.memory_space<vmem>>, %arg2: memref<2x16x4xf32, #tpu.memory_space<vmem>>, %arg3: memref<16x32xf32, #tpu.memory_space<vmem>>, %arg4: memref<4x32xf32, #tpu.memory_space<vmem>>, %arg5: memref<4x32xf32, #tpu.memory_space<vmem>>, %arg6: memref<16x32xf32, #tpu.memory_space<vmem>>, %arg7: memref<3x32x32xf32, #tpu.memory_space<vmem>>, %arg8: memref<4x32x8xf32, #tpu.memory_space<vmem>>, %arg9: memref<4x1x8xf32, #tpu.memory_space<vmem>>, %arg10: memref<4x32x8xf32, #tpu.memory_space<vmem>>, %arg11: memref<4x1x8xf32, #tpu.memory_space<vmem>>, %arg12: memref<4x32x8xf32, #tpu.memory_space<vmem>>, %arg13: memref<4x1x8xf32, #tpu.memory_space<vmem>>, %arg14: memref<4x8x32xf32, #tpu.memory_space<vmem>>, %arg15: memref<32x64xf32, #tpu.memory_space<vmem>>, %arg16: memref<1x64xf32, #tpu.memory_space<vmem>>, %arg17: memref<64x32xf32, #tpu.memory_space<vmem>>, %arg18: memref<3x32x32xf32, #tpu.memory_space<vmem>>, %arg19: memref<4x32x8xf32, #tpu.memory_space<vmem>>, %arg20: memref<4x1x8xf32, #tpu.memory_space<vmem>>, %arg21: memref<4x32x8xf32, #tpu.memory_space<vmem>>, %arg22: memref<4x1x8xf32, #tpu.memory_space<vmem>>, %arg23: memref<4x32x8xf32, #tpu.memory_space<vmem>>, %arg24: memref<4x1x8xf32, #tpu.memory_space<vmem>>, %arg25: memref<4x8x32xf32, #tpu.memory_space<vmem>>, %arg26: memref<32x64xf32, #tpu.memory_space<vmem>>, %arg27: memref<1x64xf32, #tpu.memory_space<vmem>>, %arg28: memref<64x32xf32, #tpu.memory_space<vmem>>, %arg29: memref<2x4x32xf32, #tpu.memory_space<vmem>>) attributes {dimension_semantics = [#tpu.dimension_semantics<parallel>], iteration_bounds = array<i64: 1>, scalar_prefetch = 0 : i64, scratch_operands = 0 : i64, tpu.core_type = #tpu.core_type<tc>, window_params = [{transform_indices = @transform_0, window_bounds = array<i64: 2, 16, 4>}, {transform_indices = @transform_1, window_bounds = array<i64: 2, 16, 4>}, {pipeline_mode = #tpu.pipeline_mode<synchronous>, transform_indices = @transform_2, window_bounds = array<i64: 16, 32>}, {pipeline_mode = #tpu.pipeline_mode<synchronous>, transform_indices = @transform_3, window_bounds = array<i64: 4, 32>}, {pipeline_mode = #tpu.pipeline_mode<synchronous>, transform_indices = @transform_4, window_bounds = array<i64: 4, 32>}, {pipeline_mode = #tpu.pipeline_mode<synchronous>, transform_indices = @transform_5, window_bounds = array<i64: 16, 32>}, {pipeline_mode = #tpu.pipeline_mode<synchronous>, transform_indices = @transform_6, window_bounds = array<i64: 3, 32, 32>}, {pipeline_mode = #tpu.pipeline_mode<synchronous>, transform_indices = @transform_7, window_bounds = array<i64: 4, 32, 8>}, {pipeline_mode = #tpu.pipeline_mode<synchronous>, transform_indices = @transform_8, window_bounds = array<i64: 4, 1, 8>}, {pipeline_mode = #tpu.pipeline_mode<synchronous>, transform_indices = @transform_9, window_bounds = array<i64: 4, 32, 8>}, {pipeline_mode = #tpu.pipeline_mode<synchronous>, transform_indices = @transform_10, window_bounds = array<i64: 4, 1, 8>}, {pipeline_mode = #tpu.pipeline_mode<synchronous>, transform_indices = @transform_11, window_bounds = array<i64: 4, 32, 8>}, {pipeline_mode = #tpu.pipeline_mode<synchronous>, transform_indices = @transform_12, window_bounds = array<i64: 4, 1, 8>}, {pipeline_mode = #tpu.pipeline_mode<synchronous>, transform_indices = @transform_13, window_bounds = array<i64: 4, 8, 32>}, {pipeline_mode = #tpu.pipeline_mode<synchronous>, transform_indices = @transform_14, window_bounds = array<i64: 32, 64>}, {pipeline_mode = #tpu.pipeline_mode<synchronous>, transform_indices = @transform_15, window_bounds = array<i64: 1, 64>}, {pipeline_mode = #tpu.pipeline_mode<synchronous>, transform_indices = @transform_16, window_bounds = array<i64: 64, 32>}, {pipeline_mode = #tpu.pipeline_mode<synchronous>, transform_indices = @transform_17, window_bounds = array<i64: 3, 32, 32>}, {pipeline_mode = #tpu.pipeline_mode<synchronous>, transform_indices = @transform_18, window_bounds = array<i64: 4, 32, 8>}, {pipeline_mode = #tpu.pipeline_mode<synchronous>, transform_indices = @transform_19, window_bounds = array<i64: 4, 1, 8>}, {pipeline_mode = #tpu.pipeline_mode<synchronous>, transform_indices = @transform_20, window_bounds = array<i64: 4, 32, 8>}, {pipeline_mode = #tpu.pipeline_mode<synchronous>, transform_indices = @transform_21, window_bounds = array<i64: 4, 1, 8>}, {pipeline_mode = #tpu.pipeline_mode<synchronous>, transform_indices = @transform_22, window_bounds = array<i64: 4, 32, 8>}, {pipeline_mode = #tpu.pipeline_mode<synchronous>, transform_indices = @transform_23, window_bounds = array<i64: 4, 1, 8>}, {pipeline_mode = #tpu.pipeline_mode<synchronous>, transform_indices = @transform_24, window_bounds = array<i64: 4, 8, 32>}, {pipeline_mode = #tpu.pipeline_mode<synchronous>, transform_indices = @transform_25, window_bounds = array<i64: 32, 64>}, {pipeline_mode = #tpu.pipeline_mode<synchronous>, transform_indices = @transform_26, window_bounds = array<i64: 1, 64>}, {pipeline_mode = #tpu.pipeline_mode<synchronous>, transform_indices = @transform_27, window_bounds = array<i64: 64, 32>}, {transform_indices = @transform_28, window_bounds = array<i64: 2, 4, 32>}]} {
    %c0 = arith.constant 0 : index
    %c0_0 = arith.constant 0 : index
    %c0_1 = arith.constant 0 : index
    %0 = vector.load %arg1[%c0, %c0_0, %c0_1] : memref<2x16x4xf32, #tpu.memory_space<vmem>>, vector<2x16x4xf32>
    %1 = vector.shape_cast %0 : vector<2x16x4xf32> to vector<32x4xf32>
    %c0_2 = arith.constant 0 : index
    %c0_3 = arith.constant 0 : index
    %c0_4 = arith.constant 0 : index
    %2 = vector.load %arg2[%c0_2, %c0_3, %c0_4] : memref<2x16x4xf32, #tpu.memory_space<vmem>>, vector<2x16x4xf32>
    %3 = vector.shape_cast %2 : vector<2x16x4xf32> to vector<32x4xf32>
    %c0_5 = arith.constant 0 : index
    %c0_6 = arith.constant 0 : index
    %4 = vector.load %arg4[%c0_5, %c0_6] : memref<4x32xf32, #tpu.memory_space<vmem>>, vector<4x32xf32>
    %cst = arith.constant dense<0.000000e+00> : vector<32x32xf32>
    %5 = tpu.matmul %1, %4, %cst {dimension_numbers = #tpu.dot_dimension_numbers<[1], [0], [0], [1], [0, 0, 1, 1], [], []>} : vector<32x4xf32>, vector<4x32xf32>, vector<32x32xf32> -> vector<32x32xf32>
    %c0_7 = arith.constant 0 : index
    %c0_8 = arith.constant 0 : index
    %6 = vector.load %arg5[%c0_7, %c0_8] : memref<4x32xf32, #tpu.memory_space<vmem>>, vector<4x32xf32>
    %cst_9 = arith.constant dense<0.000000e+00> : vector<32x32xf32>
    %7 = tpu.matmul %3, %6, %cst_9 {dimension_numbers = #tpu.dot_dimension_numbers<[1], [0], [0], [1], [0, 0, 1, 1], [], []>} : vector<32x4xf32>, vector<4x32xf32>, vector<32x32xf32> -> vector<32x32xf32>
    %8 = arith.addf %5, %7 : vector<32x32xf32>
    %9 = vector.shape_cast %8 : vector<32x32xf32> to vector<2x16x32xf32>
    %c0_10 = arith.constant 0 : index
    %c0_11 = arith.constant 0 : index
    %10 = vector.load %arg6[%c0_10, %c0_11] : memref<16x32xf32, #tpu.memory_space<vmem>>, vector<16x32xf32>
    %11 = vector.shape_cast %10 : vector<16x32xf32> to vector<1x16x32xf32>
    %12 = vector.broadcast %11 : vector<1x16x32xf32> to vector<2x16x32xf32>
    %13 = arith.addf %9, %12 : vector<2x16x32xf32>
    %14 = vector.extract_strided_slice %13 {offsets = [0, 15, 0], sizes = [2, 1, 32], strides = [1, 1, 1]} : vector<2x16x32xf32> to vector<2x1x32xf32>
    %15 = vector.extract_strided_slice %13 {offsets = [0, 0, 0], sizes = [2, 15, 32], strides = [1, 1, 1]} : vector<2x16x32xf32> to vector<2x15x32xf32>
    %16 = tpu.concatenate %14, %15 in 1 : vector<2x1x32xf32>, vector<2x15x32xf32> -> vector<2x16x32xf32>
    %17 = vector.shape_cast %16 : vector<2x16x32xf32> to vector<32x32xf32>
    %18 = vector.extract_strided_slice %13 {offsets = [0, 1, 0], sizes = [2, 15, 32], strides = [1, 1, 1]} : vector<2x16x32xf32> to vector<2x15x32xf32>
    %19 = vector.extract_strided_slice %13 {offsets = [0, 0, 0], sizes = [2, 1, 32], strides = [1, 1, 1]} : vector<2x16x32xf32> to vector<2x1x32xf32>
    %20 = tpu.concatenate %18, %19 in 1 : vector<2x15x32xf32>, vector<2x1x32xf32> -> vector<2x16x32xf32>
    %21 = vector.shape_cast %20 : vector<2x16x32xf32> to vector<32x32xf32>
    %22 = vector.shape_cast %13 : vector<2x16x32xf32> to vector<32x32xf32>
    %c0_12 = arith.constant 0 : index
    %c0_13 = arith.constant 0 : index
    %c0_14 = arith.constant 0 : index
    %23 = vector.load %arg7[%c0_12, %c0_13, %c0_14] : memref<3x32x32xf32, #tpu.memory_space<vmem>>, vector<1x32x32xf32>
    %24 = vector.shape_cast %23 : vector<1x32x32xf32> to vector<32x32xf32>
    %cst_15 = arith.constant dense<0.000000e+00> : vector<32x32xf32>
    %25 = tpu.matmul %17, %24, %cst_15 {dimension_numbers = #tpu.dot_dimension_numbers<[1], [0], [0], [1], [0, 0, 1, 1], [], []>} : vector<32x32xf32>, vector<32x32xf32>, vector<32x32xf32> -> vector<32x32xf32>
    %c1 = arith.constant 1 : index
    %c0_16 = arith.constant 0 : index
    %c0_17 = arith.constant 0 : index
    %26 = vector.load %arg7[%c1, %c0_16, %c0_17] : memref<3x32x32xf32, #tpu.memory_space<vmem>>, vector<1x32x32xf32>
    %27 = vector.shape_cast %26 : vector<1x32x32xf32> to vector<32x32xf32>
    %cst_18 = arith.constant dense<0.000000e+00> : vector<32x32xf32>
    %28 = tpu.matmul %22, %27, %cst_18 {dimension_numbers = #tpu.dot_dimension_numbers<[1], [0], [0], [1], [0, 0, 1, 1], [], []>} : vector<32x32xf32>, vector<32x32xf32>, vector<32x32xf32> -> vector<32x32xf32>
    %29 = arith.addf %25, %28 : vector<32x32xf32>
    %c2 = arith.constant 2 : index
    %c0_19 = arith.constant 0 : index
    %c0_20 = arith.constant 0 : index
    %30 = vector.load %arg7[%c2, %c0_19, %c0_20] : memref<3x32x32xf32, #tpu.memory_space<vmem>>, vector<1x32x32xf32>
    %31 = vector.shape_cast %30 : vector<1x32x32xf32> to vector<32x32xf32>
    %cst_21 = arith.constant dense<0.000000e+00> : vector<32x32xf32>
    %32 = tpu.matmul %21, %31, %cst_21 {dimension_numbers = #tpu.dot_dimension_numbers<[1], [0], [0], [1], [0, 0, 1, 1], [], []>} : vector<32x32xf32>, vector<32x32xf32>, vector<32x32xf32> -> vector<32x32xf32>
    %33 = arith.addf %29, %32 : vector<32x32xf32>
    %c0_22 = arith.constant 0 : index
    %c0_23 = arith.constant 0 : index
    %34 = vector.load %arg3[%c0_22, %c0_23] : memref<16x32xf32, #tpu.memory_space<vmem>>, vector<1x32xf32>
    %35 = vector.broadcast %34 : vector<1x32xf32> to vector<32x32xf32>
    %36 = arith.addf %33, %35 : vector<32x32xf32>
    %cst_24 = arith.constant 0.000000e+00 : f32
    %37 = vector.broadcast %cst_24 : f32 to vector<32x32xf32>
    %38 = arith.cmpf ogt, %36, %37 : vector<32x32xf32>
    %cst_25 = arith.constant 0.000000e+00 : f32
    %39 = vector.broadcast %cst_25 : f32 to vector<32x32xf32>
    %40 = arith.minimumf %36, %39 : vector<32x32xf32>
    %41 = math.exp %40 : vector<32x32xf32>
    %cst_26 = arith.constant 1.000000e+00 : f32
    %42 = vector.broadcast %cst_26 : f32 to vector<32x32xf32>
    %43 = arith.subf %41, %42 : vector<32x32xf32>
    %44 = arith.select %38, %36, %43 : vector<32x32xi1>, vector<32x32xf32>
    %45 = vector.shape_cast %44 : vector<32x32xf32> to vector<2x16x32xf32>
    %cst_27 = arith.constant 0xFF800000 : f32
    %46 = vector.broadcast %cst_27 : f32 to vector<2x1x32xf32>
    %47 = vector.extract_strided_slice %45 {offsets = [0, 0, 0], sizes = [2, 15, 32], strides = [1, 1, 1]} : vector<2x16x32xf32> to vector<2x15x32xf32>
    %48 = tpu.concatenate %46, %47 in 1 : vector<2x1x32xf32>, vector<2x15x32xf32> -> vector<2x16x32xf32>
    %49 = arith.maximumf %45, %48 : vector<2x16x32xf32>
    %50 = vector.shape_cast %49 : vector<2x16x32xf32> to vector<16x2x32xf32>
    %51 = vector.extract_strided_slice %50 {offsets = [0, 0, 0], sizes = [16, 1, 32], strides = [1, 1, 1]} : vector<16x2x32xf32> to vector<16x1x32xf32>
    %52 = vector.shape_cast %51 : vector<16x1x32xf32> to vector<16x32xf32>
    %53 = vector.extract_strided_slice %50 {offsets = [0, 1, 0], sizes = [16, 1, 32], strides = [1, 1, 1]} : vector<16x2x32xf32> to vector<16x1x32xf32>
    %54 = vector.shape_cast %53 : vector<16x1x32xf32> to vector<16x32xf32>
    %55 = arith.maximumf %52, %54 : vector<16x32xf32>
    %c0_28 = arith.constant 0 : index
    %c0_29 = arith.constant 0 : index
    %c0_30 = arith.constant 0 : index
    %56 = vector.load %arg8[%c0_28, %c0_29, %c0_30] : memref<4x32x8xf32, #tpu.memory_space<vmem>>, vector<1x32x8xf32>
    %57 = vector.shape_cast %56 : vector<1x32x8xf32> to vector<32x8xf32>
    %cst_31 = arith.constant dense<0.000000e+00> : vector<16x8xf32>
    %58 = tpu.matmul %55, %57, %cst_31 {dimension_numbers = #tpu.dot_dimension_numbers<[1], [0], [0], [1], [0, 0, 1, 1], [], []>} : vector<16x32xf32>, vector<32x8xf32>, vector<16x8xf32> -> vector<16x8xf32>
    %c1_32 = arith.constant 1 : index
    %c0_33 = arith.constant 0 : index
    %c0_34 = arith.constant 0 : index
    %59 = vector.load %arg8[%c1_32, %c0_33, %c0_34] : memref<4x32x8xf32, #tpu.memory_space<vmem>>, vector<1x32x8xf32>
    %60 = vector.shape_cast %59 : vector<1x32x8xf32> to vector<32x8xf32>
    %cst_35 = arith.constant dense<0.000000e+00> : vector<16x8xf32>
    %61 = tpu.matmul %55, %60, %cst_35 {dimension_numbers = #tpu.dot_dimension_numbers<[1], [0], [0], [1], [0, 0, 1, 1], [], []>} : vector<16x32xf32>, vector<32x8xf32>, vector<16x8xf32> -> vector<16x8xf32>
    %c2_36 = arith.constant 2 : index
    %c0_37 = arith.constant 0 : index
    %c0_38 = arith.constant 0 : index
    %62 = vector.load %arg8[%c2_36, %c0_37, %c0_38] : memref<4x32x8xf32, #tpu.memory_space<vmem>>, vector<1x32x8xf32>
    %63 = vector.shape_cast %62 : vector<1x32x8xf32> to vector<32x8xf32>
    %cst_39 = arith.constant dense<0.000000e+00> : vector<16x8xf32>
    %64 = tpu.matmul %55, %63, %cst_39 {dimension_numbers = #tpu.dot_dimension_numbers<[1], [0], [0], [1], [0, 0, 1, 1], [], []>} : vector<16x32xf32>, vector<32x8xf32>, vector<16x8xf32> -> vector<16x8xf32>
    %c3 = arith.constant 3 : index
    %c0_40 = arith.constant 0 : index
    %c0_41 = arith.constant 0 : index
    %65 = vector.load %arg8[%c3, %c0_40, %c0_41] : memref<4x32x8xf32, #tpu.memory_space<vmem>>, vector<1x32x8xf32>
    %66 = vector.shape_cast %65 : vector<1x32x8xf32> to vector<32x8xf32>
    %cst_42 = arith.constant dense<0.000000e+00> : vector<16x8xf32>
    %67 = tpu.matmul %55, %66, %cst_42 {dimension_numbers = #tpu.dot_dimension_numbers<[1], [0], [0], [1], [0, 0, 1, 1], [], []>} : vector<16x32xf32>, vector<32x8xf32>, vector<16x8xf32> -> vector<16x8xf32>
    %68 = vector.shape_cast %58 : vector<16x8xf32> to vector<1x16x8xf32>
    %69 = vector.shape_cast %61 : vector<16x8xf32> to vector<1x16x8xf32>
    %70 = vector.shape_cast %64 : vector<16x8xf32> to vector<1x16x8xf32>
    %71 = vector.shape_cast %67 : vector<16x8xf32> to vector<1x16x8xf32>
    %72 = tpu.concatenate %68, %69, %70, %71 in 0 : vector<1x16x8xf32>, vector<1x16x8xf32>, vector<1x16x8xf32>, vector<1x16x8xf32> -> vector<4x16x8xf32>
    %c0_43 = arith.constant 0 : index
    %c0_44 = arith.constant 0 : index
    %c0_45 = arith.constant 0 : index
    %73 = vector.load %arg9[%c0_43, %c0_44, %c0_45] : memref<4x1x8xf32, #tpu.memory_space<vmem>>, vector<4x1x8xf32>
    %74 = vector.broadcast %73 : vector<4x1x8xf32> to vector<4x16x8xf32>
    %75 = arith.addf %72, %74 : vector<4x16x8xf32>
    %c0_46 = arith.constant 0 : index
    %c0_47 = arith.constant 0 : index
    %c0_48 = arith.constant 0 : index
    %76 = vector.load %arg10[%c0_46, %c0_47, %c0_48] : memref<4x32x8xf32, #tpu.memory_space<vmem>>, vector<1x32x8xf32>
    %77 = vector.shape_cast %76 : vector<1x32x8xf32> to vector<32x8xf32>
    %cst_49 = arith.constant dense<0.000000e+00> : vector<16x8xf32>
    %78 = tpu.matmul %55, %77, %cst_49 {dimension_numbers = #tpu.dot_dimension_numbers<[1], [0], [0], [1], [0, 0, 1, 1], [], []>} : vector<16x32xf32>, vector<32x8xf32>, vector<16x8xf32> -> vector<16x8xf32>
    %c1_50 = arith.constant 1 : index
    %c0_51 = arith.constant 0 : index
    %c0_52 = arith.constant 0 : index
    %79 = vector.load %arg10[%c1_50, %c0_51, %c0_52] : memref<4x32x8xf32, #tpu.memory_space<vmem>>, vector<1x32x8xf32>
    %80 = vector.shape_cast %79 : vector<1x32x8xf32> to vector<32x8xf32>
    %cst_53 = arith.constant dense<0.000000e+00> : vector<16x8xf32>
    %81 = tpu.matmul %55, %80, %cst_53 {dimension_numbers = #tpu.dot_dimension_numbers<[1], [0], [0], [1], [0, 0, 1, 1], [], []>} : vector<16x32xf32>, vector<32x8xf32>, vector<16x8xf32> -> vector<16x8xf32>
    %c2_54 = arith.constant 2 : index
    %c0_55 = arith.constant 0 : index
    %c0_56 = arith.constant 0 : index
    %82 = vector.load %arg10[%c2_54, %c0_55, %c0_56] : memref<4x32x8xf32, #tpu.memory_space<vmem>>, vector<1x32x8xf32>
    %83 = vector.shape_cast %82 : vector<1x32x8xf32> to vector<32x8xf32>
    %cst_57 = arith.constant dense<0.000000e+00> : vector<16x8xf32>
    %84 = tpu.matmul %55, %83, %cst_57 {dimension_numbers = #tpu.dot_dimension_numbers<[1], [0], [0], [1], [0, 0, 1, 1], [], []>} : vector<16x32xf32>, vector<32x8xf32>, vector<16x8xf32> -> vector<16x8xf32>
    %c3_58 = arith.constant 3 : index
    %c0_59 = arith.constant 0 : index
    %c0_60 = arith.constant 0 : index
    %85 = vector.load %arg10[%c3_58, %c0_59, %c0_60] : memref<4x32x8xf32, #tpu.memory_space<vmem>>, vector<1x32x8xf32>
    %86 = vector.shape_cast %85 : vector<1x32x8xf32> to vector<32x8xf32>
    %cst_61 = arith.constant dense<0.000000e+00> : vector<16x8xf32>
    %87 = tpu.matmul %55, %86, %cst_61 {dimension_numbers = #tpu.dot_dimension_numbers<[1], [0], [0], [1], [0, 0, 1, 1], [], []>} : vector<16x32xf32>, vector<32x8xf32>, vector<16x8xf32> -> vector<16x8xf32>
    %88 = vector.shape_cast %78 : vector<16x8xf32> to vector<1x16x8xf32>
    %89 = vector.shape_cast %81 : vector<16x8xf32> to vector<1x16x8xf32>
    %90 = vector.shape_cast %84 : vector<16x8xf32> to vector<1x16x8xf32>
    %91 = vector.shape_cast %87 : vector<16x8xf32> to vector<1x16x8xf32>
    %92 = tpu.concatenate %88, %89, %90, %91 in 0 : vector<1x16x8xf32>, vector<1x16x8xf32>, vector<1x16x8xf32>, vector<1x16x8xf32> -> vector<4x16x8xf32>
    %c0_62 = arith.constant 0 : index
    %c0_63 = arith.constant 0 : index
    %c0_64 = arith.constant 0 : index
    %93 = vector.load %arg11[%c0_62, %c0_63, %c0_64] : memref<4x1x8xf32, #tpu.memory_space<vmem>>, vector<4x1x8xf32>
    %94 = vector.broadcast %93 : vector<4x1x8xf32> to vector<4x16x8xf32>
    %95 = arith.addf %92, %94 : vector<4x16x8xf32>
    %c0_65 = arith.constant 0 : index
    %c0_66 = arith.constant 0 : index
    %c0_67 = arith.constant 0 : index
    %96 = vector.load %arg12[%c0_65, %c0_66, %c0_67] : memref<4x32x8xf32, #tpu.memory_space<vmem>>, vector<1x32x8xf32>
    %97 = vector.shape_cast %96 : vector<1x32x8xf32> to vector<32x8xf32>
    %cst_68 = arith.constant dense<0.000000e+00> : vector<16x8xf32>
    %98 = tpu.matmul %55, %97, %cst_68 {dimension_numbers = #tpu.dot_dimension_numbers<[1], [0], [0], [1], [0, 0, 1, 1], [], []>} : vector<16x32xf32>, vector<32x8xf32>, vector<16x8xf32> -> vector<16x8xf32>
    %c1_69 = arith.constant 1 : index
    %c0_70 = arith.constant 0 : index
    %c0_71 = arith.constant 0 : index
    %99 = vector.load %arg12[%c1_69, %c0_70, %c0_71] : memref<4x32x8xf32, #tpu.memory_space<vmem>>, vector<1x32x8xf32>
    %100 = vector.shape_cast %99 : vector<1x32x8xf32> to vector<32x8xf32>
    %cst_72 = arith.constant dense<0.000000e+00> : vector<16x8xf32>
    %101 = tpu.matmul %55, %100, %cst_72 {dimension_numbers = #tpu.dot_dimension_numbers<[1], [0], [0], [1], [0, 0, 1, 1], [], []>} : vector<16x32xf32>, vector<32x8xf32>, vector<16x8xf32> -> vector<16x8xf32>
    %c2_73 = arith.constant 2 : index
    %c0_74 = arith.constant 0 : index
    %c0_75 = arith.constant 0 : index
    %102 = vector.load %arg12[%c2_73, %c0_74, %c0_75] : memref<4x32x8xf32, #tpu.memory_space<vmem>>, vector<1x32x8xf32>
    %103 = vector.shape_cast %102 : vector<1x32x8xf32> to vector<32x8xf32>
    %cst_76 = arith.constant dense<0.000000e+00> : vector<16x8xf32>
    %104 = tpu.matmul %55, %103, %cst_76 {dimension_numbers = #tpu.dot_dimension_numbers<[1], [0], [0], [1], [0, 0, 1, 1], [], []>} : vector<16x32xf32>, vector<32x8xf32>, vector<16x8xf32> -> vector<16x8xf32>
    %c3_77 = arith.constant 3 : index
    %c0_78 = arith.constant 0 : index
    %c0_79 = arith.constant 0 : index
    %105 = vector.load %arg12[%c3_77, %c0_78, %c0_79] : memref<4x32x8xf32, #tpu.memory_space<vmem>>, vector<1x32x8xf32>
    %106 = vector.shape_cast %105 : vector<1x32x8xf32> to vector<32x8xf32>
    %cst_80 = arith.constant dense<0.000000e+00> : vector<16x8xf32>
    %107 = tpu.matmul %55, %106, %cst_80 {dimension_numbers = #tpu.dot_dimension_numbers<[1], [0], [0], [1], [0, 0, 1, 1], [], []>} : vector<16x32xf32>, vector<32x8xf32>, vector<16x8xf32> -> vector<16x8xf32>
    %108 = vector.shape_cast %98 : vector<16x8xf32> to vector<1x16x8xf32>
    %109 = vector.shape_cast %101 : vector<16x8xf32> to vector<1x16x8xf32>
    %110 = vector.shape_cast %104 : vector<16x8xf32> to vector<1x16x8xf32>
    %111 = vector.shape_cast %107 : vector<16x8xf32> to vector<1x16x8xf32>
    %112 = tpu.concatenate %108, %109, %110, %111 in 0 : vector<1x16x8xf32>, vector<1x16x8xf32>, vector<1x16x8xf32>, vector<1x16x8xf32> -> vector<4x16x8xf32>
    %c0_81 = arith.constant 0 : index
    %c0_82 = arith.constant 0 : index
    %c0_83 = arith.constant 0 : index
    %113 = vector.load %arg13[%c0_81, %c0_82, %c0_83] : memref<4x1x8xf32, #tpu.memory_space<vmem>>, vector<4x1x8xf32>
    %114 = vector.broadcast %113 : vector<4x1x8xf32> to vector<4x16x8xf32>
    %115 = arith.addf %112, %114 : vector<4x16x8xf32>
    %116 = vector.extract_strided_slice %75 {offsets = [0, 0, 0], sizes = [4, 8, 8], strides = [1, 1, 1]} : vector<4x16x8xf32> to vector<4x8x8xf32>
    %117 = vector.extract_strided_slice %95 {offsets = [0, 0, 0], sizes = [4, 8, 8], strides = [1, 1, 1]} : vector<4x16x8xf32> to vector<4x8x8xf32>
    "tpu.trace_start"() <{level = 10 : i32, message = "hqd,hkd->hqk"}> : () -> ()
    %cst_84 = arith.constant dense<0.000000e+00> : vector<4x8x8xf32>
    %118 = tpu.matmul %116, %117, %cst_84 {dimension_numbers = #tpu.dot_dimension_numbers<[2], [2], [1], [1], [0, 0, 0, 1, 1, 1], [0], [0]>} : vector<4x8x8xf32>, vector<4x8x8xf32>, vector<4x8x8xf32> -> vector<4x8x8xf32>
    "tpu.trace_stop"() : () -> ()
    %cst_85 = arith.constant dense<0xFF800000> : vector<4x8xf32>
    %119 = vector.multi_reduction <maximumf>, %118, %cst_85 [2] : vector<4x8x8xf32> to vector<4x8xf32>
    %120 = vector.shape_cast %119 : vector<4x8xf32> to vector<4x8x1xf32>
    %121 = vector.broadcast %120 : vector<4x8x1xf32> to vector<4x8x8xf32>
    %122 = arith.subf %118, %121 : vector<4x8x8xf32>
    %123 = math.exp %122 : vector<4x8x8xf32>
    %cst_86 = arith.constant dense<0.000000e+00> : vector<4x8xf32>
    %124 = vector.multi_reduction <add>, %123, %cst_86 [2] : vector<4x8x8xf32> to vector<4x8xf32>
    %125 = vector.shape_cast %124 : vector<4x8xf32> to vector<4x8x1xf32>
    %126 = tpu.reciprocal %125 : vector<4x8x1xf32> -> vector<4x8x1xf32>
    %127 = vector.broadcast %126 : vector<4x8x1xf32> to vector<4x8x8xf32>
    %128 = arith.mulf %123, %127 : vector<4x8x8xf32>
    %129 = vector.extract_strided_slice %115 {offsets = [0, 0, 0], sizes = [4, 8, 8], strides = [1, 1, 1]} : vector<4x16x8xf32> to vector<4x8x8xf32>
    "tpu.trace_start"() <{level = 10 : i32, message = "hqk,hkd->hqd"}> : () -> ()
    %cst_87 = arith.constant dense<0.000000e+00> : vector<4x8x8xf32>
    %130 = tpu.matmul %128, %129, %cst_87 {dimension_numbers = #tpu.dot_dimension_numbers<[2], [1], [1], [2], [0, 0, 0, 1, 1, 2], [0], [0]>} : vector<4x8x8xf32>, vector<4x8x8xf32>, vector<4x8x8xf32> -> vector<4x8x8xf32>
    "tpu.trace_stop"() : () -> ()
    %131 = vector.extract_strided_slice %130 {offsets = [0, 0, 0], sizes = [1, 8, 8], strides = [1, 1, 1]} : vector<4x8x8xf32> to vector<1x8x8xf32>
    %132 = vector.shape_cast %131 : vector<1x8x8xf32> to vector<8x8xf32>
    %c0_88 = arith.constant 0 : index
    %c0_89 = arith.constant 0 : index
    %c0_90 = arith.constant 0 : index
    %133 = vector.load %arg14[%c0_88, %c0_89, %c0_90] : memref<4x8x32xf32, #tpu.memory_space<vmem>>, vector<1x8x32xf32>
    %134 = vector.shape_cast %133 : vector<1x8x32xf32> to vector<8x32xf32>
    %cst_91 = arith.constant dense<0.000000e+00> : vector<8x32xf32>
    %135 = tpu.matmul %132, %134, %cst_91 {dimension_numbers = #tpu.dot_dimension_numbers<[1], [0], [0], [1], [0, 0, 1, 1], [], []>} : vector<8x8xf32>, vector<8x32xf32>, vector<8x32xf32> -> vector<8x32xf32>
    %136 = vector.extract_strided_slice %130 {offsets = [1, 0, 0], sizes = [1, 8, 8], strides = [1, 1, 1]} : vector<4x8x8xf32> to vector<1x8x8xf32>
    %137 = vector.shape_cast %136 : vector<1x8x8xf32> to vector<8x8xf32>
    %c1_92 = arith.constant 1 : index
    %c0_93 = arith.constant 0 : index
    %c0_94 = arith.constant 0 : index
    %138 = vector.load %arg14[%c1_92, %c0_93, %c0_94] : memref<4x8x32xf32, #tpu.memory_space<vmem>>, vector<1x8x32xf32>
    %139 = vector.shape_cast %138 : vector<1x8x32xf32> to vector<8x32xf32>
    %cst_95 = arith.constant dense<0.000000e+00> : vector<8x32xf32>
    %140 = tpu.matmul %137, %139, %cst_95 {dimension_numbers = #tpu.dot_dimension_numbers<[1], [0], [0], [1], [0, 0, 1, 1], [], []>} : vector<8x8xf32>, vector<8x32xf32>, vector<8x32xf32> -> vector<8x32xf32>
    %141 = arith.addf %135, %140 : vector<8x32xf32>
    %142 = vector.extract_strided_slice %130 {offsets = [2, 0, 0], sizes = [1, 8, 8], strides = [1, 1, 1]} : vector<4x8x8xf32> to vector<1x8x8xf32>
    %143 = vector.shape_cast %142 : vector<1x8x8xf32> to vector<8x8xf32>
    %c2_96 = arith.constant 2 : index
    %c0_97 = arith.constant 0 : index
    %c0_98 = arith.constant 0 : index
    %144 = vector.load %arg14[%c2_96, %c0_97, %c0_98] : memref<4x8x32xf32, #tpu.memory_space<vmem>>, vector<1x8x32xf32>
    %145 = vector.shape_cast %144 : vector<1x8x32xf32> to vector<8x32xf32>
    %cst_99 = arith.constant dense<0.000000e+00> : vector<8x32xf32>
    %146 = tpu.matmul %143, %145, %cst_99 {dimension_numbers = #tpu.dot_dimension_numbers<[1], [0], [0], [1], [0, 0, 1, 1], [], []>} : vector<8x8xf32>, vector<8x32xf32>, vector<8x32xf32> -> vector<8x32xf32>
    %147 = arith.addf %141, %146 : vector<8x32xf32>
    %148 = vector.extract_strided_slice %130 {offsets = [3, 0, 0], sizes = [1, 8, 8], strides = [1, 1, 1]} : vector<4x8x8xf32> to vector<1x8x8xf32>
    %149 = vector.shape_cast %148 : vector<1x8x8xf32> to vector<8x8xf32>
    %c3_100 = arith.constant 3 : index
    %c0_101 = arith.constant 0 : index
    %c0_102 = arith.constant 0 : index
    %150 = vector.load %arg14[%c3_100, %c0_101, %c0_102] : memref<4x8x32xf32, #tpu.memory_space<vmem>>, vector<1x8x32xf32>
    %151 = vector.shape_cast %150 : vector<1x8x32xf32> to vector<8x32xf32>
    %cst_103 = arith.constant dense<0.000000e+00> : vector<8x32xf32>
    %152 = tpu.matmul %149, %151, %cst_103 {dimension_numbers = #tpu.dot_dimension_numbers<[1], [0], [0], [1], [0, 0, 1, 1], [], []>} : vector<8x8xf32>, vector<8x32xf32>, vector<8x32xf32> -> vector<8x32xf32>
    %153 = arith.addf %147, %152 : vector<8x32xf32>
    %154 = vector.extract_strided_slice %75 {offsets = [0, 8, 0], sizes = [4, 8, 8], strides = [1, 1, 1]} : vector<4x16x8xf32> to vector<4x8x8xf32>
    %155 = vector.extract_strided_slice %95 {offsets = [0, 8, 0], sizes = [4, 8, 8], strides = [1, 1, 1]} : vector<4x16x8xf32> to vector<4x8x8xf32>
    "tpu.trace_start"() <{level = 10 : i32, message = "hqd,hkd->hqk"}> : () -> ()
    %cst_104 = arith.constant dense<0.000000e+00> : vector<4x8x8xf32>
    %156 = tpu.matmul %154, %155, %cst_104 {dimension_numbers = #tpu.dot_dimension_numbers<[2], [2], [1], [1], [0, 0, 0, 1, 1, 1], [0], [0]>} : vector<4x8x8xf32>, vector<4x8x8xf32>, vector<4x8x8xf32> -> vector<4x8x8xf32>
    "tpu.trace_stop"() : () -> ()
    %cst_105 = arith.constant dense<0xFF800000> : vector<4x8xf32>
    %157 = vector.multi_reduction <maximumf>, %156, %cst_105 [2] : vector<4x8x8xf32> to vector<4x8xf32>
    %158 = vector.shape_cast %157 : vector<4x8xf32> to vector<4x8x1xf32>
    %159 = vector.broadcast %158 : vector<4x8x1xf32> to vector<4x8x8xf32>
    %160 = arith.subf %156, %159 : vector<4x8x8xf32>
    %161 = math.exp %160 : vector<4x8x8xf32>
    %cst_106 = arith.constant dense<0.000000e+00> : vector<4x8xf32>
    %162 = vector.multi_reduction <add>, %161, %cst_106 [2] : vector<4x8x8xf32> to vector<4x8xf32>
    %163 = vector.shape_cast %162 : vector<4x8xf32> to vector<4x8x1xf32>
    %164 = tpu.reciprocal %163 : vector<4x8x1xf32> -> vector<4x8x1xf32>
    %165 = vector.broadcast %164 : vector<4x8x1xf32> to vector<4x8x8xf32>
    %166 = arith.mulf %161, %165 : vector<4x8x8xf32>
    %167 = vector.extract_strided_slice %115 {offsets = [0, 8, 0], sizes = [4, 8, 8], strides = [1, 1, 1]} : vector<4x16x8xf32> to vector<4x8x8xf32>
    "tpu.trace_start"() <{level = 10 : i32, message = "hqk,hkd->hqd"}> : () -> ()
    %cst_107 = arith.constant dense<0.000000e+00> : vector<4x8x8xf32>
    %168 = tpu.matmul %166, %167, %cst_107 {dimension_numbers = #tpu.dot_dimension_numbers<[2], [1], [1], [2], [0, 0, 0, 1, 1, 2], [0], [0]>} : vector<4x8x8xf32>, vector<4x8x8xf32>, vector<4x8x8xf32> -> vector<4x8x8xf32>
    "tpu.trace_stop"() : () -> ()
    %169 = vector.extract_strided_slice %168 {offsets = [0, 0, 0], sizes = [1, 8, 8], strides = [1, 1, 1]} : vector<4x8x8xf32> to vector<1x8x8xf32>
    %170 = vector.shape_cast %169 : vector<1x8x8xf32> to vector<8x8xf32>
    %c0_108 = arith.constant 0 : index
    %c0_109 = arith.constant 0 : index
    %c0_110 = arith.constant 0 : index
    %171 = vector.load %arg14[%c0_108, %c0_109, %c0_110] : memref<4x8x32xf32, #tpu.memory_space<vmem>>, vector<1x8x32xf32>
    %172 = vector.shape_cast %171 : vector<1x8x32xf32> to vector<8x32xf32>
    %cst_111 = arith.constant dense<0.000000e+00> : vector<8x32xf32>
    %173 = tpu.matmul %170, %172, %cst_111 {dimension_numbers = #tpu.dot_dimension_numbers<[1], [0], [0], [1], [0, 0, 1, 1], [], []>} : vector<8x8xf32>, vector<8x32xf32>, vector<8x32xf32> -> vector<8x32xf32>
    %174 = vector.extract_strided_slice %168 {offsets = [1, 0, 0], sizes = [1, 8, 8], strides = [1, 1, 1]} : vector<4x8x8xf32> to vector<1x8x8xf32>
    %175 = vector.shape_cast %174 : vector<1x8x8xf32> to vector<8x8xf32>
    %c1_112 = arith.constant 1 : index
    %c0_113 = arith.constant 0 : index
    %c0_114 = arith.constant 0 : index
    %176 = vector.load %arg14[%c1_112, %c0_113, %c0_114] : memref<4x8x32xf32, #tpu.memory_space<vmem>>, vector<1x8x32xf32>
    %177 = vector.shape_cast %176 : vector<1x8x32xf32> to vector<8x32xf32>
    %cst_115 = arith.constant dense<0.000000e+00> : vector<8x32xf32>
    %178 = tpu.matmul %175, %177, %cst_115 {dimension_numbers = #tpu.dot_dimension_numbers<[1], [0], [0], [1], [0, 0, 1, 1], [], []>} : vector<8x8xf32>, vector<8x32xf32>, vector<8x32xf32> -> vector<8x32xf32>
    %179 = arith.addf %173, %178 : vector<8x32xf32>
    %180 = vector.extract_strided_slice %168 {offsets = [2, 0, 0], sizes = [1, 8, 8], strides = [1, 1, 1]} : vector<4x8x8xf32> to vector<1x8x8xf32>
    %181 = vector.shape_cast %180 : vector<1x8x8xf32> to vector<8x8xf32>
    %c2_116 = arith.constant 2 : index
    %c0_117 = arith.constant 0 : index
    %c0_118 = arith.constant 0 : index
    %182 = vector.load %arg14[%c2_116, %c0_117, %c0_118] : memref<4x8x32xf32, #tpu.memory_space<vmem>>, vector<1x8x32xf32>
    %183 = vector.shape_cast %182 : vector<1x8x32xf32> to vector<8x32xf32>
    %cst_119 = arith.constant dense<0.000000e+00> : vector<8x32xf32>
    %184 = tpu.matmul %181, %183, %cst_119 {dimension_numbers = #tpu.dot_dimension_numbers<[1], [0], [0], [1], [0, 0, 1, 1], [], []>} : vector<8x8xf32>, vector<8x32xf32>, vector<8x32xf32> -> vector<8x32xf32>
    %185 = arith.addf %179, %184 : vector<8x32xf32>
    %186 = vector.extract_strided_slice %168 {offsets = [3, 0, 0], sizes = [1, 8, 8], strides = [1, 1, 1]} : vector<4x8x8xf32> to vector<1x8x8xf32>
    %187 = vector.shape_cast %186 : vector<1x8x8xf32> to vector<8x8xf32>
    %c3_120 = arith.constant 3 : index
    %c0_121 = arith.constant 0 : index
    %c0_122 = arith.constant 0 : index
    %188 = vector.load %arg14[%c3_120, %c0_121, %c0_122] : memref<4x8x32xf32, #tpu.memory_space<vmem>>, vector<1x8x32xf32>
    %189 = vector.shape_cast %188 : vector<1x8x32xf32> to vector<8x32xf32>
    %cst_123 = arith.constant dense<0.000000e+00> : vector<8x32xf32>
    %190 = tpu.matmul %187, %189, %cst_123 {dimension_numbers = #tpu.dot_dimension_numbers<[1], [0], [0], [1], [0, 0, 1, 1], [], []>} : vector<8x8xf32>, vector<8x32xf32>, vector<8x32xf32> -> vector<8x32xf32>
    %191 = arith.addf %185, %190 : vector<8x32xf32>
    %192 = tpu.concatenate %153, %191 in 0 : vector<8x32xf32>, vector<8x32xf32> -> vector<16x32xf32>
    %193 = arith.addf %55, %192 : vector<16x32xf32>
    %c1_124 = arith.constant 1 : index
    %c0_125 = arith.constant 0 : index
    %194 = vector.load %arg3[%c1_124, %c0_125] : memref<16x32xf32, #tpu.memory_space<vmem>>, vector<1x32xf32>
    %195 = vector.broadcast %194 : vector<1x32xf32> to vector<16x32xf32>
    %196 = arith.addf %193, %195 : vector<16x32xf32>
    %c2_126 = arith.constant 2 : index
    %c0_127 = arith.constant 0 : index
    %197 = vector.load %arg3[%c2_126, %c0_127] : memref<16x32xf32, #tpu.memory_space<vmem>>, vector<1x32xf32>
    %c3_128 = arith.constant 3 : index
    %c0_129 = arith.constant 0 : index
    %198 = vector.load %arg3[%c3_128, %c0_129] : memref<16x32xf32, #tpu.memory_space<vmem>>, vector<1x32xf32>
    %cst_130 = arith.constant dense<0.000000e+00> : vector<16xf32>
    %199 = vector.multi_reduction <add>, %196, %cst_130 [1] : vector<16x32xf32> to vector<16xf32>
    %200 = vector.shape_cast %199 : vector<16xf32> to vector<16x1xf32>
    %cst_131 = arith.constant 3.200000e+01 : f32
    %201 = vector.broadcast %cst_131 : f32 to vector<16x1xf32>
    %202 = arith.divf %200, %201 : vector<16x1xf32>
    %203 = vector.broadcast %202 : vector<16x1xf32> to vector<16x32xf32>
    %204 = arith.subf %196, %203 : vector<16x32xf32>
    %205 = arith.mulf %204, %204 : vector<16x32xf32>
    %cst_132 = arith.constant dense<0.000000e+00> : vector<16xf32>
    %206 = vector.multi_reduction <add>, %205, %cst_132 [1] : vector<16x32xf32> to vector<16xf32>
    %207 = vector.shape_cast %206 : vector<16xf32> to vector<16x1xf32>
    %cst_133 = arith.constant 3.200000e+01 : f32
    %208 = vector.broadcast %cst_133 : f32 to vector<16x1xf32>
    %209 = arith.divf %207, %208 : vector<16x1xf32>
    %210 = vector.broadcast %202 : vector<16x1xf32> to vector<16x32xf32>
    %211 = arith.subf %196, %210 : vector<16x32xf32>
    %cst_134 = arith.constant 9.99999974E-6 : f32
    %212 = vector.broadcast %cst_134 : f32 to vector<16x1xf32>
    %213 = arith.addf %209, %212 : vector<16x1xf32>
    %214 = math.rsqrt %213 : vector<16x1xf32>
    %215 = vector.broadcast %214 : vector<16x1xf32> to vector<16x32xf32>
    %216 = arith.mulf %211, %215 : vector<16x32xf32>
    %217 = vector.broadcast %197 : vector<1x32xf32> to vector<16x32xf32>
    %218 = arith.mulf %216, %217 : vector<16x32xf32>
    %219 = vector.broadcast %198 : vector<1x32xf32> to vector<16x32xf32>
    %220 = arith.addf %218, %219 : vector<16x32xf32>
    %c0_135 = arith.constant 0 : index
    %c0_136 = arith.constant 0 : index
    %221 = vector.load %arg15[%c0_135, %c0_136] : memref<32x64xf32, #tpu.memory_space<vmem>>, vector<32x64xf32>
    %cst_137 = arith.constant dense<0.000000e+00> : vector<16x64xf32>
    %222 = tpu.matmul %220, %221, %cst_137 {dimension_numbers = #tpu.dot_dimension_numbers<[1], [0], [0], [1], [0, 0, 1, 1], [], []>} : vector<16x32xf32>, vector<32x64xf32>, vector<16x64xf32> -> vector<16x64xf32>
    %c0_138 = arith.constant 0 : index
    %c0_139 = arith.constant 0 : index
    %223 = vector.load %arg16[%c0_138, %c0_139] : memref<1x64xf32, #tpu.memory_space<vmem>>, vector<1x64xf32>
    %224 = vector.broadcast %223 : vector<1x64xf32> to vector<16x64xf32>
    %225 = arith.addf %222, %224 : vector<16x64xf32>
    %cst_140 = arith.constant 5.000000e-01 : f32
    %226 = vector.broadcast %cst_140 : f32 to vector<16x64xf32>
    %227 = arith.mulf %226, %225 : vector<16x64xf32>
    %cst_141 = arith.constant 4.471500e-02 : f32
    %228 = vector.broadcast %cst_141 : f32 to vector<16x64xf32>
    %229 = arith.mulf %228, %225 : vector<16x64xf32>
    %230 = arith.mulf %229, %225 : vector<16x64xf32>
    %231 = arith.mulf %230, %225 : vector<16x64xf32>
    %232 = arith.addf %225, %231 : vector<16x64xf32>
    %cst_142 = arith.constant 0.797884583 : f32
    %233 = vector.broadcast %cst_142 : f32 to vector<16x64xf32>
    %234 = arith.mulf %233, %232 : vector<16x64xf32>
    %235 = math.tanh %234 : vector<16x64xf32>
    %cst_143 = arith.constant 1.000000e+00 : f32
    %236 = vector.broadcast %cst_143 : f32 to vector<16x64xf32>
    %237 = arith.addf %236, %235 : vector<16x64xf32>
    %238 = arith.mulf %227, %237 : vector<16x64xf32>
    %c0_144 = arith.constant 0 : index
    %c0_145 = arith.constant 0 : index
    %239 = vector.load %arg17[%c0_144, %c0_145] : memref<64x32xf32, #tpu.memory_space<vmem>>, vector<64x32xf32>
    %cst_146 = arith.constant dense<0.000000e+00> : vector<16x32xf32>
    %240 = tpu.matmul %238, %239, %cst_146 {dimension_numbers = #tpu.dot_dimension_numbers<[1], [0], [0], [1], [0, 0, 1, 1], [], []>} : vector<16x64xf32>, vector<64x32xf32>, vector<16x32xf32> -> vector<16x32xf32>
    %c4 = arith.constant 4 : index
    %c0_147 = arith.constant 0 : index
    %241 = vector.load %arg3[%c4, %c0_147] : memref<16x32xf32, #tpu.memory_space<vmem>>, vector<1x32xf32>
    %242 = vector.broadcast %241 : vector<1x32xf32> to vector<16x32xf32>
    %243 = arith.addf %240, %242 : vector<16x32xf32>
    %244 = arith.addf %220, %243 : vector<16x32xf32>
    %c5 = arith.constant 5 : index
    %c0_148 = arith.constant 0 : index
    %245 = vector.load %arg3[%c5, %c0_148] : memref<16x32xf32, #tpu.memory_space<vmem>>, vector<1x32xf32>
    %c6 = arith.constant 6 : index
    %c0_149 = arith.constant 0 : index
    %246 = vector.load %arg3[%c6, %c0_149] : memref<16x32xf32, #tpu.memory_space<vmem>>, vector<1x32xf32>
    %cst_150 = arith.constant dense<0.000000e+00> : vector<16xf32>
    %247 = vector.multi_reduction <add>, %244, %cst_150 [1] : vector<16x32xf32> to vector<16xf32>
    %248 = vector.shape_cast %247 : vector<16xf32> to vector<16x1xf32>
    %cst_151 = arith.constant 3.200000e+01 : f32
    %249 = vector.broadcast %cst_151 : f32 to vector<16x1xf32>
    %250 = arith.divf %248, %249 : vector<16x1xf32>
    %251 = vector.broadcast %250 : vector<16x1xf32> to vector<16x32xf32>
    %252 = arith.subf %244, %251 : vector<16x32xf32>
    %253 = arith.mulf %252, %252 : vector<16x32xf32>
    %cst_152 = arith.constant dense<0.000000e+00> : vector<16xf32>
    %254 = vector.multi_reduction <add>, %253, %cst_152 [1] : vector<16x32xf32> to vector<16xf32>
    %255 = vector.shape_cast %254 : vector<16xf32> to vector<16x1xf32>
    %cst_153 = arith.constant 3.200000e+01 : f32
    %256 = vector.broadcast %cst_153 : f32 to vector<16x1xf32>
    %257 = arith.divf %255, %256 : vector<16x1xf32>
    %258 = vector.broadcast %250 : vector<16x1xf32> to vector<16x32xf32>
    %259 = arith.subf %244, %258 : vector<16x32xf32>
    %cst_154 = arith.constant 9.99999974E-6 : f32
    %260 = vector.broadcast %cst_154 : f32 to vector<16x1xf32>
    %261 = arith.addf %257, %260 : vector<16x1xf32>
    %262 = math.rsqrt %261 : vector<16x1xf32>
    %263 = vector.broadcast %262 : vector<16x1xf32> to vector<16x32xf32>
    %264 = arith.mulf %259, %263 : vector<16x32xf32>
    %265 = vector.broadcast %245 : vector<1x32xf32> to vector<16x32xf32>
    %266 = arith.mulf %264, %265 : vector<16x32xf32>
    %267 = vector.broadcast %246 : vector<1x32xf32> to vector<16x32xf32>
    %268 = arith.addf %266, %267 : vector<16x32xf32>
    %269 = vector.shape_cast %268 : vector<16x32xf32> to vector<2x8x32xf32>
    %270 = vector.extract_strided_slice %269 {offsets = [0, 7, 0], sizes = [2, 1, 32], strides = [1, 1, 1]} : vector<2x8x32xf32> to vector<2x1x32xf32>
    %271 = vector.extract_strided_slice %269 {offsets = [0, 0, 0], sizes = [2, 7, 32], strides = [1, 1, 1]} : vector<2x8x32xf32> to vector<2x7x32xf32>
    %272 = tpu.concatenate %270, %271 in 1 : vector<2x1x32xf32>, vector<2x7x32xf32> -> vector<2x8x32xf32>
    %273 = vector.shape_cast %272 : vector<2x8x32xf32> to vector<16x32xf32>
    %274 = vector.extract_strided_slice %269 {offsets = [0, 1, 0], sizes = [2, 7, 32], strides = [1, 1, 1]} : vector<2x8x32xf32> to vector<2x7x32xf32>
    %275 = vector.extract_strided_slice %269 {offsets = [0, 0, 0], sizes = [2, 1, 32], strides = [1, 1, 1]} : vector<2x8x32xf32> to vector<2x1x32xf32>
    %276 = tpu.concatenate %274, %275 in 1 : vector<2x7x32xf32>, vector<2x1x32xf32> -> vector<2x8x32xf32>
    %277 = vector.shape_cast %276 : vector<2x8x32xf32> to vector<16x32xf32>
    %278 = vector.shape_cast %269 : vector<2x8x32xf32> to vector<16x32xf32>
    %c0_155 = arith.constant 0 : index
    %c0_156 = arith.constant 0 : index
    %c0_157 = arith.constant 0 : index
    %279 = vector.load %arg18[%c0_155, %c0_156, %c0_157] : memref<3x32x32xf32, #tpu.memory_space<vmem>>, vector<1x32x32xf32>
    %280 = vector.shape_cast %279 : vector<1x32x32xf32> to vector<32x32xf32>
    %cst_158 = arith.constant dense<0.000000e+00> : vector<16x32xf32>
    %281 = tpu.matmul %273, %280, %cst_158 {dimension_numbers = #tpu.dot_dimension_numbers<[1], [0], [0], [1], [0, 0, 1, 1], [], []>} : vector<16x32xf32>, vector<32x32xf32>, vector<16x32xf32> -> vector<16x32xf32>
    %c1_159 = arith.constant 1 : index
    %c0_160 = arith.constant 0 : index
    %c0_161 = arith.constant 0 : index
    %282 = vector.load %arg18[%c1_159, %c0_160, %c0_161] : memref<3x32x32xf32, #tpu.memory_space<vmem>>, vector<1x32x32xf32>
    %283 = vector.shape_cast %282 : vector<1x32x32xf32> to vector<32x32xf32>
    %cst_162 = arith.constant dense<0.000000e+00> : vector<16x32xf32>
    %284 = tpu.matmul %278, %283, %cst_162 {dimension_numbers = #tpu.dot_dimension_numbers<[1], [0], [0], [1], [0, 0, 1, 1], [], []>} : vector<16x32xf32>, vector<32x32xf32>, vector<16x32xf32> -> vector<16x32xf32>
    %285 = arith.addf %281, %284 : vector<16x32xf32>
    %c2_163 = arith.constant 2 : index
    %c0_164 = arith.constant 0 : index
    %c0_165 = arith.constant 0 : index
    %286 = vector.load %arg18[%c2_163, %c0_164, %c0_165] : memref<3x32x32xf32, #tpu.memory_space<vmem>>, vector<1x32x32xf32>
    %287 = vector.shape_cast %286 : vector<1x32x32xf32> to vector<32x32xf32>
    %cst_166 = arith.constant dense<0.000000e+00> : vector<16x32xf32>
    %288 = tpu.matmul %277, %287, %cst_166 {dimension_numbers = #tpu.dot_dimension_numbers<[1], [0], [0], [1], [0, 0, 1, 1], [], []>} : vector<16x32xf32>, vector<32x32xf32>, vector<16x32xf32> -> vector<16x32xf32>
    %289 = arith.addf %285, %288 : vector<16x32xf32>
    %c7 = arith.constant 7 : index
    %c0_167 = arith.constant 0 : index
    %290 = vector.load %arg3[%c7, %c0_167] : memref<16x32xf32, #tpu.memory_space<vmem>>, vector<1x32xf32>
    %291 = vector.broadcast %290 : vector<1x32xf32> to vector<16x32xf32>
    %292 = arith.addf %289, %291 : vector<16x32xf32>
    %cst_168 = arith.constant 0.000000e+00 : f32
    %293 = vector.broadcast %cst_168 : f32 to vector<16x32xf32>
    %294 = arith.cmpf ogt, %292, %293 : vector<16x32xf32>
    %cst_169 = arith.constant 0.000000e+00 : f32
    %295 = vector.broadcast %cst_169 : f32 to vector<16x32xf32>
    %296 = arith.minimumf %292, %295 : vector<16x32xf32>
    %297 = math.exp %296 : vector<16x32xf32>
    %cst_170 = arith.constant 1.000000e+00 : f32
    %298 = vector.broadcast %cst_170 : f32 to vector<16x32xf32>
    %299 = arith.subf %297, %298 : vector<16x32xf32>
    %300 = arith.select %294, %292, %299 : vector<16x32xi1>, vector<16x32xf32>
    %301 = vector.shape_cast %300 : vector<16x32xf32> to vector<2x8x32xf32>
    %cst_171 = arith.constant 0xFF800000 : f32
    %302 = vector.broadcast %cst_171 : f32 to vector<2x1x32xf32>
    %303 = vector.extract_strided_slice %301 {offsets = [0, 0, 0], sizes = [2, 7, 32], strides = [1, 1, 1]} : vector<2x8x32xf32> to vector<2x7x32xf32>
    %304 = tpu.concatenate %302, %303 in 1 : vector<2x1x32xf32>, vector<2x7x32xf32> -> vector<2x8x32xf32>
    %305 = arith.maximumf %301, %304 : vector<2x8x32xf32>
    %306 = vector.shape_cast %305 : vector<2x8x32xf32> to vector<8x2x32xf32>
    %307 = vector.extract_strided_slice %306 {offsets = [0, 0, 0], sizes = [8, 1, 32], strides = [1, 1, 1]} : vector<8x2x32xf32> to vector<8x1x32xf32>
    %308 = vector.shape_cast %307 : vector<8x1x32xf32> to vector<8x32xf32>
    %309 = vector.extract_strided_slice %306 {offsets = [0, 1, 0], sizes = [8, 1, 32], strides = [1, 1, 1]} : vector<8x2x32xf32> to vector<8x1x32xf32>
    %310 = vector.shape_cast %309 : vector<8x1x32xf32> to vector<8x32xf32>
    %311 = arith.maximumf %308, %310 : vector<8x32xf32>
    %c0_172 = arith.constant 0 : index
    %c0_173 = arith.constant 0 : index
    %c0_174 = arith.constant 0 : index
    %312 = vector.load %arg19[%c0_172, %c0_173, %c0_174] : memref<4x32x8xf32, #tpu.memory_space<vmem>>, vector<1x32x8xf32>
    %313 = vector.shape_cast %312 : vector<1x32x8xf32> to vector<32x8xf32>
    %cst_175 = arith.constant dense<0.000000e+00> : vector<8x8xf32>
    %314 = tpu.matmul %311, %313, %cst_175 {dimension_numbers = #tpu.dot_dimension_numbers<[1], [0], [0], [1], [0, 0, 1, 1], [], []>} : vector<8x32xf32>, vector<32x8xf32>, vector<8x8xf32> -> vector<8x8xf32>
    %c1_176 = arith.constant 1 : index
    %c0_177 = arith.constant 0 : index
    %c0_178 = arith.constant 0 : index
    %315 = vector.load %arg19[%c1_176, %c0_177, %c0_178] : memref<4x32x8xf32, #tpu.memory_space<vmem>>, vector<1x32x8xf32>
    %316 = vector.shape_cast %315 : vector<1x32x8xf32> to vector<32x8xf32>
    %cst_179 = arith.constant dense<0.000000e+00> : vector<8x8xf32>
    %317 = tpu.matmul %311, %316, %cst_179 {dimension_numbers = #tpu.dot_dimension_numbers<[1], [0], [0], [1], [0, 0, 1, 1], [], []>} : vector<8x32xf32>, vector<32x8xf32>, vector<8x8xf32> -> vector<8x8xf32>
    %c2_180 = arith.constant 2 : index
    %c0_181 = arith.constant 0 : index
    %c0_182 = arith.constant 0 : index
    %318 = vector.load %arg19[%c2_180, %c0_181, %c0_182] : memref<4x32x8xf32, #tpu.memory_space<vmem>>, vector<1x32x8xf32>
    %319 = vector.shape_cast %318 : vector<1x32x8xf32> to vector<32x8xf32>
    %cst_183 = arith.constant dense<0.000000e+00> : vector<8x8xf32>
    %320 = tpu.matmul %311, %319, %cst_183 {dimension_numbers = #tpu.dot_dimension_numbers<[1], [0], [0], [1], [0, 0, 1, 1], [], []>} : vector<8x32xf32>, vector<32x8xf32>, vector<8x8xf32> -> vector<8x8xf32>
    %c3_184 = arith.constant 3 : index
    %c0_185 = arith.constant 0 : index
    %c0_186 = arith.constant 0 : index
    %321 = vector.load %arg19[%c3_184, %c0_185, %c0_186] : memref<4x32x8xf32, #tpu.memory_space<vmem>>, vector<1x32x8xf32>
    %322 = vector.shape_cast %321 : vector<1x32x8xf32> to vector<32x8xf32>
    %cst_187 = arith.constant dense<0.000000e+00> : vector<8x8xf32>
    %323 = tpu.matmul %311, %322, %cst_187 {dimension_numbers = #tpu.dot_dimension_numbers<[1], [0], [0], [1], [0, 0, 1, 1], [], []>} : vector<8x32xf32>, vector<32x8xf32>, vector<8x8xf32> -> vector<8x8xf32>
    %324 = vector.shape_cast %314 : vector<8x8xf32> to vector<1x8x8xf32>
    %325 = vector.shape_cast %317 : vector<8x8xf32> to vector<1x8x8xf32>
    %326 = vector.shape_cast %320 : vector<8x8xf32> to vector<1x8x8xf32>
    %327 = vector.shape_cast %323 : vector<8x8xf32> to vector<1x8x8xf32>
    %328 = tpu.concatenate %324, %325, %326, %327 in 0 : vector<1x8x8xf32>, vector<1x8x8xf32>, vector<1x8x8xf32>, vector<1x8x8xf32> -> vector<4x8x8xf32>
    %c0_188 = arith.constant 0 : index
    %c0_189 = arith.constant 0 : index
    %c0_190 = arith.constant 0 : index
    %329 = vector.load %arg20[%c0_188, %c0_189, %c0_190] : memref<4x1x8xf32, #tpu.memory_space<vmem>>, vector<4x1x8xf32>
    %330 = vector.broadcast %329 : vector<4x1x8xf32> to vector<4x8x8xf32>
    %331 = arith.addf %328, %330 : vector<4x8x8xf32>
    %c0_191 = arith.constant 0 : index
    %c0_192 = arith.constant 0 : index
    %c0_193 = arith.constant 0 : index
    %332 = vector.load %arg21[%c0_191, %c0_192, %c0_193] : memref<4x32x8xf32, #tpu.memory_space<vmem>>, vector<1x32x8xf32>
    %333 = vector.shape_cast %332 : vector<1x32x8xf32> to vector<32x8xf32>
    %cst_194 = arith.constant dense<0.000000e+00> : vector<8x8xf32>
    %334 = tpu.matmul %311, %333, %cst_194 {dimension_numbers = #tpu.dot_dimension_numbers<[1], [0], [0], [1], [0, 0, 1, 1], [], []>} : vector<8x32xf32>, vector<32x8xf32>, vector<8x8xf32> -> vector<8x8xf32>
    %c1_195 = arith.constant 1 : index
    %c0_196 = arith.constant 0 : index
    %c0_197 = arith.constant 0 : index
    %335 = vector.load %arg21[%c1_195, %c0_196, %c0_197] : memref<4x32x8xf32, #tpu.memory_space<vmem>>, vector<1x32x8xf32>
    %336 = vector.shape_cast %335 : vector<1x32x8xf32> to vector<32x8xf32>
    %cst_198 = arith.constant dense<0.000000e+00> : vector<8x8xf32>
    %337 = tpu.matmul %311, %336, %cst_198 {dimension_numbers = #tpu.dot_dimension_numbers<[1], [0], [0], [1], [0, 0, 1, 1], [], []>} : vector<8x32xf32>, vector<32x8xf32>, vector<8x8xf32> -> vector<8x8xf32>
    %c2_199 = arith.constant 2 : index
    %c0_200 = arith.constant 0 : index
    %c0_201 = arith.constant 0 : index
    %338 = vector.load %arg21[%c2_199, %c0_200, %c0_201] : memref<4x32x8xf32, #tpu.memory_space<vmem>>, vector<1x32x8xf32>
    %339 = vector.shape_cast %338 : vector<1x32x8xf32> to vector<32x8xf32>
    %cst_202 = arith.constant dense<0.000000e+00> : vector<8x8xf32>
    %340 = tpu.matmul %311, %339, %cst_202 {dimension_numbers = #tpu.dot_dimension_numbers<[1], [0], [0], [1], [0, 0, 1, 1], [], []>} : vector<8x32xf32>, vector<32x8xf32>, vector<8x8xf32> -> vector<8x8xf32>
    %c3_203 = arith.constant 3 : index
    %c0_204 = arith.constant 0 : index
    %c0_205 = arith.constant 0 : index
    %341 = vector.load %arg21[%c3_203, %c0_204, %c0_205] : memref<4x32x8xf32, #tpu.memory_space<vmem>>, vector<1x32x8xf32>
    %342 = vector.shape_cast %341 : vector<1x32x8xf32> to vector<32x8xf32>
    %cst_206 = arith.constant dense<0.000000e+00> : vector<8x8xf32>
    %343 = tpu.matmul %311, %342, %cst_206 {dimension_numbers = #tpu.dot_dimension_numbers<[1], [0], [0], [1], [0, 0, 1, 1], [], []>} : vector<8x32xf32>, vector<32x8xf32>, vector<8x8xf32> -> vector<8x8xf32>
    %344 = vector.shape_cast %334 : vector<8x8xf32> to vector<1x8x8xf32>
    %345 = vector.shape_cast %337 : vector<8x8xf32> to vector<1x8x8xf32>
    %346 = vector.shape_cast %340 : vector<8x8xf32> to vector<1x8x8xf32>
    %347 = vector.shape_cast %343 : vector<8x8xf32> to vector<1x8x8xf32>
    %348 = tpu.concatenate %344, %345, %346, %347 in 0 : vector<1x8x8xf32>, vector<1x8x8xf32>, vector<1x8x8xf32>, vector<1x8x8xf32> -> vector<4x8x8xf32>
    %c0_207 = arith.constant 0 : index
    %c0_208 = arith.constant 0 : index
    %c0_209 = arith.constant 0 : index
    %349 = vector.load %arg22[%c0_207, %c0_208, %c0_209] : memref<4x1x8xf32, #tpu.memory_space<vmem>>, vector<4x1x8xf32>
    %350 = vector.broadcast %349 : vector<4x1x8xf32> to vector<4x8x8xf32>
    %351 = arith.addf %348, %350 : vector<4x8x8xf32>
    %c0_210 = arith.constant 0 : index
    %c0_211 = arith.constant 0 : index
    %c0_212 = arith.constant 0 : index
    %352 = vector.load %arg23[%c0_210, %c0_211, %c0_212] : memref<4x32x8xf32, #tpu.memory_space<vmem>>, vector<1x32x8xf32>
    %353 = vector.shape_cast %352 : vector<1x32x8xf32> to vector<32x8xf32>
    %cst_213 = arith.constant dense<0.000000e+00> : vector<8x8xf32>
    %354 = tpu.matmul %311, %353, %cst_213 {dimension_numbers = #tpu.dot_dimension_numbers<[1], [0], [0], [1], [0, 0, 1, 1], [], []>} : vector<8x32xf32>, vector<32x8xf32>, vector<8x8xf32> -> vector<8x8xf32>
    %c1_214 = arith.constant 1 : index
    %c0_215 = arith.constant 0 : index
    %c0_216 = arith.constant 0 : index
    %355 = vector.load %arg23[%c1_214, %c0_215, %c0_216] : memref<4x32x8xf32, #tpu.memory_space<vmem>>, vector<1x32x8xf32>
    %356 = vector.shape_cast %355 : vector<1x32x8xf32> to vector<32x8xf32>
    %cst_217 = arith.constant dense<0.000000e+00> : vector<8x8xf32>
    %357 = tpu.matmul %311, %356, %cst_217 {dimension_numbers = #tpu.dot_dimension_numbers<[1], [0], [0], [1], [0, 0, 1, 1], [], []>} : vector<8x32xf32>, vector<32x8xf32>, vector<8x8xf32> -> vector<8x8xf32>
    %c2_218 = arith.constant 2 : index
    %c0_219 = arith.constant 0 : index
    %c0_220 = arith.constant 0 : index
    %358 = vector.load %arg23[%c2_218, %c0_219, %c0_220] : memref<4x32x8xf32, #tpu.memory_space<vmem>>, vector<1x32x8xf32>
    %359 = vector.shape_cast %358 : vector<1x32x8xf32> to vector<32x8xf32>
    %cst_221 = arith.constant dense<0.000000e+00> : vector<8x8xf32>
    %360 = tpu.matmul %311, %359, %cst_221 {dimension_numbers = #tpu.dot_dimension_numbers<[1], [0], [0], [1], [0, 0, 1, 1], [], []>} : vector<8x32xf32>, vector<32x8xf32>, vector<8x8xf32> -> vector<8x8xf32>
    %c3_222 = arith.constant 3 : index
    %c0_223 = arith.constant 0 : index
    %c0_224 = arith.constant 0 : index
    %361 = vector.load %arg23[%c3_222, %c0_223, %c0_224] : memref<4x32x8xf32, #tpu.memory_space<vmem>>, vector<1x32x8xf32>
    %362 = vector.shape_cast %361 : vector<1x32x8xf32> to vector<32x8xf32>
    %cst_225 = arith.constant dense<0.000000e+00> : vector<8x8xf32>
    %363 = tpu.matmul %311, %362, %cst_225 {dimension_numbers = #tpu.dot_dimension_numbers<[1], [0], [0], [1], [0, 0, 1, 1], [], []>} : vector<8x32xf32>, vector<32x8xf32>, vector<8x8xf32> -> vector<8x8xf32>
    %364 = vector.shape_cast %354 : vector<8x8xf32> to vector<1x8x8xf32>
    %365 = vector.shape_cast %357 : vector<8x8xf32> to vector<1x8x8xf32>
    %366 = vector.shape_cast %360 : vector<8x8xf32> to vector<1x8x8xf32>
    %367 = vector.shape_cast %363 : vector<8x8xf32> to vector<1x8x8xf32>
    %368 = tpu.concatenate %364, %365, %366, %367 in 0 : vector<1x8x8xf32>, vector<1x8x8xf32>, vector<1x8x8xf32>, vector<1x8x8xf32> -> vector<4x8x8xf32>
    %c0_226 = arith.constant 0 : index
    %c0_227 = arith.constant 0 : index
    %c0_228 = arith.constant 0 : index
    %369 = vector.load %arg24[%c0_226, %c0_227, %c0_228] : memref<4x1x8xf32, #tpu.memory_space<vmem>>, vector<4x1x8xf32>
    %370 = vector.broadcast %369 : vector<4x1x8xf32> to vector<4x8x8xf32>
    %371 = arith.addf %368, %370 : vector<4x8x8xf32>
    %372 = vector.extract_strided_slice %331 {offsets = [0, 0, 0], sizes = [4, 4, 8], strides = [1, 1, 1]} : vector<4x8x8xf32> to vector<4x4x8xf32>
    %373 = vector.extract_strided_slice %351 {offsets = [0, 0, 0], sizes = [4, 4, 8], strides = [1, 1, 1]} : vector<4x8x8xf32> to vector<4x4x8xf32>
    "tpu.trace_start"() <{level = 10 : i32, message = "hqd,hkd->hqk"}> : () -> ()
    %cst_229 = arith.constant dense<0.000000e+00> : vector<4x4x4xf32>
    %374 = tpu.matmul %372, %373, %cst_229 {dimension_numbers = #tpu.dot_dimension_numbers<[2], [2], [1], [1], [0, 0, 0, 1, 1, 1], [0], [0]>} : vector<4x4x8xf32>, vector<4x4x8xf32>, vector<4x4x4xf32> -> vector<4x4x4xf32>
    "tpu.trace_stop"() : () -> ()
    %cst_230 = arith.constant dense<0xFF800000> : vector<4x4xf32>
    %375 = vector.multi_reduction <maximumf>, %374, %cst_230 [2] : vector<4x4x4xf32> to vector<4x4xf32>
    %376 = vector.shape_cast %375 : vector<4x4xf32> to vector<4x4x1xf32>
    %377 = vector.broadcast %376 : vector<4x4x1xf32> to vector<4x4x4xf32>
    %378 = arith.subf %374, %377 : vector<4x4x4xf32>
    %379 = math.exp %378 : vector<4x4x4xf32>
    %cst_231 = arith.constant dense<0.000000e+00> : vector<4x4xf32>
    %380 = vector.multi_reduction <add>, %379, %cst_231 [2] : vector<4x4x4xf32> to vector<4x4xf32>
    %381 = vector.shape_cast %380 : vector<4x4xf32> to vector<4x4x1xf32>
    %382 = tpu.reciprocal %381 : vector<4x4x1xf32> -> vector<4x4x1xf32>
    %383 = vector.broadcast %382 : vector<4x4x1xf32> to vector<4x4x4xf32>
    %384 = arith.mulf %379, %383 : vector<4x4x4xf32>
    %385 = vector.extract_strided_slice %371 {offsets = [0, 0, 0], sizes = [4, 4, 8], strides = [1, 1, 1]} : vector<4x8x8xf32> to vector<4x4x8xf32>
    "tpu.trace_start"() <{level = 10 : i32, message = "hqk,hkd->hqd"}> : () -> ()
    %cst_232 = arith.constant dense<0.000000e+00> : vector<4x4x8xf32>
    %386 = tpu.matmul %384, %385, %cst_232 {dimension_numbers = #tpu.dot_dimension_numbers<[2], [1], [1], [2], [0, 0, 0, 1, 1, 2], [0], [0]>} : vector<4x4x4xf32>, vector<4x4x8xf32>, vector<4x4x8xf32> -> vector<4x4x8xf32>
    "tpu.trace_stop"() : () -> ()
    %387 = vector.extract_strided_slice %386 {offsets = [0, 0, 0], sizes = [1, 4, 8], strides = [1, 1, 1]} : vector<4x4x8xf32> to vector<1x4x8xf32>
    %388 = vector.shape_cast %387 : vector<1x4x8xf32> to vector<4x8xf32>
    %c0_233 = arith.constant 0 : index
    %c0_234 = arith.constant 0 : index
    %c0_235 = arith.constant 0 : index
    %389 = vector.load %arg25[%c0_233, %c0_234, %c0_235] : memref<4x8x32xf32, #tpu.memory_space<vmem>>, vector<1x8x32xf32>
    %390 = vector.shape_cast %389 : vector<1x8x32xf32> to vector<8x32xf32>
    %cst_236 = arith.constant dense<0.000000e+00> : vector<4x32xf32>
    %391 = tpu.matmul %388, %390, %cst_236 {dimension_numbers = #tpu.dot_dimension_numbers<[1], [0], [0], [1], [0, 0, 1, 1], [], []>} : vector<4x8xf32>, vector<8x32xf32>, vector<4x32xf32> -> vector<4x32xf32>
    %392 = vector.extract_strided_slice %386 {offsets = [1, 0, 0], sizes = [1, 4, 8], strides = [1, 1, 1]} : vector<4x4x8xf32> to vector<1x4x8xf32>
    %393 = vector.shape_cast %392 : vector<1x4x8xf32> to vector<4x8xf32>
    %c1_237 = arith.constant 1 : index
    %c0_238 = arith.constant 0 : index
    %c0_239 = arith.constant 0 : index
    %394 = vector.load %arg25[%c1_237, %c0_238, %c0_239] : memref<4x8x32xf32, #tpu.memory_space<vmem>>, vector<1x8x32xf32>
    %395 = vector.shape_cast %394 : vector<1x8x32xf32> to vector<8x32xf32>
    %cst_240 = arith.constant dense<0.000000e+00> : vector<4x32xf32>
    %396 = tpu.matmul %393, %395, %cst_240 {dimension_numbers = #tpu.dot_dimension_numbers<[1], [0], [0], [1], [0, 0, 1, 1], [], []>} : vector<4x8xf32>, vector<8x32xf32>, vector<4x32xf32> -> vector<4x32xf32>
    %397 = arith.addf %391, %396 : vector<4x32xf32>
    %398 = vector.extract_strided_slice %386 {offsets = [2, 0, 0], sizes = [1, 4, 8], strides = [1, 1, 1]} : vector<4x4x8xf32> to vector<1x4x8xf32>
    %399 = vector.shape_cast %398 : vector<1x4x8xf32> to vector<4x8xf32>
    %c2_241 = arith.constant 2 : index
    %c0_242 = arith.constant 0 : index
    %c0_243 = arith.constant 0 : index
    %400 = vector.load %arg25[%c2_241, %c0_242, %c0_243] : memref<4x8x32xf32, #tpu.memory_space<vmem>>, vector<1x8x32xf32>
    %401 = vector.shape_cast %400 : vector<1x8x32xf32> to vector<8x32xf32>
    %cst_244 = arith.constant dense<0.000000e+00> : vector<4x32xf32>
    %402 = tpu.matmul %399, %401, %cst_244 {dimension_numbers = #tpu.dot_dimension_numbers<[1], [0], [0], [1], [0, 0, 1, 1], [], []>} : vector<4x8xf32>, vector<8x32xf32>, vector<4x32xf32> -> vector<4x32xf32>
    %403 = arith.addf %397, %402 : vector<4x32xf32>
    %404 = vector.extract_strided_slice %386 {offsets = [3, 0, 0], sizes = [1, 4, 8], strides = [1, 1, 1]} : vector<4x4x8xf32> to vector<1x4x8xf32>
    %405 = vector.shape_cast %404 : vector<1x4x8xf32> to vector<4x8xf32>
    %c3_245 = arith.constant 3 : index
    %c0_246 = arith.constant 0 : index
    %c0_247 = arith.constant 0 : index
    %406 = vector.load %arg25[%c3_245, %c0_246, %c0_247] : memref<4x8x32xf32, #tpu.memory_space<vmem>>, vector<1x8x32xf32>
    %407 = vector.shape_cast %406 : vector<1x8x32xf32> to vector<8x32xf32>
    %cst_248 = arith.constant dense<0.000000e+00> : vector<4x32xf32>
    %408 = tpu.matmul %405, %407, %cst_248 {dimension_numbers = #tpu.dot_dimension_numbers<[1], [0], [0], [1], [0, 0, 1, 1], [], []>} : vector<4x8xf32>, vector<8x32xf32>, vector<4x32xf32> -> vector<4x32xf32>
    %409 = arith.addf %403, %408 : vector<4x32xf32>
    %410 = vector.extract_strided_slice %331 {offsets = [0, 4, 0], sizes = [4, 4, 8], strides = [1, 1, 1]} : vector<4x8x8xf32> to vector<4x4x8xf32>
    %411 = vector.extract_strided_slice %351 {offsets = [0, 4, 0], sizes = [4, 4, 8], strides = [1, 1, 1]} : vector<4x8x8xf32> to vector<4x4x8xf32>
    "tpu.trace_start"() <{level = 10 : i32, message = "hqd,hkd->hqk"}> : () -> ()
    %cst_249 = arith.constant dense<0.000000e+00> : vector<4x4x4xf32>
    %412 = tpu.matmul %410, %411, %cst_249 {dimension_numbers = #tpu.dot_dimension_numbers<[2], [2], [1], [1], [0, 0, 0, 1, 1, 1], [0], [0]>} : vector<4x4x8xf32>, vector<4x4x8xf32>, vector<4x4x4xf32> -> vector<4x4x4xf32>
    "tpu.trace_stop"() : () -> ()
    %cst_250 = arith.constant dense<0xFF800000> : vector<4x4xf32>
    %413 = vector.multi_reduction <maximumf>, %412, %cst_250 [2] : vector<4x4x4xf32> to vector<4x4xf32>
    %414 = vector.shape_cast %413 : vector<4x4xf32> to vector<4x4x1xf32>
    %415 = vector.broadcast %414 : vector<4x4x1xf32> to vector<4x4x4xf32>
    %416 = arith.subf %412, %415 : vector<4x4x4xf32>
    %417 = math.exp %416 : vector<4x4x4xf32>
    %cst_251 = arith.constant dense<0.000000e+00> : vector<4x4xf32>
    %418 = vector.multi_reduction <add>, %417, %cst_251 [2] : vector<4x4x4xf32> to vector<4x4xf32>
    %419 = vector.shape_cast %418 : vector<4x4xf32> to vector<4x4x1xf32>
    %420 = tpu.reciprocal %419 : vector<4x4x1xf32> -> vector<4x4x1xf32>
    %421 = vector.broadcast %420 : vector<4x4x1xf32> to vector<4x4x4xf32>
    %422 = arith.mulf %417, %421 : vector<4x4x4xf32>
    %423 = vector.extract_strided_slice %371 {offsets = [0, 4, 0], sizes = [4, 4, 8], strides = [1, 1, 1]} : vector<4x8x8xf32> to vector<4x4x8xf32>
    "tpu.trace_start"() <{level = 10 : i32, message = "hqk,hkd->hqd"}> : () -> ()
    %cst_252 = arith.constant dense<0.000000e+00> : vector<4x4x8xf32>
    %424 = tpu.matmul %422, %423, %cst_252 {dimension_numbers = #tpu.dot_dimension_numbers<[2], [1], [1], [2], [0, 0, 0, 1, 1, 2], [0], [0]>} : vector<4x4x4xf32>, vector<4x4x8xf32>, vector<4x4x8xf32> -> vector<4x4x8xf32>
    "tpu.trace_stop"() : () -> ()
    %425 = vector.extract_strided_slice %424 {offsets = [0, 0, 0], sizes = [1, 4, 8], strides = [1, 1, 1]} : vector<4x4x8xf32> to vector<1x4x8xf32>
    %426 = vector.shape_cast %425 : vector<1x4x8xf32> to vector<4x8xf32>
    %c0_253 = arith.constant 0 : index
    %c0_254 = arith.constant 0 : index
    %c0_255 = arith.constant 0 : index
    %427 = vector.load %arg25[%c0_253, %c0_254, %c0_255] : memref<4x8x32xf32, #tpu.memory_space<vmem>>, vector<1x8x32xf32>
    %428 = vector.shape_cast %427 : vector<1x8x32xf32> to vector<8x32xf32>
    %cst_256 = arith.constant dense<0.000000e+00> : vector<4x32xf32>
    %429 = tpu.matmul %426, %428, %cst_256 {dimension_numbers = #tpu.dot_dimension_numbers<[1], [0], [0], [1], [0, 0, 1, 1], [], []>} : vector<4x8xf32>, vector<8x32xf32>, vector<4x32xf32> -> vector<4x32xf32>
    %430 = vector.extract_strided_slice %424 {offsets = [1, 0, 0], sizes = [1, 4, 8], strides = [1, 1, 1]} : vector<4x4x8xf32> to vector<1x4x8xf32>
    %431 = vector.shape_cast %430 : vector<1x4x8xf32> to vector<4x8xf32>
    %c1_257 = arith.constant 1 : index
    %c0_258 = arith.constant 0 : index
    %c0_259 = arith.constant 0 : index
    %432 = vector.load %arg25[%c1_257, %c0_258, %c0_259] : memref<4x8x32xf32, #tpu.memory_space<vmem>>, vector<1x8x32xf32>
    %433 = vector.shape_cast %432 : vector<1x8x32xf32> to vector<8x32xf32>
    %cst_260 = arith.constant dense<0.000000e+00> : vector<4x32xf32>
    %434 = tpu.matmul %431, %433, %cst_260 {dimension_numbers = #tpu.dot_dimension_numbers<[1], [0], [0], [1], [0, 0, 1, 1], [], []>} : vector<4x8xf32>, vector<8x32xf32>, vector<4x32xf32> -> vector<4x32xf32>
    %435 = arith.addf %429, %434 : vector<4x32xf32>
    %436 = vector.extract_strided_slice %424 {offsets = [2, 0, 0], sizes = [1, 4, 8], strides = [1, 1, 1]} : vector<4x4x8xf32> to vector<1x4x8xf32>
    %437 = vector.shape_cast %436 : vector<1x4x8xf32> to vector<4x8xf32>
    %c2_261 = arith.constant 2 : index
    %c0_262 = arith.constant 0 : index
    %c0_263 = arith.constant 0 : index
    %438 = vector.load %arg25[%c2_261, %c0_262, %c0_263] : memref<4x8x32xf32, #tpu.memory_space<vmem>>, vector<1x8x32xf32>
    %439 = vector.shape_cast %438 : vector<1x8x32xf32> to vector<8x32xf32>
    %cst_264 = arith.constant dense<0.000000e+00> : vector<4x32xf32>
    %440 = tpu.matmul %437, %439, %cst_264 {dimension_numbers = #tpu.dot_dimension_numbers<[1], [0], [0], [1], [0, 0, 1, 1], [], []>} : vector<4x8xf32>, vector<8x32xf32>, vector<4x32xf32> -> vector<4x32xf32>
    %441 = arith.addf %435, %440 : vector<4x32xf32>
    %442 = vector.extract_strided_slice %424 {offsets = [3, 0, 0], sizes = [1, 4, 8], strides = [1, 1, 1]} : vector<4x4x8xf32> to vector<1x4x8xf32>
    %443 = vector.shape_cast %442 : vector<1x4x8xf32> to vector<4x8xf32>
    %c3_265 = arith.constant 3 : index
    %c0_266 = arith.constant 0 : index
    %c0_267 = arith.constant 0 : index
    %444 = vector.load %arg25[%c3_265, %c0_266, %c0_267] : memref<4x8x32xf32, #tpu.memory_space<vmem>>, vector<1x8x32xf32>
    %445 = vector.shape_cast %444 : vector<1x8x32xf32> to vector<8x32xf32>
    %cst_268 = arith.constant dense<0.000000e+00> : vector<4x32xf32>
    %446 = tpu.matmul %443, %445, %cst_268 {dimension_numbers = #tpu.dot_dimension_numbers<[1], [0], [0], [1], [0, 0, 1, 1], [], []>} : vector<4x8xf32>, vector<8x32xf32>, vector<4x32xf32> -> vector<4x32xf32>
    %447 = arith.addf %441, %446 : vector<4x32xf32>
    %448 = tpu.concatenate %409, %447 in 0 : vector<4x32xf32>, vector<4x32xf32> -> vector<8x32xf32>
    %449 = arith.addf %311, %448 : vector<8x32xf32>
    %c8 = arith.constant 8 : index
    %c0_269 = arith.constant 0 : index
    %450 = vector.load %arg3[%c8, %c0_269] : memref<16x32xf32, #tpu.memory_space<vmem>>, vector<1x32xf32>
    %451 = vector.broadcast %450 : vector<1x32xf32> to vector<8x32xf32>
    %452 = arith.addf %449, %451 : vector<8x32xf32>
    %c9 = arith.constant 9 : index
    %c0_270 = arith.constant 0 : index
    %453 = vector.load %arg3[%c9, %c0_270] : memref<16x32xf32, #tpu.memory_space<vmem>>, vector<1x32xf32>
    %c10 = arith.constant 10 : index
    %c0_271 = arith.constant 0 : index
    %454 = vector.load %arg3[%c10, %c0_271] : memref<16x32xf32, #tpu.memory_space<vmem>>, vector<1x32xf32>
    %cst_272 = arith.constant dense<0.000000e+00> : vector<8xf32>
    %455 = vector.multi_reduction <add>, %452, %cst_272 [1] : vector<8x32xf32> to vector<8xf32>
    %456 = vector.shape_cast %455 : vector<8xf32> to vector<8x1xf32>
    %cst_273 = arith.constant 3.200000e+01 : f32
    %457 = vector.broadcast %cst_273 : f32 to vector<8x1xf32>
    %458 = arith.divf %456, %457 : vector<8x1xf32>
    %459 = vector.broadcast %458 : vector<8x1xf32> to vector<8x32xf32>
    %460 = arith.subf %452, %459 : vector<8x32xf32>
    %461 = arith.mulf %460, %460 : vector<8x32xf32>
    %cst_274 = arith.constant dense<0.000000e+00> : vector<8xf32>
    %462 = vector.multi_reduction <add>, %461, %cst_274 [1] : vector<8x32xf32> to vector<8xf32>
    %463 = vector.shape_cast %462 : vector<8xf32> to vector<8x1xf32>
    %cst_275 = arith.constant 3.200000e+01 : f32
    %464 = vector.broadcast %cst_275 : f32 to vector<8x1xf32>
    %465 = arith.divf %463, %464 : vector<8x1xf32>
    %466 = vector.broadcast %458 : vector<8x1xf32> to vector<8x32xf32>
    %467 = arith.subf %452, %466 : vector<8x32xf32>
    %cst_276 = arith.constant 9.99999974E-6 : f32
    %468 = vector.broadcast %cst_276 : f32 to vector<8x1xf32>
    %469 = arith.addf %465, %468 : vector<8x1xf32>
    %470 = math.rsqrt %469 : vector<8x1xf32>
    %471 = vector.broadcast %470 : vector<8x1xf32> to vector<8x32xf32>
    %472 = arith.mulf %467, %471 : vector<8x32xf32>
    %473 = vector.broadcast %453 : vector<1x32xf32> to vector<8x32xf32>
    %474 = arith.mulf %472, %473 : vector<8x32xf32>
    %475 = vector.broadcast %454 : vector<1x32xf32> to vector<8x32xf32>
    %476 = arith.addf %474, %475 : vector<8x32xf32>
    %c0_277 = arith.constant 0 : index
    %c0_278 = arith.constant 0 : index
    %477 = vector.load %arg26[%c0_277, %c0_278] : memref<32x64xf32, #tpu.memory_space<vmem>>, vector<32x64xf32>
    %cst_279 = arith.constant dense<0.000000e+00> : vector<8x64xf32>
    %478 = tpu.matmul %476, %477, %cst_279 {dimension_numbers = #tpu.dot_dimension_numbers<[1], [0], [0], [1], [0, 0, 1, 1], [], []>} : vector<8x32xf32>, vector<32x64xf32>, vector<8x64xf32> -> vector<8x64xf32>
    %c0_280 = arith.constant 0 : index
    %c0_281 = arith.constant 0 : index
    %479 = vector.load %arg27[%c0_280, %c0_281] : memref<1x64xf32, #tpu.memory_space<vmem>>, vector<1x64xf32>
    %480 = vector.broadcast %479 : vector<1x64xf32> to vector<8x64xf32>
    %481 = arith.addf %478, %480 : vector<8x64xf32>
    %cst_282 = arith.constant 5.000000e-01 : f32
    %482 = vector.broadcast %cst_282 : f32 to vector<8x64xf32>
    %483 = arith.mulf %482, %481 : vector<8x64xf32>
    %cst_283 = arith.constant 4.471500e-02 : f32
    %484 = vector.broadcast %cst_283 : f32 to vector<8x64xf32>
    %485 = arith.mulf %484, %481 : vector<8x64xf32>
    %486 = arith.mulf %485, %481 : vector<8x64xf32>
    %487 = arith.mulf %486, %481 : vector<8x64xf32>
    %488 = arith.addf %481, %487 : vector<8x64xf32>
    %cst_284 = arith.constant 0.797884583 : f32
    %489 = vector.broadcast %cst_284 : f32 to vector<8x64xf32>
    %490 = arith.mulf %489, %488 : vector<8x64xf32>
    %491 = math.tanh %490 : vector<8x64xf32>
    %cst_285 = arith.constant 1.000000e+00 : f32
    %492 = vector.broadcast %cst_285 : f32 to vector<8x64xf32>
    %493 = arith.addf %492, %491 : vector<8x64xf32>
    %494 = arith.mulf %483, %493 : vector<8x64xf32>
    %c0_286 = arith.constant 0 : index
    %c0_287 = arith.constant 0 : index
    %495 = vector.load %arg28[%c0_286, %c0_287] : memref<64x32xf32, #tpu.memory_space<vmem>>, vector<64x32xf32>
    %cst_288 = arith.constant dense<0.000000e+00> : vector<8x32xf32>
    %496 = tpu.matmul %494, %495, %cst_288 {dimension_numbers = #tpu.dot_dimension_numbers<[1], [0], [0], [1], [0, 0, 1, 1], [], []>} : vector<8x64xf32>, vector<64x32xf32>, vector<8x32xf32> -> vector<8x32xf32>
    %c11 = arith.constant 11 : index
    %c0_289 = arith.constant 0 : index
    %497 = vector.load %arg3[%c11, %c0_289] : memref<16x32xf32, #tpu.memory_space<vmem>>, vector<1x32xf32>
    %498 = vector.broadcast %497 : vector<1x32xf32> to vector<8x32xf32>
    %499 = arith.addf %496, %498 : vector<8x32xf32>
    %500 = arith.addf %476, %499 : vector<8x32xf32>
    %c12 = arith.constant 12 : index
    %c0_290 = arith.constant 0 : index
    %501 = vector.load %arg3[%c12, %c0_290] : memref<16x32xf32, #tpu.memory_space<vmem>>, vector<1x32xf32>
    %c13 = arith.constant 13 : index
    %c0_291 = arith.constant 0 : index
    %502 = vector.load %arg3[%c13, %c0_291] : memref<16x32xf32, #tpu.memory_space<vmem>>, vector<1x32xf32>
    %cst_292 = arith.constant dense<0.000000e+00> : vector<8xf32>
    %503 = vector.multi_reduction <add>, %500, %cst_292 [1] : vector<8x32xf32> to vector<8xf32>
    %504 = vector.shape_cast %503 : vector<8xf32> to vector<8x1xf32>
    %cst_293 = arith.constant 3.200000e+01 : f32
    %505 = vector.broadcast %cst_293 : f32 to vector<8x1xf32>
    %506 = arith.divf %504, %505 : vector<8x1xf32>
    %507 = vector.broadcast %506 : vector<8x1xf32> to vector<8x32xf32>
    %508 = arith.subf %500, %507 : vector<8x32xf32>
    %509 = arith.mulf %508, %508 : vector<8x32xf32>
    %cst_294 = arith.constant dense<0.000000e+00> : vector<8xf32>
    %510 = vector.multi_reduction <add>, %509, %cst_294 [1] : vector<8x32xf32> to vector<8xf32>
    %511 = vector.shape_cast %510 : vector<8xf32> to vector<8x1xf32>
    %cst_295 = arith.constant 3.200000e+01 : f32
    %512 = vector.broadcast %cst_295 : f32 to vector<8x1xf32>
    %513 = arith.divf %511, %512 : vector<8x1xf32>
    %514 = vector.broadcast %506 : vector<8x1xf32> to vector<8x32xf32>
    %515 = arith.subf %500, %514 : vector<8x32xf32>
    %cst_296 = arith.constant 9.99999974E-6 : f32
    %516 = vector.broadcast %cst_296 : f32 to vector<8x1xf32>
    %517 = arith.addf %513, %516 : vector<8x1xf32>
    %518 = math.rsqrt %517 : vector<8x1xf32>
    %519 = vector.broadcast %518 : vector<8x1xf32> to vector<8x32xf32>
    %520 = arith.mulf %515, %519 : vector<8x32xf32>
    %521 = vector.broadcast %501 : vector<1x32xf32> to vector<8x32xf32>
    %522 = arith.mulf %520, %521 : vector<8x32xf32>
    %523 = vector.broadcast %502 : vector<1x32xf32> to vector<8x32xf32>
    %524 = arith.addf %522, %523 : vector<8x32xf32>
    %c14 = arith.constant 14 : index
    %c0_297 = arith.constant 0 : index
    %525 = vector.load %arg3[%c14, %c0_297] : memref<16x32xf32, #tpu.memory_space<vmem>>, vector<1x32xf32>
    %c15 = arith.constant 15 : index
    %c0_298 = arith.constant 0 : index
    %526 = vector.load %arg3[%c15, %c0_298] : memref<16x32xf32, #tpu.memory_space<vmem>>, vector<1x32xf32>
    %cst_299 = arith.constant dense<0.000000e+00> : vector<8xf32>
    %527 = vector.multi_reduction <add>, %524, %cst_299 [1] : vector<8x32xf32> to vector<8xf32>
    %528 = vector.shape_cast %527 : vector<8xf32> to vector<8x1xf32>
    %cst_300 = arith.constant 3.200000e+01 : f32
    %529 = vector.broadcast %cst_300 : f32 to vector<8x1xf32>
    %530 = arith.divf %528, %529 : vector<8x1xf32>
    %531 = vector.broadcast %530 : vector<8x1xf32> to vector<8x32xf32>
    %532 = arith.subf %524, %531 : vector<8x32xf32>
    %533 = arith.mulf %532, %532 : vector<8x32xf32>
    %cst_301 = arith.constant dense<0.000000e+00> : vector<8xf32>
    %534 = vector.multi_reduction <add>, %533, %cst_301 [1] : vector<8x32xf32> to vector<8xf32>
    %535 = vector.shape_cast %534 : vector<8xf32> to vector<8x1xf32>
    %cst_302 = arith.constant 3.200000e+01 : f32
    %536 = vector.broadcast %cst_302 : f32 to vector<8x1xf32>
    %537 = arith.divf %535, %536 : vector<8x1xf32>
    %538 = vector.broadcast %530 : vector<8x1xf32> to vector<8x32xf32>
    %539 = arith.subf %524, %538 : vector<8x32xf32>
    %cst_303 = arith.constant 9.99999974E-6 : f32
    %540 = vector.broadcast %cst_303 : f32 to vector<8x1xf32>
    %541 = arith.addf %537, %540 : vector<8x1xf32>
    %542 = math.rsqrt %541 : vector<8x1xf32>
    %543 = vector.broadcast %542 : vector<8x1xf32> to vector<8x32xf32>
    %544 = arith.mulf %539, %543 : vector<8x32xf32>
    %545 = vector.broadcast %525 : vector<1x32xf32> to vector<8x32xf32>
    %546 = arith.mulf %544, %545 : vector<8x32xf32>
    %547 = vector.broadcast %526 : vector<1x32xf32> to vector<8x32xf32>
    %548 = arith.addf %546, %547 : vector<8x32xf32>
    %549 = vector.shape_cast %548 : vector<8x32xf32> to vector<2x4x32xf32>
    %c0_304 = arith.constant 0 : index
    %c0_305 = arith.constant 0 : index
    %c0_306 = arith.constant 0 : index
    %550 = vector.load %arg29[%c0_304, %c0_305, %c0_306] : memref<2x4x32xf32, #tpu.memory_space<vmem>>, vector<2x4x32xf32>
    tpu.vector_store %arg29[%c0_304, %c0_305, %c0_306], %549 {strides = array<i32>} : memref<2x4x32xf32, #tpu.memory_space<vmem>>, vector<2x4x32xf32>,
    return
  }
  func.func @transform_0(%arg0: i32) -> (i32, i32, i32) {
    %c0_i32 = arith.constant 0 : i32
    %c0_i32_0 = arith.constant 0 : i32
    %c0_i32_1 = arith.constant 0 : i32
    return %arg0, %c0_i32, %c0_i32_0 : i32, i32, i32
  }
  func.func @transform_1(%arg0: i32) -> (i32, i32, i32) {
    %c0_i32 = arith.constant 0 : i32
    %c0_i32_0 = arith.constant 0 : i32
    %c0_i32_1 = arith.constant 0 : i32
    return %arg0, %c0_i32, %c0_i32_0 : i32, i32, i32
  }
  func.func @transform_2(%arg0: i32) -> (i32, i32) {
    %c0_i32 = arith.constant 0 : i32
    %c0_i32_0 = arith.constant 0 : i32
    %c0_i32_1 = arith.constant 0 : i32
    return %c0_i32, %c0_i32_0 : i32, i32
  }
  func.func @transform_3(%arg0: i32) -> (i32, i32) {
    %c0_i32 = arith.constant 0 : i32
    %c0_i32_0 = arith.constant 0 : i32
    %c0_i32_1 = arith.constant 0 : i32
    return %c0_i32, %c0_i32_0 : i32, i32
  }
  func.func @transform_4(%arg0: i32) -> (i32, i32) {
    %c0_i32 = arith.constant 0 : i32
    %c0_i32_0 = arith.constant 0 : i32
    %c0_i32_1 = arith.constant 0 : i32
    return %c0_i32, %c0_i32_0 : i32, i32
  }
  func.func @transform_5(%arg0: i32) -> (i32, i32) {
    %c0_i32 = arith.constant 0 : i32
    %c0_i32_0 = arith.constant 0 : i32
    %c0_i32_1 = arith.constant 0 : i32
    return %c0_i32, %c0_i32_0 : i32, i32
  }
  func.func @transform_6(%arg0: i32) -> (i32, i32, i32) {
    %c0_i32 = arith.constant 0 : i32
    %c0_i32_0 = arith.constant 0 : i32
    %c0_i32_1 = arith.constant 0 : i32
    %c0_i32_2 = arith.constant 0 : i32
    return %c0_i32, %c0_i32_0, %c0_i32_1 : i32, i32, i32
  }
  func.func @transform_7(%arg0: i32) -> (i32, i32, i32) {
    %c0_i32 = arith.constant 0 : i32
    %c0_i32_0 = arith.constant 0 : i32
    %c0_i32_1 = arith.constant 0 : i32
    %c0_i32_2 = arith.constant 0 : i32
    return %c0_i32, %c0_i32_0, %c0_i32_1 : i32, i32, i32
  }
  func.func @transform_8(%arg0: i32) -> (i32, i32, i32) {
    %c0_i32 = arith.constant 0 : i32
    %c0_i32_0 = arith.constant 0 : i32
    %c0_i32_1 = arith.constant 0 : i32
    %c0_i32_2 = arith.constant 0 : i32
    return %c0_i32, %c0_i32_0, %c0_i32_1 : i32, i32, i32
  }
  func.func @transform_9(%arg0: i32) -> (i32, i32, i32) {
    %c0_i32 = arith.constant 0 : i32
    %c0_i32_0 = arith.constant 0 : i32
    %c0_i32_1 = arith.constant 0 : i32
    %c0_i32_2 = arith.constant 0 : i32
    return %c0_i32, %c0_i32_0, %c0_i32_1 : i32, i32, i32
  }
  func.func @transform_10(%arg0: i32) -> (i32, i32, i32) {
    %c0_i32 = arith.constant 0 : i32
    %c0_i32_0 = arith.constant 0 : i32
    %c0_i32_1 = arith.constant 0 : i32
    %c0_i32_2 = arith.constant 0 : i32
    return %c0_i32, %c0_i32_0, %c0_i32_1 : i32, i32, i32
  }
  func.func @transform_11(%arg0: i32) -> (i32, i32, i32) {
    %c0_i32 = arith.constant 0 : i32
    %c0_i32_0 = arith.constant 0 : i32
    %c0_i32_1 = arith.constant 0 : i32
    %c0_i32_2 = arith.constant 0 : i32
    return %c0_i32, %c0_i32_0, %c0_i32_1 : i32, i32, i32
  }
  func.func @transform_12(%arg0: i32) -> (i32, i32, i32) {
    %c0_i32 = arith.constant 0 : i32
    %c0_i32_0 = arith.constant 0 : i32
    %c0_i32_1 = arith.constant 0 : i32
    %c0_i32_2 = arith.constant 0 : i32
    return %c0_i32, %c0_i32_0, %c0_i32_1 : i32, i32, i32
  }
  func.func @transform_13(%arg0: i32) -> (i32, i32, i32) {
    %c0_i32 = arith.constant 0 : i32
    %c0_i32_0 = arith.constant 0 : i32
    %c0_i32_1 = arith.constant 0 : i32
    %c0_i32_2 = arith.constant 0 : i32
    return %c0_i32, %c0_i32_0, %c0_i32_1 : i32, i32, i32
  }
  func.func @transform_14(%arg0: i32) -> (i32, i32) {
    %c0_i32 = arith.constant 0 : i32
    %c0_i32_0 = arith.constant 0 : i32
    %c0_i32_1 = arith.constant 0 : i32
    return %c0_i32, %c0_i32_0 : i32, i32
  }
  func.func @transform_15(%arg0: i32) -> (i32, i32) {
    %c0_i32 = arith.constant 0 : i32
    %c0_i32_0 = arith.constant 0 : i32
    %c0_i32_1 = arith.constant 0 : i32
    return %c0_i32, %c0_i32_0 : i32, i32
  }
  func.func @transform_16(%arg0: i32) -> (i32, i32) {
    %c0_i32 = arith.constant 0 : i32
    %c0_i32_0 = arith.constant 0 : i32
    %c0_i32_1 = arith.constant 0 : i32
    return %c0_i32, %c0_i32_0 : i32, i32
  }
  func.func @transform_17(%arg0: i32) -> (i32, i32, i32) {
    %c0_i32 = arith.constant 0 : i32
    %c0_i32_0 = arith.constant 0 : i32
    %c0_i32_1 = arith.constant 0 : i32
    %c0_i32_2 = arith.constant 0 : i32
    return %c0_i32, %c0_i32_0, %c0_i32_1 : i32, i32, i32
  }
  func.func @transform_18(%arg0: i32) -> (i32, i32, i32) {
    %c0_i32 = arith.constant 0 : i32
    %c0_i32_0 = arith.constant 0 : i32
    %c0_i32_1 = arith.constant 0 : i32
    %c0_i32_2 = arith.constant 0 : i32
    return %c0_i32, %c0_i32_0, %c0_i32_1 : i32, i32, i32
  }
  func.func @transform_19(%arg0: i32) -> (i32, i32, i32) {
    %c0_i32 = arith.constant 0 : i32
    %c0_i32_0 = arith.constant 0 : i32
    %c0_i32_1 = arith.constant 0 : i32
    %c0_i32_2 = arith.constant 0 : i32
    return %c0_i32, %c0_i32_0, %c0_i32_1 : i32, i32, i32
  }
  func.func @transform_20(%arg0: i32) -> (i32, i32, i32) {
    %c0_i32 = arith.constant 0 : i32
    %c0_i32_0 = arith.constant 0 : i32
    %c0_i32_1 = arith.constant 0 : i32
    %c0_i32_2 = arith.constant 0 : i32
    return %c0_i32, %c0_i32_0, %c0_i32_1 : i32, i32, i32
  }
  func.func @transform_21(%arg0: i32) -> (i32, i32, i32) {
    %c0_i32 = arith.constant 0 : i32
    %c0_i32_0 = arith.constant 0 : i32
    %c0_i32_1 = arith.constant 0 : i32
    %c0_i32_2 = arith.constant 0 : i32
    return %c0_i32, %c0_i32_0, %c0_i32_1 : i32, i32, i32
  }
  func.func @transform_22(%arg0: i32) -> (i32, i32, i32) {
    %c0_i32 = arith.constant 0 : i32
    %c0_i32_0 = arith.constant 0 : i32
    %c0_i32_1 = arith.constant 0 : i32
    %c0_i32_2 = arith.constant 0 : i32
    return %c0_i32, %c0_i32_0, %c0_i32_1 : i32, i32, i32
  }
  func.func @transform_23(%arg0: i32) -> (i32, i32, i32) {
    %c0_i32 = arith.constant 0 : i32
    %c0_i32_0 = arith.constant 0 : i32
    %c0_i32_1 = arith.constant 0 : i32
    %c0_i32_2 = arith.constant 0 : i32
    return %c0_i32, %c0_i32_0, %c0_i32_1 : i32, i32, i32
  }
  func.func @transform_24(%arg0: i32) -> (i32, i32, i32) {
    %c0_i32 = arith.constant 0 : i32
    %c0_i32_0 = arith.constant 0 : i32
    %c0_i32_1 = arith.constant 0 : i32
    %c0_i32_2 = arith.constant 0 : i32
    return %c0_i32, %c0_i32_0, %c0_i32_1 : i32, i32, i32
  }
  func.func @transform_25(%arg0: i32) -> (i32, i32) {
    %c0_i32 = arith.constant 0 : i32
    %c0_i32_0 = arith.constant 0 : i32
    %c0_i32_1 = arith.constant 0 : i32
    return %c0_i32, %c0_i32_0 : i32, i32
  }
  func.func @transform_26(%arg0: i32) -> (i32, i32) {
    %c0_i32 = arith.constant 0 : i32
    %c0_i32_0 = arith.constant 0 : i32
    %c0_i32_1 = arith.constant 0 : i32
    return %c0_i32, %c0_i32_0 : i32, i32
  }
  func.func @transform_27(%arg0: i32) -> (i32, i32) {
    %c0_i32 = arith.constant 0 : i32
    %c0_i32_0 = arith.constant 0 : i32
    %c0_i32_1 = arith.constant 0 : i32
    return %c0_i32, %c0_i32_0 : i32, i32
  }
  func.func @transform_28(%arg0: i32) -> (i32, i32, i32) {
    %c0_i32 = arith.constant 0 : i32
    %c0_i32_0 = arith.constant 0 : i32
    %c0_i32_1 = arith.constant 0 : i32
    return %arg0, %c0_i32, %c0_i32_0 : i32, i32, i32
  }
}

</mosaic_0001>

<bundles_post_ra>
// kernel: tpu_custom_call.1
= control target key start
LH: loop header
LB: loop body
LE: loop exit
PB: predicated region body
PF: predicated region fallthrough
CT: control target
= control target key end

     0   :  { %s14498_s0 = inlined_call_operand.vmem [shape: f32[2,16,4], index: 0, kind: input, shape index: {}]   ;;  %s14499_s1 = inlined_call_operand.vmem [shape: f32[2,16,4], index: 1, kind: input, shape index: {}]   ;;  %s14500_s2 = inlined_call_operand.vmem [shape: f32[16,32], index: 2, kind: input, shape index: {}]   ;;  %s14501_s3 = inlined_call_operand.vmem [shape: f32[4,32], index: 3, kind: input, shape index: {}]   ;;  %s14502_s4 = inlined_call_operand.vmem [shape: f32[4,32], index: 4, kind: input, shape index: {}]   ;;  %s14503_s5 = inlined_call_operand.vmem [shape: f32[16,32], index: 5, kind: input, shape index: {}]   ;;  %s14504_s6 = inlined_call_operand.vmem [shape: f32[3,32,32], index: 6, kind: input, shape index: {}]   ;;  %s14505_s7 = inlined_call_operand.vmem [shape: f32[4,32,8], index: 7, kind: input, shape index: {}]   ;;  %s14506_s8 = inlined_call_operand.vmem [shape: f32[4,1,8], index: 8, kind: input, shape index: {}]   ;;  %s14507_s9 = inlined_call_operand.vmem [shape: f32[4,32,8], index: 9, kind: input, shape index: {}]   ;;  %s14508_s10 = inlined_call_operand.vmem [shape: f32[4,1,8], index: 10, kind: input, shape index: {}]   ;;  %s14509_s11 = inlined_call_operand.vmem [shape: f32[4,32,8], index: 11, kind: input, shape index: {}]   ;;  %s14510_s12 = inlined_call_operand.vmem [shape: f32[4,1,8], index: 12, kind: input, shape index: {}]   ;;  %s14511_s13 = inlined_call_operand.vmem [shape: f32[4,8,32], index: 13, kind: input, shape index: {}]   ;;  %s14512_s14 = inlined_call_operand.vmem [shape: f32[32,64], index: 14, kind: input, shape index: {}]   ;;  %s14513_s15 = inlined_call_operand.vmem [shape: f32[1,64], index: 15, kind: input, shape index: {}]   ;;  %s14514_s16 = inlined_call_operand.vmem [shape: f32[64,32], index: 16, kind: input, shape index: {}]   ;;  %s14515_s17 = inlined_call_operand.vmem [shape: f32[3,32,32], index: 17, kind: input, shape index: {}]   ;;  %s14516_s18 = inlined_call_operand.vmem [shape: f32[4,32,8], index: 18, kind: input, shape index: {}]   ;;  %s14517_s19 = inlined_call_operand.vmem [shape: f32[4,1,8], index: 19, kind: input, shape index: {}]   ;;  %s14518_s20 = inlined_call_operand.vmem [shape: f32[4,32,8], index: 20, kind: input, shape index: {}]   ;;  %s14519_s21 = inlined_call_operand.vmem [shape: f32[4,1,8], index: 21, kind: input, shape index: {}]   ;;  %s14520_s22 = inlined_call_operand.vmem [shape: f32[4,32,8], index: 22, kind: input, shape index: {}]   ;;  %s14521_s23 = inlined_call_operand.vmem [shape: f32[4,1,8], index: 23, kind: input, shape index: {}]   ;;  %s14522_s24 = inlined_call_operand.vmem [shape: f32[4,8,32], index: 24, kind: input, shape index: {}]   ;;  %s14523_s25 = inlined_call_operand.vmem [shape: f32[32,64], index: 25, kind: input, shape index: {}]   ;;  %s14524_s26 = inlined_call_operand.vmem [shape: f32[1,64], index: 26, kind: input, shape index: {}]   ;;  %s14525_s27 = inlined_call_operand.vmem [shape: f32[64,32], index: 27, kind: input, shape index: {}]   ;;  %s14526_s28 = inlined_call_operand.hbm [shape: f32[2,4,32], index: 28, kind: output, shape index: {}]  }
   0x1   :  { %14538 = sst [smem:[#allocation5_spill]] %s14498_s0 }
   0x2   :  { %14539 = sst [smem:[#allocation6_spill]] %s14499_s1 }
   0x3   :  { %14540 = sst [smem:[#allocation7_spill]] %s14500_s2 }
   0x4   :  { %14541 = sst [smem:[#allocation8_spill]] %s14501_s3 }
   0x5   :  { %14542 = sst [smem:[#allocation9_spill]] %s14502_s4 }
   0x6   :  { %14543 = sst [smem:[#allocation10_spill]] %s14503_s5 }
   0x7   :  { %14544 = sst [smem:[#allocation11_spill]] %s14504_s6 }
   0x8   :  { %14545 = sst [smem:[#allocation12_spill]] %s14505_s7 }
   0x9   :  { %14546 = sst [smem:[#allocation13_spill]] %s14506_s8 }
   0xa   :  { %14547 = sst [smem:[#allocation14_spill]] %s14507_s9 }
   0xb   :  { %14548 = sst [smem:[#allocation15_spill]] %s14508_s10 }
   0xc   :  { %14549 = sst [smem:[#allocation16_spill]] %s14509_s11 }
   0xd   :  { %14550 = sst [smem:[#allocation17_spill]] %s14510_s12 }
   0xe   :  { %s14551_s9 = sld [smem:[#allocation9_spill]]  ;;  %vm113_vm0 = vcmask 1043456   ;;  %s14552_s6 = sld [smem:[#allocation8_spill]]  ;;  %vm100_vm1 = vcmask 31744  }
   0xf   :  { %s14553_s11 = sld [smem:[#allocation6_spill]]  ;;  %s14554_s7 = sld [smem:[#allocation5_spill]] }
  0x10   :  { %s14555_s0 = sld [smem:[#allocation11_spill]] }
  0x14   :  { %v99_v0 = vld [vmem:[%s14551_s9] sm:$0xf] }
  0x15   :  { %v98_v1 = vld [vmem:[%s14552_s6] sm:$0xf]  ;;  %10817 = vmatprep.subr.msk.mxu1 %vm113_vm0, %v99_v0  ;;  %v95_v4 = vld [vmem:[%s14553_s11 + $0x8] sm:$0xff]  ;;  %v96_v6 = vld [vmem:[%s14553_s11 + $0x10] sm:$0xff] }
  0x16   :  { %v94_v2 = vld [vmem:[%s14553_s11] sm:$0xff]  ;;  %10825 = vmatprep.subr.msk.mxu0 %vm113_vm0, %v98_v1  ;;  %v91_v5 = vld [vmem:[%s14554_s7 + $0x8] sm:$0xff]  ;;  %10818 = vmatpush3.msk.msra.mxu1 %vm113_vm0, %v99_v0  ;;  %v92_v7 = vld [vmem:[%s14554_s7 + $0x10] sm:$0xff] }
  0x17   :  { %v90_v3 = vld [vmem:[%s14554_s7] sm:$0xff]  ;;  %10819 = vmatprep.mubr.msk.f32.mxu1 %vm100_vm1, %v94_v2  ;;  %10826 = vmatpush3.msk.msra.mxu0 %vm113_vm0, %v98_v1  ;;  %v10204_v9 = vld [vmem:[%s14555_s0 + $0x28] sm:$0xff] }
  0x18   :  { %10827 = vmatprep.mubr.msk.f32.mxu0 %vm100_vm1, %v90_v3  ;;  %v10203_v8 = vld [vmem:[%s14555_s0 + $0x20] sm:$0xff]  ;;  %10820 = vmatmul.mubr.msk.f32.vlgmr.msra.gmra.mrb[0].mxu1 %vm100_vm1, %v95_v4 }
  0x19   :  { %10828 = vmatmul.mubr.msk.f32.vlgmr.msra.gmra.mrb[0].mxu0 %vm100_vm1, %v91_v5  ;;  %v11472_v10 = vpack.c.bf16 %v10204_v9, %v10203_v8 }
  0x1a   :  { %33 = vsyncpa [#allocation3], 0  ;;  %10822 = vmatprep.mubr.msk.f32.mxu1 %vm100_vm1, %v96_v6  ;;  %10830 = vmatprep.mubr.msk.f32.mxu0 %vm100_vm1, %v92_v7  ;;  %v97_v11 = vld [vmem:[%s14553_s11 + $0x18] sm:$0xff]  ;;  %v10205_v13 = vld [vmem:[%s14555_s0 + $0x30] sm:$0xff]  ;;  %s14556_s12 = sld [smem:[#allocation10_spill]]  ;;  %vm347_vm2 = vcmask 261120  }
  0x1b   :  { %v93_v12 = vld [vmem:[%s14554_s7 + $0x18] sm:$0xff]  ;;  %11473 = vmatprep.subr.bf16.mxu1 %v11472_v10  ;;  %v338_v16 = vld [vmem:[%s14555_s0] sm:$0xff]  ;;  %v339_v17 = vld [vmem:[%s14555_s0 + $0x8] sm:$0xff]  ;;  %vm316_vm3 = vcmask 1040384   ;;  %vm325_vm4 = vcmask 1046528   ;;  %s14557_s4 = sld [smem:[#allocation12_spill]] }
  0x1c   :  { %11475 = vmatpush3.bf16.msra.mxu1 %v11472_v10  ;;  %v10206_v14 = vld [vmem:[%s14555_s0 + $0x38] sm:$0xff]  ;;  %v11480_v18 = vpack.c.bf16 %v339_v17, %v338_v16  ;;  %v340_v27 = vld [vmem:[%s14555_s0 + $0x10] sm:$0xff]  ;;  %v10215_v42 = vld [vmem:[%s14555_s0 + $0x40] sm:$0xff]  ;;  %s14558_s6 = sld [smem:[#allocation14_spill]]  ;;  %vm929_vm9 = vcmask 1041409   ;;  %vm931_vm10 = vcmask 1042434  }
  0x1d   :  { %10823 = vmatmul.mubr.msk.f32.gmra.mrb[2].mxu1 %vm100_vm1, %v97_v11  ;;  %10831 = vmatmul.mubr.msk.f32.gmra.mrb[2].mxu0 %vm100_vm1, %v93_v12  ;;  %v11476_v15 = vpack.c.bf16 %v10206_v14, %v10205_v13  ;;  %v341_v28 = vld [vmem:[%s14555_s0 + $0x18] sm:$0xff]  ;;  %v10216_v43 = vld [vmem:[%s14555_s0 + $0x48] sm:$0xff]  ;;  %v10217_v55 = vld [vmem:[%s14555_s0 + $0x50] sm:$0xff]  ;;  %vm933_vm11 = vcmask 1043459   ;;  %vm935_vm12 = vcmask 1044484   ;;  %vm937_vm13 = vcmask 1045509  }
  0x1e   :  { %v11484_v38 = vpack.c.bf16 %v341_v28, %v340_v27  ;;  %v11488_v51 = vpack.c.bf16 %v10216_v43, %v10215_v42  ;;  %v10218_v56 = vld [vmem:[%s14555_s0 + $0x58] sm:$0xff]  ;;  %vm939_vm14 = vcmask 1046534   ;;  %vm941_vm15 = vcmask 1047559   ;;  %s14560_s30 = sld [smem:[#allocation16_spill]]  ;;  %s14562_s3 = sld [smem:[#allocation15_spill]] }
  0x1f   :  { %11477 = vmatprep.subr.bf16.mxu1 %v11476_v15  ;;  %v11492_v60 = vpack.c.bf16 %v10218_v56, %v10217_v55  ;;  %s14563_s1 = sld [smem:[#allocation17_spill]] }
  0x20   :  { %11479 = vmatpush3.bf16.msra.mxu1 %v11476_v15  ;;  %v303_v21 = vld [vmem:[%s14556_s12 + $0x8] sm:$0xff]  ;;  %v302_v25 = vld [vmem:[%s14556_s12] sm:$0xff]  ;;  %s14559_s12 = sld [smem:[#allocation7_spill]] }
  0x21   :  { %11481 = vmatprep.subr.bf16.mxu1 %v11480_v18  ;;  %v845_v62 = vld [vmem:[%s14557_s4] sm:$0xff]  ;;  %v846_v63 = vld [vmem:[%s14557_s4 + $0x8] sm:$0xff]  ;;  %v847_v4 = vld [vmem:[%s14557_s4 + $0x10] sm:$0xff] }
  0x22   :  { %v10252_v0 = vld [vmem:[%s14557_s4 + $0x40] sm:$0xff]  ;;  %v11496_v1 = vpack.c.bf16 %v846_v63, %v845_v62  ;;  %v10253_v2 = vld [vmem:[%s14557_s4 + $0x48] sm:$0xff]  ;;  %v848_v5 = vld [vmem:[%s14557_s4 + $0x18] sm:$0xff] }
  0x23   :  { %v11512_v3 = vpack.c.bf16 %v10253_v2, %v10252_v0  ;;  %v10254_v6 = vld [vmem:[%s14557_s4 + $0x50] sm:$0xff]  ;;  %v11500_v7 = vpack.c.bf16 %v848_v5, %v847_v4  ;;  %v10255_v8 = vld [vmem:[%s14557_s4 + $0x58] sm:$0xff]  ;;  %v10246_v10 = vld [vmem:[%s14557_s4 + $0x20] sm:$0xff] }
  0x24   :  { %11497 = vmatprep.subr.bf16.mxu0 %v11496_v1  ;;  %v11516_v9 = vpack.c.bf16 %v10255_v8, %v10254_v6  ;;  %v10247_v11 = vld [vmem:[%s14557_s4 + $0x28] sm:$0xff]  ;;  %v1305_v12 = vld [vmem:[%s14558_s6] sm:$0xff] }
  0x25   :  { %11499 = vmatpush3.bf16.msra.mxu0 %v11496_v1  ;;  %v12194_v13 = vpack.c.bf16 %v10247_v11, %v10246_v10  ;;  %v1306_v14 = vld [vmem:[%s14558_s6 + $0x8] sm:$0xff] }
  0x26   :  { %11501 = vmatprep.subr.bf16.mxu0 %v11500_v7  ;;  %v12199_v15 = vpack.c.bf16 %v1306_v14, %v1305_v12  ;;  %v10223_v16 = vld [vmem:[%s14559_s12] ss:$0 sm:$0xff] }
  0x29   :  { %11503 = vmatpush3.bf16.msra.mxu0 %v11500_v7 }
  0x2a   :  { %11505 = vmatprep.subr.bf16.mxu0 %v12194_v13 }
  0xeb   :  { %v10821_v19 = vpop.f32.mrb[0].mxu1 }
  0xec   :  { %v10829_v20 = vpop.f32.mrb[0].mxu0  ;;  %v183_v23 = vpop.f32.mrb[1].mxu1 }
  0xed   :  { %v289_v22 = vadd.f32 %v10829_v20, %v10821_v19  ;;  %v283_v24 = vpop.f32.mrb[1].mxu0 }
  0xee   :  { %v284_v26 = vadd.f32 %v283_v24, %v183_v23 }
  0xef   :  { %v305_v29 = vadd.f32 %v303_v21, %v289_v22 }
  0xf0   :  { %v304_v30 = vadd.f32 %v302_v25, %v284_v26  ;;  %v10824_v31 = vpop.f32.mrb[2].mxu1  ;;  %v10832_v32 = vpop.f32.mrb[2].mxu0 }
  0xf1   :  { %v310_v33 = vrot.slane %v305_v29, 7  ;;  %v327_v34 = vrot.slane %v305_v29, 1  ;;  %v299_v35 = vadd.f32 %v10832_v32, %v10824_v31  ;;  %v193_v36 = vpop.f32.mrb[3].mxu1  ;;  %v293_v37 = vpop.f32.mrb[3].mxu0 }
  0xf2   :  { %v317_v39 = vrot.slane %v304_v30, 7  ;;  %v326_v40 = vrot.slane %v304_v30, 1  ;;  %v294_v41 = vadd.f32 %v293_v37, %v193_v36  ;;  %10841 = vmatprep.mubr.msk.f32.mxu1 %vm347_vm2, %v304_v30 }
  0xf3   :  { %v307_v44 = vadd.f32 %v303_v21, %v299_v35  ;;  %10842 = vmatmul.mubr.msk.f32.vlgmr.msra.gmra.mrb[4].mxu1 %vm347_vm2, %v305_v29  ;;  %v701_v35 = vlaneseq }
  0xf4   :  { %v306_v45 = vadd.f32 %v302_v25, %v294_v41  ;;  %11483 = vmatpush3.bf16.msra.mxu1 %v11480_v18  ;;  %v323_v46 = vsel %vm316_vm3, %v310_v33, %v317_v39  ;;  %v318_v47 = vsel %vm316_vm3, %v317_v39, %v310_v33  ;;  %v328_v48 = vsel %vm325_vm4, %v326_v40, %v327_v34 }
  0xf5   :  { %v311_v49 = vrot.slane %v307_v44, 7  ;;  %v330_v50 = vrot.slane %v307_v44, 1  ;;  %11485 = vmatprep.subr.bf16.mxu1 %v11484_v38  ;;  %v336_v52 = vsel %vm325_vm4, %v327_v34, %v326_v40  ;;  %v11901_v33 = vmov 1983009808  }
  0xf6   :  { %v319_v53 = vrot.slane %v306_v45, 7  ;;  %v329_v54 = vrot.slane %v306_v45, 1  ;;  %10844 = vmatprep.mubr.msk.f32.mxu1 %vm347_vm2, %v306_v45  ;;  %v699_v34 = vunpack.c.l.s4 %v11901_v33  ;;  %v12206_v41 = vshrl.u32 %v701_v35, 7 }
  0xf7   :  { %10845 = vmatmul.mubr.msk.f32.gmra.mrb[6].mxu1 %vm347_vm2, %v307_v44 }
  0xf8   :  { %11487 = vmatpush3.bf16.msra.mxu1 %v11484_v38  ;;  %10855 = vmatprep.mubr.msk.f32.mxu1 %vm347_vm2, %v323_v46  ;;  %v324_v57 = vsel %vm316_vm3, %v311_v49, %v319_v53  ;;  %v320_v58 = vsel %vm316_vm3, %v319_v53, %v311_v49  ;;  %v331_v59 = vsel %vm325_vm4, %v329_v54, %v330_v50  ;;  %v700_v40 = vunpack.c.0.s8 %v699_v34 }
  0xf9   :  { %11489 = vmatprep.subr.bf16.mxu1 %v11488_v51  ;;  %v337_v61 = vsel %vm325_vm4, %v330_v50, %v329_v54 }
  0xfa   :  { %v12209_v49 = vsub.s32 %v700_v40, %v12206_v41 }
  0xfb   :  { %10856 = vmatmul.mubr.msk.f32.vlgmr.msra.gmra.mrb[4].mxu1 %vm347_vm2, %v318_v47 }
  0xfc   :  { %10858 = vmatprep.mubr.msk.f32.mxu1 %vm347_vm2, %v324_v57  ;;  %11491 = vmatpush3.bf16.msra.mxu1 %v11488_v51 }
  0xfd   :  { %11493 = vmatprep.subr.bf16.mxu1 %v11492_v60 }
  0xff   :  { %10859 = vmatmul.mubr.msk.f32.gmra.mrb[6].mxu1 %vm347_vm2, %v320_v58  ;;  %v12214_v58 = vsub.s32 0, %v12206_v41 }
 0x100   :  { %11495 = vmatpush3.bf16.msra.mxu1 %v11492_v60  ;;  %10869 = vmatprep.mubr.msk.f32.mxu1 %vm347_vm2, %v328_v48 }
 0x101   :  { %11513 = vmatprep.subr.bf16.mxu1 %v11512_v3 }
 0x103   :  { %10870 = vmatmul.mubr.msk.f32.vlgmr.msra.gmra.mrb[4].mxu1 %vm347_vm2, %v336_v52 }
 0x104   :  { %10872 = vmatprep.mubr.msk.f32.mxu1 %vm347_vm2, %v331_v59  ;;  %11515 = vmatpush3.bf16.msra.mxu1 %v11512_v3 }
 0x105   :  { %11517 = vmatprep.subr.bf16.mxu1 %v11516_v9 }
 0x107   :  { %10873 = vmatmul.mubr.msk.f32.gmra.mrb[6].mxu1 %vm347_vm2, %v337_v61 }
 0x108   :  { %11519 = vmatpush3.bf16.msra.mxu1 %v11516_v9 }
 0x109   :  { %11529 = vmatprep.subr.bf16.mxu1 %v12199_v15 }
 0x1d6   :  { %v10871_v17 = vpop.f32.mrb[4].mxu1 }
 0x1d7   :  { %v646_v18 = vadd.f32 %v10871_v17, %v10223_v16  ;;  %v617_v19 = vpop.f32.mrb[5].mxu1 }
 0x1d8   :  { %v645_v20 = vadd.f32 %v10223_v16, %v617_v19 }
 0x1d9   :  { %v654_v21 = vmin.f32 %v646_v18, 0.0  ;;  %vm650_vm5 = vcmp.gt.f32.partialorder %v646_v18, 0.0 }
 0x1da   :  { %v653_v22 = vmin.f32 %v645_v20, 0.0  ;;  %v10874_v23 = vpop.f32.mrb[6].mxu1  ;;  %vm649_vm6 = vcmp.gt.f32.partialorder %v645_v20, 0.0 }
 0x1db   :  { %v659_v24 = vmul.f32 1.442695, %v654_v21  ;;  %v648_v25 = vadd.f32 %v10874_v23, %v10223_v16  ;;  %v627_v26 = vpop.f32.mrb[7].mxu1 }
 0x1dc   :  { %v657_v27 = vmul.f32 1.442695, %v653_v22  ;;  %v647_v28 = vadd.f32 %v10223_v16, %v627_v26 }
 0x1dd   :  { %11781 = vpow2.f32 %v659_v24  ;;  %v656_v29 = vmin.f32 %v648_v25, 0.0  ;;  %vm652_vm7 = vcmp.gt.f32.partialorder %v648_v25, 0.0 }
 0x1de   :  { %11783 = vpow2.f32 %v657_v27  ;;  %v655_v30 = vmin.f32 %v647_v28, 0.0  ;;  %vm651_vm8 = vcmp.gt.f32.partialorder %v647_v28, 0.0 }
 0x1df   :  { %v663_v31 = vmul.f32 1.442695, %v656_v29 }
 0x1e0   :  { %v661_v32 = vmul.f32 1.442695, %v655_v30 }
 0x1e1   :  { %11785 = vpow2.f32 %v663_v31 }
 0x1e2   :  { %11787 = vpow2.f32 %v661_v32 }
 0x1e7   :  { %v11782_v36 = vpop.eup %11781 }
 0x1e8   :  { %v11784_v37 = vpop.eup %11783  ;;  %v10225_v38 = vadd.f32 -1.0, %v11782_v36 }
 0x1e9   :  { %v10224_v39 = vadd.f32 -1.0, %v11784_v37 }
 0x1ea   :  { %v670_v42 = vsel %vm650_vm5, %v646_v18, %v10225_v38  ;;  %vm11903_vm5 = vmmov 0  }
 0x1eb   :  { %v11786_v43 = vpop.eup %11785  ;;  %v678_v44 = vrot.slane %v670_v42, 7  ;;  %v669_v45 = vsel %vm649_vm6, %v645_v20, %v10224_v39  ;;  %vm2015_vm6 = vcmask 64512  }
 0x1ec   :  { %v11788_v46 = vpop.eup %11787  ;;  %v677_v47 = vrot.slane %v669_v45, 7  ;;  %v10227_v48 = vadd.f32 -1.0, %v11786_v43 }
 0x1ed   :  { %v10226_v50 = vadd.f32 -1.0, %v11788_v46 }
 0x1ee   :  { %v679_v51 = vsel %vm316_vm3, %v677_v47, %v678_v44  ;;  %v687_v52 = vsel %vm316_vm3, -inf, %v677_v47  ;;  %v672_v53 = vsel %vm652_vm7, %v648_v25, %v10227_v48  ;;  %vm4764_vm7 = vcmask 523264  }
 0x1ef   :  { %v689_v54 = vmax.f32 %v669_v45, %v687_v52  ;;  %v690_v55 = vmax.f32 %v670_v42, %v679_v51  ;;  %v681_v56 = vrot.slane %v672_v53, 7  ;;  %v671_v57 = vsel %vm651_vm8, %v647_v28, %v10226_v50 }
 0x1f0   :  { %v680_v59 = vrot.slane %v671_v57, 7 }
 0x1f1   :  { %v697_v60 = vcombine.high %v689_v54, %v689_v54  ;;  %v704_v61 = vrot.slane %v689_v54, %v12209_v49  ;;  %v714_v62 = vcombine.high %v690_v55, %v690_v55  ;;  %v721_v63 = vrot.slane %v690_v55, %v12209_v49 }
 0x1f2   :  { %v682_v0 = vsel %vm316_vm3, %v680_v59, %v681_v56  ;;  %v688_v1 = vsel %vm316_vm3, -inf, %v680_v59 }
 0x1f3   :  { %v711_v2 = vrot.slane %v697_v60, %v12209_v49  ;;  %v712_v3 = vcombine.high %v704_v61, %v704_v61  ;;  %v728_v4 = vrot.slane %v714_v62, %v12209_v49  ;;  %v729_v5 = vcombine.high %v721_v63, %v721_v63 }
 0x1f4   :  { %v10228_v6 = vrot.slane %v704_v61, 9  ;;  %v10232_v7 = vrot.slane %v721_v63, 9  ;;  %v691_v8 = vmax.f32 %v671_v57, %v688_v1  ;;  %v692_v9 = vmax.f32 %v672_v53, %v682_v0 }
 0x1f5   :  { %v713_v10 = vcombine.high %v711_v2, %v711_v2  ;;  %v730_v11 = vcombine.high %v728_v4, %v728_v4  ;;  %v10229_v12 = vrot.slane %v712_v3, 9  ;;  %v10230_v14 = vrot.slane %v711_v2, 9 }
 0x1f6   :  { %v10233_v16 = vrot.slane %v729_v5, 9  ;;  %v10234_v17 = vrot.slane %v728_v4, 9  ;;  %v12222_v18 = vmax.f32 %v704_v61, %v10228_v6  ;;  %v12224_v19 = vmax.f32 %v721_v63, %v10232_v7 }
 0x1f7   :  { %v10231_v20 = vrot.slane %v713_v10, 9  ;;  %v10235_v21 = vrot.slane %v730_v11, 9  ;;  %v12226_v22 = vmax.f32 %v712_v3, %v10229_v12  ;;  %v12228_v23 = vmax.f32 %v711_v2, %v10230_v14 }
 0x1f8   :  { %v12230_v24 = vmax.f32 %v729_v5, %v10233_v16  ;;  %v12232_v25 = vmax.f32 %v728_v4, %v10234_v17  ;;  %v868_v26 = vrot.slane %v12222_v18, %v12214_v58  ;;  %v884_v31 = vrot.slane %v12224_v19, %v12214_v58 }
 0x1f9   :  { %v12236_v27 = vmax.f32 %v713_v10, %v10231_v20  ;;  %v12238_v28 = vmax.f32 %v730_v11, %v10235_v21  ;;  %v872_v29 = vrot.slane %v12226_v22, %v12214_v58  ;;  %v876_v30 = vrot.slane %v12228_v23, %v12214_v58  ;;  %v10248_v21 = vld [vmem:[%s14557_s4 + $0x30] sm:$0xff] }
 0x1fa   :  { %v888_v32 = vrot.slane %v12230_v24, %v12214_v58  ;;  %v731_v33 = vcombine.high %v691_v8, %v691_v8  ;;  %v738_v34 = vrot.slane %v691_v8, %v12209_v49  ;;  %v892_v36 = vrot.slane %v12232_v25, %v12214_v58 }
 0x1fb   :  { %v880_v35 = vrot.slane %v12236_v27, %v12214_v58  ;;  %v930_v37 = vsel %vm929_vm9, %v872_v29, %v868_v26  ;;  %v748_v38 = vcombine.high %v692_v9, %v692_v9  ;;  %v755_v43 = vrot.slane %v692_v9, %v12209_v49 }
 0x1fc   :  { %v932_v39 = vsel %vm931_vm10, %v876_v30, %v930_v37  ;;  %v745_v40 = vrot.slane %v731_v33, %v12209_v49  ;;  %v746_v42 = vcombine.high %v738_v34, %v738_v34  ;;  %v896_v44 = vrot.slane %v12238_v28, %v12214_v58  ;;  %v10249_v30 = vld [vmem:[%s14557_s4 + $0x38] sm:$0xff] }
 0x1fd   :  { %v934_v45 = vsel %vm933_vm11, %v880_v35, %v932_v39  ;;  %v762_v46 = vrot.slane %v748_v38, %v12209_v49  ;;  %v10236_v47 = vrot.slane %v738_v34, 9  ;;  %v763_v51 = vcombine.high %v755_v43, %v755_v43 }
 0x1fe   :  { %v936_v48 = vsel %vm935_vm12, %v884_v31, %v934_v45  ;;  %v747_v50 = vcombine.high %v745_v40, %v745_v40  ;;  %v10237_v52 = vrot.slane %v746_v42, 9  ;;  %v10238_v55 = vrot.slane %v745_v40, 9  ;;  %v1307_v31 = vld [vmem:[%s14558_s6 + $0x10] sm:$0xff] }
 0x1ff   :  { %v938_v53 = vsel %vm937_vm13, %v888_v32, %v936_v48  ;;  %v764_v54 = vcombine.high %v762_v46, %v762_v46  ;;  %v10240_v56 = vrot.slane %v755_v43, 9  ;;  %v10241_v60 = vrot.slane %v763_v51, 9  ;;  %v1308_v32 = vld [vmem:[%s14558_s6 + $0x18] sm:$0xff] }
 0x200   :  { %v940_v57 = vsel %vm939_vm14, %v892_v36, %v938_v53  ;;  %v10239_v59 = vrot.slane %v747_v50, 9  ;;  %v10242_v61 = vrot.slane %v762_v46, 9  ;;  %v12267_v0 = vmax.f32 %v738_v34, %v10236_v47  ;;  %v10258_v36 = vld [vmem:[%s14557_s4 + $0x60] sm:$0xff]  ;;  %v10279_v47 = vld [vmem:[%s14558_s6 + $0x58] sm:$0xff] }
 0x201   :  { %v12265_v62 = vsel %vm941_vm15, %v896_v44, %v940_v57  ;;  %v10243_v63 = vrot.slane %v764_v54, 9  ;;  %v12269_v1 = vmax.f32 %v746_v42, %v10237_v52  ;;  %v12271_v2 = vmax.f32 %v745_v40, %v10238_v55  ;;  %v10259_v40 = vld [vmem:[%s14557_s4 + $0x68] sm:$0xff]  ;;  %v10276_v42 = vld [vmem:[%s14558_s6 + $0x40] sm:$0xff]  ;;  %v10272_v57 = vld [vmem:[%s14558_s6 + $0x30] sm:$0xff] }
 0x202   :  { %v12273_v3 = vmax.f32 %v747_v50, %v10239_v59  ;;  %v12275_v4 = vmax.f32 %v755_v43, %v10240_v56  ;;  %10883 = vmatprep.mubr.msk.f32.mxu0 %vm347_vm2, %v12265_v62  ;;  %v12279_v5 = vmax.f32 %v763_v51, %v10241_v60  ;;  %v900_v6 = vrot.slane %v12267_v0, %v12214_v58  ;;  %v10277_v43 = vld [vmem:[%s14558_s6 + $0x48] sm:$0xff]  ;;  %v10270_v51 = vld [vmem:[%s14558_s6 + $0x20] sm:$0xff]  ;;  %v10273_v59 = vld [vmem:[%s14558_s6 + $0x38] sm:$0xff] }
 0x203   :  { %v904_v7 = vrot.slane %v12269_v1, %v12214_v58  ;;  %10905 = vmatprep.mubr.msk.f32.mxu1 %vm347_vm2, %v12265_v62  ;;  %v12287_v8 = vmax.f32 %v762_v46, %v10242_v61  ;;  %v908_v9 = vrot.slane %v12271_v2, %v12214_v58  ;;  %v12293_v11 = vmax.f32 %v764_v54, %v10243_v63  ;;  %v10260_v46 = vld [vmem:[%s14557_s4 + $0x70] sm:$0xff]  ;;  %v10271_v52 = vld [vmem:[%s14558_s6 + $0x28] sm:$0xff]  ;;  %v1660_v53 = vld [vmem:[%s14560_s30] sm:$0xff] }
 0x204   :  { %v912_v10 = vrot.slane %v12273_v3, %v12214_v58  ;;  %v916_v14 = vrot.slane %v12275_v4, %v12214_v58  ;;  %v920_v17 = vrot.slane %v12279_v5, %v12214_v58  ;;  %v11508_v38 = vpack.c.bf16 %v10249_v30, %v10248_v21  ;;  %v1661_v54 = vld [vmem:[%s14560_s30 + $0x8] sm:$0xff]  ;;  %v1662_v60 = vld [vmem:[%s14560_s30 + $0x10] sm:$0xff]  ;;  %v1663_v61 = vld [vmem:[%s14560_s30 + $0x18] sm:$0xff] }
 0x205   :  { %v943_v12 = vsel %vm929_vm9, %v904_v7, %v900_v6  ;;  %v924_v26 = vrot.slane %v12287_v8, %v12214_v58  ;;  %v928_v33 = vrot.slane %v12293_v11, %v12214_v58  ;;  %v11532_v39 = vpack.c.bf16 %v1308_v32, %v1307_v31  ;;  %v10282_v6 = vld [vmem:[%s14558_s6 + $0x60] sm:$0xff]  ;;  %v10283_v7 = vld [vmem:[%s14558_s6 + $0x68] sm:$0xff]  ;;  %v10302_v21 = vld [vmem:[%s14560_s30 + $0x50] sm:$0xff] }
 0x206   :  { %v944_v16 = vsel %vm931_vm10, %v908_v9, %v943_v12  ;;  %v11520_v44 = vpack.c.bf16 %v10259_v40, %v10258_v36  ;;  %v11544_v45 = vpack.c.bf16 %v10277_v43, %v10276_v42  ;;  %v11536_v55 = vpack.c.bf16 %v10271_v52, %v10270_v51  ;;  %v10301_v12 = vld [vmem:[%s14560_s30 + $0x48] sm:$0xff]  ;;  %v10294_v30 = vld [vmem:[%s14560_s30 + $0x20] sm:$0xff]  ;;  %v10308_v42 = vld [vmem:[%s14560_s30 + $0x70] sm:$0xff] }
 0x207   :  { %v945_v20 = vsel %vm933_vm11, %v912_v10, %v944_v16  ;;  %v11560_v56 = vpack.c.bf16 %v1661_v54, %v1660_v53  ;;  %v11540_v63 = vpack.c.bf16 %v10273_v59, %v10272_v57  ;;  %v11564_v9 = vpack.c.bf16 %v1663_v61, %v1662_v60  ;;  %v10300_v10 = vld [vmem:[%s14560_s30 + $0x40] sm:$0xff]  ;;  %v10295_v31 = vld [vmem:[%s14560_s30 + $0x28] sm:$0xff]  ;;  %v10309_v43 = vld [vmem:[%s14560_s30 + $0x78] sm:$0xff] }
 0x208   :  { %v946_v29 = vsel %vm935_vm12, %v916_v14, %v945_v20  ;;  %v11552_v14 = vpack.c.bf16 %v10283_v7, %v10282_v6  ;;  %v11576_v16 = vpack.c.bf16 %v10301_v12, %v10300_v10  ;;  %v10285_v20 = vld [vmem:[%s14558_s6 + $0x78] sm:$0xff]  ;;  %v10288_v52 = vld [vmem:[%s14562_s3] ss:$0 sm:$0xff]  ;;  %v10290_v6 = vld [vmem:[%s14562_s3 + $0x2] ss:$0 sm:$0xff] }
 0x209   :  { %v947_v34 = vsel %vm937_vm13, %v920_v17, %v946_v29  ;;  %v10284_v17 = vld [vmem:[%s14558_s6 + $0x70] sm:$0xff] }
 0x20a   :  { %v948_v35 = vsel %vm939_vm14, %v924_v26, %v947_v34  ;;  %v10303_v26 = vld [vmem:[%s14560_s30 + $0x58] sm:$0xff]  ;;  %v11556_v29 = vpack.c.bf16 %v10285_v20, %v10284_v17  ;;  %v10296_v34 = vld [vmem:[%s14560_s30 + $0x30] sm:$0xff] }
 0x20b   :  { %v12325_v37 = vsel %vm941_vm15, %v928_v33, %v948_v35  ;;  %v11580_v32 = vpack.c.bf16 %v10303_v26, %v10302_v21  ;;  %v11568_v33 = vpack.c.bf16 %v10295_v31, %v10294_v30  ;;  %v10297_v35 = vld [vmem:[%s14560_s30 + $0x38] sm:$0xff]  ;;  %v10289_v21 = vld [vmem:[%s14562_s3 + $0x1] ss:$0 sm:$0xff]  ;;  %v10312_v26 = vld [vmem:[%s14563_s1] ss:$0 sm:$0xff] }
 0x20c   :  { %10884 = vmatmul.mubr.msk.f32.vlgmr.msra.gmra.mrb[4].mxu0 %vm347_vm2, %v12325_v37  ;;  %10906 = vmatmul.mubr.msk.f32.vlgmr.msra.gmra.mrb[8].mxu1 %vm347_vm2, %v12325_v37  ;;  %v11572_v36 = vpack.c.bf16 %v10297_v35, %v10296_v34 }
 0x20d   :  { %11507 = vmatpush3.bf16.msra.mxu0 %v12194_v13  ;;  %11531 = vmatpush3.bf16.msra.mxu1 %v12199_v15  ;;  %v10261_v13 = vld [vmem:[%s14557_s4 + $0x78] sm:$0xff]  ;;  %v10278_v15 = vld [vmem:[%s14558_s6 + $0x50] sm:$0xff]  ;;  %s14561_s6 = sld [smem:[#allocation13_spill]] }
 0x20e   :  { %10894 = vmatprep.mubr.msk.f32.mxu0 %vm347_vm2, %v12265_v62  ;;  %10927 = vmatprep.mubr.msk.f32.mxu1 %vm347_vm2, %v12265_v62  ;;  %v11524_v48 = vpack.c.bf16 %v10261_v13, %v10260_v46  ;;  %v11548_v50 = vpack.c.bf16 %v10279_v47, %v10278_v15 }
 0x20f   :  { %11509 = vmatprep.subr.bf16.mxu0 %v11508_v38  ;;  %11533 = vmatprep.subr.bf16.mxu1 %v11532_v39 }
 0x211   :  { %11511 = vmatpush3.bf16.msra.mxu0 %v11508_v38  ;;  %11535 = vmatpush3.bf16.msra.mxu1 %v11532_v39  ;;  %v10306_v38 = vld [vmem:[%s14560_s30 + $0x60] sm:$0xff]  ;;  %v10307_v39 = vld [vmem:[%s14560_s30 + $0x68] sm:$0xff] }
 0x212   :  { %11521 = vmatprep.subr.bf16.mxu0 %v11520_v44  ;;  %11545 = vmatprep.subr.bf16.mxu1 %v11544_v45  ;;  %v11584_v40 = vpack.c.bf16 %v10307_v39, %v10306_v38  ;;  %v10291_v39 = vld [vmem:[%s14562_s3 + $0x3] ss:$0 sm:$0xff] }
 0x213   :  { %v10265_v51 = vld [vmem:[%s14561_s6 + $0x1] ss:$0 sm:$0xff] }
 0x214   :  { %10895 = vmatmul.mubr.msk.f32.vlgmr.msra.gmra.mrb[6].mxu0 %vm347_vm2, %v12325_v37  ;;  %10928 = vmatmul.mubr.msk.f32.vlgmr.msra.gmra.mrb[10].mxu1 %vm347_vm2, %v12325_v37 }
 0x215   :  { %11523 = vmatpush3.bf16.msra.mxu0 %v11520_v44  ;;  %10916 = vmatprep.mubr.msk.f32.mxu0 %vm347_vm2, %v12265_v62  ;;  %v11588_v44 = vpack.c.bf16 %v10309_v43, %v10308_v42 }
 0x216   :  { %11547 = vmatpush3.bf16.msra.mxu1 %v11544_v45  ;;  %10949 = vmatprep.mubr.msk.f32.mxu1 %vm347_vm2, %v12265_v62  ;;  %v11902_v45 = vmov 0.0  }
 0x217   :  { %11525 = vmatprep.subr.bf16.mxu0 %v11524_v48  ;;  %11549 = vmatprep.subr.bf16.mxu1 %v11548_v50 }
 0x219   :  { %11527 = vmatpush3.bf16.msra.mxu0 %v11524_v48 }
 0x21a   :  { %11551 = vmatpush3.bf16.msra.mxu1 %v11548_v50  ;;  %11537 = vmatprep.subr.bf16.mxu0 %v11536_v55 }
 0x21b   :  { %11561 = vmatprep.subr.bf16.mxu1 %v11560_v56 }
 0x21c   :  { %10917 = vmatmul.mubr.msk.f32.vlgmr.msra.gmra.mrb[8].mxu0 %vm347_vm2, %v12325_v37 }
 0x21d   :  { %10950 = vmatmul.mubr.msk.f32.vlgmr.msra.gmra.mrb[12].mxu1 %vm347_vm2, %v12325_v37  ;;  %11539 = vmatpush3.bf16.msra.mxu0 %v11536_v55 }
 0x21e   :  { %10938 = vmatprep.mubr.msk.f32.mxu0 %vm347_vm2, %v12265_v62  ;;  %11563 = vmatpush3.bf16.msra.mxu1 %v11560_v56 }
 0x21f   :  { %10971 = vmatprep.mubr.msk.f32.mxu1 %vm347_vm2, %v12265_v62  ;;  %11541 = vmatprep.subr.bf16.mxu0 %v11540_v63 }
 0x220   :  { %11565 = vmatprep.subr.bf16.mxu1 %v11564_v9 }
 0x221   :  { %11543 = vmatpush3.bf16.msra.mxu0 %v11540_v63  ;;  %v10267_v63 = vld [vmem:[%s14561_s6 + $0x3] ss:$0 sm:$0xff] }
 0x222   :  { %11567 = vmatpush3.bf16.msra.mxu1 %v11564_v9  ;;  %11553 = vmatprep.subr.bf16.mxu0 %v11552_v14 }
 0x223   :  { %11577 = vmatprep.subr.bf16.mxu1 %v11576_v16 }
 0x224   :  { %10939 = vmatmul.mubr.msk.f32.vlgmr.msra.gmra.mrb[10].mxu0 %vm347_vm2, %v12325_v37 }
 0x225   :  { %10972 = vmatmul.mubr.msk.f32.vlgmr.msra.gmra.mrb[14].mxu1 %vm347_vm2, %v12325_v37  ;;  %11555 = vmatpush3.bf16.msra.mxu0 %v11552_v14 }
 0x226   :  { %10960 = vmatprep.mubr.msk.f32.mxu0 %vm347_vm2, %v12265_v62  ;;  %11579 = vmatpush3.bf16.msra.mxu1 %v11576_v16 }
 0x227   :  { %10993 = vmatprep.mubr.msk.f32.mxu1 %vm347_vm2, %v12265_v62  ;;  %11557 = vmatprep.subr.bf16.mxu0 %v11556_v29 }
 0x228   :  { %11581 = vmatprep.subr.bf16.mxu1 %v11580_v32 }
 0x229   :  { %11559 = vmatpush3.bf16.msra.mxu0 %v11556_v29 }
 0x22a   :  { %11583 = vmatpush3.bf16.msra.mxu1 %v11580_v32  ;;  %11569 = vmatprep.subr.bf16.mxu0 %v11568_v33 }
 0x22b   :  { %11007 = vmatprep.subr.mxu1 %v11902_v45 }
 0x22c   :  { %10961 = vmatmul.mubr.msk.f32.vlgmr.msra.gmra.mrb[12].mxu0 %vm347_vm2, %v12325_v37 }
 0x22d   :  { %10994 = vmatmul.mubr.msk.f32.vlgmr.msra.gmra.mrb[16].mxu1 %vm347_vm2, %v12325_v37  ;;  %11571 = vmatpush3.bf16.msra.mxu0 %v11568_v33 }
 0x22e   :  { %10982 = vmatprep.mubr.msk.f32.mxu0 %vm347_vm2, %v12265_v62  ;;  %11573 = vmatprep.subr.bf16.mxu0 %v11572_v36 }
 0x22f   :  { %11009 = vmatprep.mubr.msk.f32.mxu1 %vm11903_vm5, %v11902_v45 }
 0x231   :  { %11575 = vmatpush3.bf16.msra.mxu0 %v11572_v36 }
 0x232   :  { %11585 = vmatprep.subr.bf16.mxu0 %v11584_v40 }
 0x234   :  { %10983 = vmatmul.mubr.msk.f32.vlgmr.msra.gmra.mrb[14].mxu0 %vm347_vm2, %v12325_v37 }
 0x235   :  { %11587 = vmatpush3.bf16.msra.mxu0 %v11584_v40  ;;  %11004 = vmatprep.mubr.msk.f32.mxu0 %vm347_vm2, %v12265_v62  ;;  %v10264_v62 = vld [vmem:[%s14561_s6] ss:$0 sm:$0xff]  ;;  %v12532_v40 = vld [vmem:[%s14563_s1 + $0x2] ss:$0 sm:$0xff] }
 0x236   :  { %11589 = vmatprep.subr.bf16.mxu0 %v11588_v44 }
 0x239   :  { %11591 = vmatpush3.bf16.msra.mxu0 %v11588_v44 }
 0x23a   :  { %11012 = vmatprep.subr.mxu0 %v11902_v45 }
 0x23c   :  { %11005 = vmatmul.mubr.msk.f32.vlgmr.msra.gmra.mrb[16].mxu0 %vm347_vm2, %v12325_v37  ;;  %v10266_v37 = vld [vmem:[%s14561_s6 + $0x2] ss:$0 sm:$0xff] }
 0x23d   :  { %11014 = vmatprep.mubr.msk.f32.mxu0 %vm11903_vm5, %v11902_v45 }
 0x2df   :  { %v10885_v46 = vpop.f32.mrb[4].mxu0  ;;  %v10907_v13 = vpop.f32.mrb[8].mxu1 }
 0x2e0   :  { %v12478_v15 = vadd.f32 %v10885_v46, %v10264_v62  ;;  %v12480_v47 = vadd.f32 %v10907_v13, %v10266_v37  ;;  %v1020_v48 = vpop.f32.mrb[5].mxu0  ;;  %v1180_v50 = vpop.f32.mrb[9].mxu1 }
 0x2e1   :  { %v1297_v61 = vadd.f32 %v10264_v62, %v1020_v48  ;;  %v1301_v20 = vadd.f32 %v10266_v37, %v1180_v50  ;;  %v10313_v50 = vld [vmem:[%s14563_s1 + $0x1] ss:$0 sm:$0xff] }
 0x2e7   :  { %v10896_v53 = vpop.f32.mrb[6].mxu0  ;;  %v10929_v54 = vpop.f32.mrb[10].mxu1 }
 0x2e8   :  { %v12488_v55 = vadd.f32 %v10896_v53, %v10265_v51  ;;  %v12490_v56 = vadd.f32 %v10929_v54, %v10288_v52  ;;  %v1100_v57 = vpop.f32.mrb[7].mxu0  ;;  %v1375_v59 = vpop.f32.mrb[11].mxu1 }
 0x2e9   :  { %v1652_v60 = vadd.f32 %v10288_v52, %v1375_v59  ;;  %v1299_v38 = vadd.f32 %v10265_v51, %v1100_v57  ;;  %v10315_v57 = vld [vmem:[%s14563_s1 + $0x3] ss:$0 sm:$0xff] }
 0x2eb   :  { %11008 = vmatpush3.xpose.msk.msra.mxu1 %vm2015_vm6, %v1652_v60 }
 0x2ec   :  { %11017 = vmatprep.subr.mxu1 %v11902_v45 }
 0x2ee   :  { %11010 = vmatmul.mubr.msk.f32.vlgmr.msra.gmra.mrb[18].mxu1 %vm2015_vm6, %v1297_v61 }
 0x2ef   :  { %v10918_v7 = vpop.f32.mrb[8].mxu0  ;;  %11019 = vmatprep.mubr.msk.f32.mxu1 %vm11903_vm5, %v11902_v45 }
 0x2f0   :  { %v12503_v9 = vadd.f32 %v10918_v7, %v10267_v63  ;;  %v10951_v10 = vpop.f32.mrb[12].mxu1  ;;  %v1260_v12 = vpop.f32.mrb[9].mxu0 }
 0x2f1   :  { %v12505_v14 = vadd.f32 %v10951_v10, %v10290_v6  ;;  %v1535_v16 = vpop.f32.mrb[13].mxu1  ;;  %v1303_v48 = vadd.f32 %v10267_v63, %v1260_v12 }
 0x2f2   :  { %v1656_v17 = vadd.f32 %v10290_v6, %v1535_v16 }
 0x2f4   :  { %11018 = vmatpush3.xpose.msk.msra.mxu1 %vm2015_vm6, %v1656_v17 }
 0x2f5   :  { %11027 = vmatprep.subr.mxu1 %v11902_v45 }
 0x2f7   :  { %11020 = vmatmul.mubr.msk.f32.vlgmr.msra.gmra.mrb[20].mxu1 %vm2015_vm6, %v1301_v20  ;;  %v10940_v29 = vpop.f32.mrb[10].mxu0 }
 0x2f8   :  { %v12516_v30 = vadd.f32 %v10940_v29, %v10289_v21  ;;  %v10973_v31 = vpop.f32.mrb[14].mxu1  ;;  %v1455_v32 = vpop.f32.mrb[11].mxu0  ;;  %11029 = vmatprep.mubr.msk.f32.mxu1 %vm11903_vm5, %v11902_v45 }
 0x2f9   :  { %v12520_v33 = vadd.f32 %v10973_v31, %v10312_v26  ;;  %v1654_v34 = vadd.f32 %v10289_v21, %v1455_v32  ;;  %v1730_v35 = vpop.f32.mrb[15].mxu1 }
 0x2fa   :  { %v2007_v36 = vadd.f32 %v10312_v26, %v1730_v35 }
 0x2fb   :  { %11013 = vmatpush3.xpose.msk.msra.mxu0 %vm2015_vm6, %v1654_v34 }
 0x2fc   :  { %11028 = vmatpush3.msra.mxu1 %v2007_v36  ;;  %11022 = vmatprep.subr.mxu0 %v11902_v45 }
 0x2fd   :  { %11037 = vmatprep.subr.mxu1 %v11902_v45 }
 0x2fe   :  { %11015 = vmatmul.mubr.msk.f32.vlgmr.msra.gmra.mrb[18].mxu0 %vm2015_vm6, %v1299_v38 }
 0x2ff   :  { %v10962_v42 = vpop.f32.mrb[12].mxu0  ;;  %11024 = vmatprep.mubr.msk.f32.mxu0 %vm11903_vm5, %v11902_v45 }
 0x300   :  { %v12536_v43 = vadd.f32 %v10962_v42, %v10291_v39  ;;  %v10995_v44 = vpop.f32.mrb[16].mxu1  ;;  %v1615_v62 = vpop.f32.mrb[13].mxu0 }
 0x301   :  { %v12539_v37 = vadd.f32 %v10995_v44, %v12532_v40  ;;  %v1658_v46 = vadd.f32 %v10291_v39, %v1615_v62  ;;  %v12541_v13 = vpop.f32.mrb[17].mxu1 }
 0x303   :  { %11023 = vmatpush3.xpose.msk.msra.mxu0 %vm2015_vm6, %v1658_v46 }
 0x304   :  { %11032 = vmatprep.subr.mxu0 %v11902_v45 }
 0x306   :  { %11025 = vmatmul.mubr.msk.f32.vlgmr.msra.gmra.mrb[20].mxu0 %vm2015_vm6, %v1303_v48 }
 0x307   :  { %v10984_v51 = vpop.f32.mrb[14].mxu0  ;;  %11034 = vmatprep.mubr.msk.f32.mxu0 %vm11903_vm5, %v11902_v45 }
 0x308   :  { %v12551_v52 = vadd.f32 %v10984_v51, %v10313_v50  ;;  %v1810_v53 = vpop.f32.mrb[15].mxu0 }
 0x309   :  { %v2009_v54 = vadd.f32 %v10313_v50, %v1810_v53 }
 0x30b   :  { %11033 = vmatpush3.msra.mxu0 %v2009_v54 }
 0x30c   :  { %11042 = vmatprep.subr.mxu0 %v11902_v45 }
 0x30f   :  { %v11006_v59 = vpop.f32.mrb[16].mxu0 }
 0x310   :  { %v12557_v60 = vadd.f32 %v11006_v59, %v10315_v57  ;;  %v1970_v61 = vpop.f32.mrb[17].mxu0 }
 0x3c1   :  { %v2088_v63 = vpop.f32.mrb[18].mxu1 }
 0x3c2   :  { %v11011_v6 = vpop.f32.mrb[19].mxu1  ;;  %v2320_v29 = vsel %vm2015_vm6, %v2088_v63, -inf }
 0x3ca   :  { %v2240_v7 = vpop.f32.mrb[20].mxu1 }
 0x3cb   :  { %v11021_v10 = vpop.f32.mrb[21].mxu1  ;;  %v2326_v53 = vsel %vm2015_vm6, %v2240_v7, -inf }
 0x3d1   :  { %v2164_v12 = vpop.f32.mrb[18].mxu0 }
 0x3d2   :  { %v11016_v16 = vpop.f32.mrb[19].mxu0  ;;  %v2323_v17 = vsel %vm2015_vm6, %v2164_v12, -inf }
 0x3d3   :  { %2324 = vmax.xlane.f32.xlu0 %v2323_v17  ;;  %v2013_v17 = vadd.f32 %v10315_v57, %v1970_v61  ;;  %v2011_v61 = vadd.f32 %v12532_v40, %v12541_v13 }
 0x3d9   :  { %v2316_v20 = vpop.f32.mrb[20].mxu0 }
 0x3da   :  { %v11026_v21 = vpop.f32.mrb[21].mxu0  ;;  %v2329_v26 = vsel %vm2015_vm6, %v2316_v20, -inf }
 0x3db   :  { %2330 = vmax.xlane.f32.xlu0 %v2329_v26 }
 0x3df   :  { %2321 = vmax.xlane.f32.xlu0 %v2320_v29 }
 0x460   :  { %v2325_v31 = vpop.xlane.xlu0 %2324 }
 0x461   :  { %v2333_v32 = vsub.f32 %v2164_v12, %v2325_v31 }
 0x463   :  { %v2338_v34 = vmul.f32 1.442695, %v2333_v32 }
 0x465   :  { %11789 = vpow2.f32 %v2338_v34 }
 0x468   :  { %v2331_v35 = vpop.xlane.xlu0 %2330 }
 0x469   :  { %v2335_v36 = vsub.f32 %v2316_v20, %v2331_v35 }
 0x46b   :  { %v2342_v38 = vmul.f32 1.442695, %v2335_v36 }
 0x46c   :  { %v2322_v39 = vpop.xlane.xlu0 %2321 }
 0x46d   :  { %11791 = vpow2.f32 %v2342_v38  ;;  %v2332_v42 = vsub.f32 %v2088_v63, %v2322_v39 }
 0x46f   :  { %v11790_v44 = vpop.eup %11789  ;;  %v2336_v62 = vmul.f32 1.442695, %v2332_v42 }
 0x470   :  { %v2347_v46 = vsel %vm2015_vm6, %v11790_v44, 0.0 }
 0x471   :  { %11793 = vpow2.f32 %v2336_v62  ;;  %2348 = vadd.xlane.f32.xlu1 %v2347_v46 }
 0x477   :  { %v11792_v48 = vpop.eup %11791 }
 0x478   :  { %v2353_v50 = vsel %vm2015_vm6, %v11792_v48, 0.0 }
 0x479   :  { %2354 = vadd.xlane.f32.xlu1 %v2353_v50 }
 0x47b   :  { %v11794_v51 = vpop.eup %11793 }
 0x47c   :  { %v2344_v54 = vsel %vm2015_vm6, %v11794_v51, 0.0 }
 0x47d   :  { %2327 = vmax.xlane.f32.xlu1 %v2326_v53  ;;  %2345 = vadd.xlane.f32.xlu0 %v2344_v54  ;;  %v12640_v53 = vld [vmem:[%s14511_s13 + $0x10] sm:$0xff] }
 0x4fe   :  { %v2349_v59 = vpop.xlane.xlu1 %2348 }
 0x4ff   :  { %11795 = vrcp.f32 %v2349_v59 }
 0x506   :  { %v2355_v63 = vpop.xlane.xlu1 %2354 }
 0x507   :  { %11797 = vrcp.f32 %v2355_v63 }
 0x509   :  { %v11796_v6 = vpop.eup %11795 }
 0x50a   :  { %v2361_v10 = vmul.f32 %v11796_v6, %v11790_v44  ;;  %v2328_v12 = vpop.xlane.xlu1 %2327  ;;  %v2346_v16 = vpop.xlane.xlu0 %2345 }
 0x50b   :  { %v2334_v20 = vsub.f32 %v2240_v7, %v2328_v12  ;;  %11799 = vrcp.f32 %v2346_v16 }
 0x50c   :  { %11035 = vmatmul.mubr.msk.f32.vlgmr.msra.gmra.mrb[22].mxu0 %vm2015_vm6, %v2361_v10 }
 0x50d   :  { %v2340_v21 = vmul.f32 1.442695, %v2334_v20  ;;  %11043 = vmatpush3.msra.mxu0 %v2013_v17  ;;  %11044 = vmatprep.mubr.msk.f32.mxu0 %vm11903_vm5, %v11902_v45 }
 0x50e   :  { %11067 = vmatprep.subr.mxu0 %v11902_v45 }
 0x50f   :  { %11801 = vpow2.f32 %v2340_v21 }
 0x511   :  { %v11798_v26 = vpop.eup %11797 }
 0x512   :  { %v2363_v29 = vmul.f32 %v11798_v26, %v11792_v48 }
 0x514   :  { %11045 = vmatmul.mubr.msk.f32.vlgmr.msra.gmra.mrb[24].mxu0 %vm2015_vm6, %v2363_v29  ;;  %v12647_v29 = vld [vmem:[%s14511_s13 + $0x18] sm:$0xff] }
 0x515   :  { %v11800_v31 = vpop.eup %11799  ;;  %11068 = vmatpush3.xpose.msk.msra.mxu0 %vm2015_vm6, %v12490_v56  ;;  %11069 = vmatprep.mubr.msk.f32.mxu0 %vm11903_vm5, %v11902_v45 }
 0x516   :  { %v2360_v57 = vmul.f32 %v11800_v31, %v11794_v51  ;;  %11072 = vmatprep.subr.mxu0 %v11902_v45 }
 0x518   :  { %11030 = vmatmul.mubr.msk.f32.vlgmr.msra.gmra.mrb[22].mxu1 %vm2015_vm6, %v2360_v57  ;;  %11070 = vmatmul.mubr.msk.f32.vlgmr.msra.gmra.mrb[26].mxu0 %vm2015_vm6, %v12478_v15 }
 0x519   :  { %v11802_v7 = vpop.eup %11801  ;;  %11038 = vmatpush3.msra.mxu1 %v2011_v61  ;;  %11073 = vmatpush3.xpose.msk.msra.mxu0 %vm2015_vm6, %v12516_v30 }
 0x51a   :  { %11074 = vmatprep.mubr.msk.f32.mxu0 %vm11903_vm5, %v11902_v45  ;;  %11077 = vmatprep.subr.mxu0 %v11902_v45  ;;  %v2350_v56 = vsel %vm2015_vm6, %v11802_v7, 0.0 }
 0x51b   :  { %2351 = vadd.xlane.f32.xlu1 %v2350_v56  ;;  %11039 = vmatprep.mubr.msk.f32.mxu1 %vm11903_vm5, %v11902_v45 }
 0x51c   :  { %11075 = vmatmul.mubr.msk.f32.vlgmr.msra.gmra.mrb[28].mxu0 %vm2015_vm6, %v12488_v55  ;;  %11047 = vmatprep.subr.mxu1 %v11902_v45 }
 0x51d   :  { %11078 = vmatpush3.xpose.msk.msra.mxu0 %vm2015_vm6, %v12505_v14  ;;  %11079 = vmatprep.mubr.msk.f32.mxu0 %vm11903_vm5, %v11902_v45  ;;  %v12613_v14 = vld [vmem:[%s14511_s13 + $0x8] sm:$0xff] }
 0x51e   :  { %11082 = vmatprep.subr.mxu0 %v11902_v45 }
 0x520   :  { %11080 = vmatmul.mubr.msk.f32.vlgmr.msra.gmra.mrb[30].mxu0 %vm2015_vm6, %v12480_v47 }
 0x521   :  { %11083 = vmatpush3.xpose.msk.msra.mxu0 %vm2015_vm6, %v12536_v43  ;;  %11084 = vmatprep.mubr.msk.f32.mxu0 %vm11903_vm5, %v11902_v45 }
 0x522   :  { %11092 = vmatprep.subr.mxu0 %v11902_v45 }
 0x524   :  { %11085 = vmatmul.mubr.msk.f32.vlgmr.msra.gmra.mrb[32].mxu0 %vm2015_vm6, %v12503_v9  ;;  %v12623_v9 = vld [vmem:[%s14511_s13] sm:$0xff] }
 0x525   :  { %11093 = vmatpush3.msra.mxu0 %v12551_v52  ;;  %11094 = vmatprep.mubr.msk.f32.mxu0 %vm11903_vm5, %v11902_v45 }
 0x526   :  { %11102 = vmatprep.subr.mxu0 %v11902_v45 }
 0x5a8   :  { %v2352_v15 = vpop.xlane.xlu1 %2351 }
 0x5a9   :  { %11803 = vrcp.f32 %v2352_v15 }
 0x5b3   :  { %v11804_v47 = vpop.eup %11803 }
 0x5b4   :  { %v2362_v55 = vmul.f32 %v11804_v47, %v11802_v7 }
 0x5b6   :  { %11040 = vmatmul.mubr.msk.f32.vlgmr.msra.gmra.mrb[24].mxu1 %vm2015_vm6, %v2362_v55 }
 0x5b7   :  { %11048 = vmatpush3.msra.mxu1 %v12613_v14  ;;  %11049 = vmatprep.mubr.msk.f32.mxu1 %vm11903_vm5, %v11902_v45 }
 0x5b8   :  { %11052 = vmatprep.subr.mxu1 %v11902_v45 }
 0x5df   :  { %v2506_v30 = vpop.f32.mrb[22].mxu0 }
 0x5e0   :  { %v11036_v40 = vpop.f32.mrb[23].mxu0  ;;  %11050 = vmatmul.mubr.msk.f32.vlgmr.msra.gmra.mrb[26].mxu1 %vm2015_vm6, %v2506_v30 }
 0x5e1   :  { %11053 = vmatpush3.msra.mxu1 %v12623_v9  ;;  %11054 = vmatprep.mubr.msk.f32.mxu1 %vm11903_vm5, %v11902_v45 }
 0x5e2   :  { %11057 = vmatprep.subr.mxu1 %v11902_v45 }
 0x5e7   :  { %v2652_v43 = vpop.f32.mrb[24].mxu0 }
 0x5e8   :  { %v11046_v13 = vpop.f32.mrb[25].mxu0 }
 0x5eb   :  { %v2433_v52 = vpop.f32.mrb[22].mxu1  ;;  %v3029_v32 = vpop.f32.mrb[26].mxu0 }
 0x5ec   :  { %v11031_v34 = vpop.f32.mrb[23].mxu1  ;;  %11055 = vmatmul.mubr.msk.f32.vlgmr.msra.gmra.mrb[26].mxu1 %vm2015_vm6, %v2433_v52  ;;  %v11071_v35 = vpop.f32.mrb[27].mxu0  ;;  %v3261_v36 = vsel %vm2015_vm6, %v3029_v32, -inf }
 0x5ed   :  { %3262 = vmax.xlane.f32.xlu1 %v3261_v36  ;;  %11059 = vmatprep.mubr.msk.f32.mxu1 %vm11903_vm5, %v11902_v45 }
 0x5ee   :  { %11058 = vmatpush3.msra.mxu1 %v12640_v53 }
 0x5ef   :  { %v3105_v38 = vpop.f32.mrb[28].mxu0  ;;  %11062 = vmatprep.subr.mxu1 %v11902_v45 }
 0x5f0   :  { %v11076_v39 = vpop.f32.mrb[29].mxu0  ;;  %v3264_v42 = vsel %vm2015_vm6, %v3105_v38, -inf }
 0x5f1   :  { %3265 = vmax.xlane.f32.xlu0 %v3264_v42 }
 0x5f3   :  { %v3181_v44 = vpop.f32.mrb[30].mxu0 }
 0x5f4   :  { %v11081_v62 = vpop.f32.mrb[31].mxu0  ;;  %v3267_v46 = vsel %vm2015_vm6, %v3181_v44, -inf }
 0x5f5   :  { %3268 = vmax.xlane.f32.xlu0 %v3267_v46 }
 0x5f7   :  { %v3257_v48 = vpop.f32.mrb[32].mxu0 }
 0x5f8   :  { %v11086_v50 = vpop.f32.mrb[33].mxu0  ;;  %v3270_v51 = vsel %vm2015_vm6, %v3257_v48, -inf }
 0x5f9   :  { %3271 = vmax.xlane.f32.xlu1 %v3270_v51 }
 0x67a   :  { %v3263_v54 = vpop.xlane.xlu1 %3262 }
 0x67b   :  { %v3273_v59 = vsub.f32 %v3029_v32, %v3263_v54 }
 0x67d   :  { %v3277_v63 = vmul.f32 1.442695, %v3273_v59 }
 0x67e   :  { %v3266_v6 = vpop.xlane.xlu0 %3265 }
 0x67f   :  { %11805 = vpow2.f32 %v3277_v63  ;;  %v3274_v10 = vsub.f32 %v3105_v38, %v3266_v6 }
 0x681   :  { %v3279_v12 = vmul.f32 1.442695, %v3274_v10 }
 0x682   :  { %v3269_v16 = vpop.xlane.xlu0 %3268 }
 0x683   :  { %11807 = vpow2.f32 %v3279_v12  ;;  %v3275_v17 = vsub.f32 %v3181_v44, %v3269_v16 }
 0x685   :  { %v3281_v20 = vmul.f32 1.442695, %v3275_v17 }
 0x686   :  { %v3272_v21 = vpop.xlane.xlu1 %3271 }
 0x687   :  { %11809 = vpow2.f32 %v3281_v20  ;;  %v3276_v26 = vsub.f32 %v3257_v48, %v3272_v21 }
 0x689   :  { %v11806_v31 = vpop.eup %11805  ;;  %v3283_v57 = vmul.f32 1.442695, %v3276_v26  ;;  %v2579_v61 = vpop.f32.mrb[24].mxu1 }
 0x68a   :  { %v11041_v7 = vpop.f32.mrb[25].mxu1  ;;  %11060 = vmatmul.mubr.msk.f32.vlgmr.msra.gmra.mrb[26].mxu1 %vm2015_vm6, %v2579_v61  ;;  %v3285_v56 = vsel %vm2015_vm6, %v11806_v31, 0.0 }
 0x68b   :  { %11811 = vpow2.f32 %v3283_v57  ;;  %3286 = vadd.xlane.f32.xlu1 %v3285_v56  ;;  %11063 = vmatpush3.msra.mxu1 %v12647_v29 }
 0x68c   :  { %11064 = vmatprep.mubr.msk.f32.mxu1 %vm11903_vm5, %v11902_v45  ;;  %11087 = vmatprep.subr.mxu1 %v11902_v45 }
 0x68d   :  { %v11808_v15 = vpop.eup %11807 }
 0x68e   :  { %v3288_v47 = vsel %vm2015_vm6, %v11808_v15, 0.0 }
 0x68f   :  { %3289 = vadd.xlane.f32.xlu0 %v3288_v47 }
 0x691   :  { %v11810_v55 = vpop.eup %11809 }
 0x692   :  { %11065 = vmatmul.mubr.msk.f32.vlgmr.msra.gmra.mrb[26].mxu1 %vm2015_vm6, %v2652_v43  ;;  %v3291_v30 = vsel %vm2015_vm6, %v11810_v55, 0.0 }
 0x693   :  { %11088 = vmatpush3.msra.mxu1 %v12520_v33  ;;  %3292 = vadd.xlane.f32.xlu0 %v3291_v30 }
 0x694   :  { %11089 = vmatprep.mubr.msk.f32.mxu1 %vm11903_vm5, %v11902_v45  ;;  %11097 = vmatprep.subr.mxu1 %v11902_v45 }
 0x695   :  { %v11812_v40 = vpop.eup %11811 }
 0x696   :  { %v3294_v13 = vsel %vm2015_vm6, %v11812_v40, 0.0 }
 0x697   :  { %3295 = vadd.xlane.f32.xlu1 %v3294_v13 }
 0x718   :  { %v3287_v52 = vpop.xlane.xlu1 %3286 }
 0x719   :  { %11813 = vrcp.f32 %v3287_v52 }
 0x71c   :  { %v3290_v32 = vpop.xlane.xlu0 %3289 }
 0x71d   :  { %11815 = vrcp.f32 %v3290_v32 }
 0x720   :  { %v3293_v34 = vpop.xlane.xlu0 %3292 }
 0x721   :  { %11817 = vrcp.f32 %v3293_v34 }
 0x723   :  { %v11814_v43 = vpop.eup %11813 }
 0x724   :  { %v3301_v35 = vmul.f32 %v11814_v43, %v11806_v31  ;;  %v3296_v36 = vpop.xlane.xlu1 %3295 }
 0x725   :  { %11819 = vrcp.f32 %v3296_v36 }
 0x726   :  { %11090 = vmatmul.mubr.msk.f32.vlgmr.msra.gmra.mrb[28].mxu1 %vm2015_vm6, %v3301_v35 }
 0x727   :  { %v11816_v33 = vpop.eup %11815  ;;  %11098 = vmatpush3.msra.mxu1 %v12539_v37  ;;  %11099 = vmatprep.mubr.msk.f32.mxu1 %vm11903_vm5, %v11902_v45 }
 0x728   :  { %v3302_v38 = vmul.f32 %v11816_v33, %v11808_v15  ;;  %11107 = vmatprep.subr.mxu1 %v11902_v45 }
 0x72a   :  { %11095 = vmatmul.mubr.msk.f32.vlgmr.msra.gmra.mrb[34].mxu0 %vm2015_vm6, %v3302_v38 }
 0x72b   :  { %v11818_v39 = vpop.eup %11817  ;;  %11103 = vmatpush3.msra.mxu0 %v12557_v60  ;;  %11104 = vmatprep.mubr.msk.f32.mxu0 %vm11903_vm5, %v11902_v45  ;;  %v10354_v60 = vld [vmem:[%s14559_s12 + $0x1] ss:$0 sm:$0xff] }
 0x72c   :  { %v3303_v42 = vmul.f32 %v11818_v39, %v11810_v55  ;;  %v3977_v62 = vcombine.high %v10354_v60, %v10354_v60  ;;  %v12682_v46 = vrot.slane %v10354_v60, %v12209_v49 }
 0x72e   :  { %11100 = vmatmul.mubr.msk.f32.vlgmr.msra.gmra.mrb[30].mxu1 %vm2015_vm6, %v3303_v42  ;;  %v12685_v50 = vrot.slane %v3977_v62, %v12209_v49  ;;  %v3994_v16 = vrot.slane %v12682_v46, 1 }
 0x72f   :  { %v11820_v44 = vpop.eup %11819  ;;  %11108 = vmatpush3.msra.mxu1 %v12613_v14  ;;  %11109 = vmatprep.mubr.msk.f32.mxu1 %vm11903_vm5, %v11902_v45  ;;  %v12689_v14 = vcombine.high %v12682_v46, %v12682_v46 }
 0x730   :  { %v3304_v37 = vmul.f32 %v11820_v44, %v11812_v40  ;;  %11112 = vmatprep.subr.mxu1 %v11902_v45  ;;  %v12698_v20 = vcombine.high %v12685_v50, %v12685_v50  ;;  %v3996_v56 = vrot.slane %v12685_v50, 1 }
 0x731   :  { %v3995_v17 = vrot.slane %v12689_v14, 1 }
 0x732   :  { %11105 = vmatmul.mubr.msk.f32.vlgmr.msra.gmra.mrb[36].mxu0 %vm2015_vm6, %v3304_v37 }
 0x765   :  { %v2952_v48 = vpop.f32.mrb[26].mxu1 }
 0x766   :  { %v3897_v51 = vcombine.high %v2952_v48, %v2952_v48  ;;  %v3904_v54 = vrot.slane %v2952_v48, %v12209_v49  ;;  %v11066_v59 = vpop.f32.mrb[27].mxu1 }
 0x768   :  { %v3911_v63 = vrot.slane %v3897_v51, %v12209_v49  ;;  %v3912_v6 = vcombine.high %v3904_v54, %v3904_v54  ;;  %v3931_v10 = vrot.slane %v3904_v54, 1  ;;  %v3955_v12 = vadd.f32 %v3904_v54, %v12222_v18 }
 0x76a   :  { %v3913_v21 = vcombine.high %v3911_v63, %v3911_v63  ;;  %v3932_v26 = vrot.slane %v3912_v6, 1  ;;  %v3933_v31 = vrot.slane %v3911_v63, 1  ;;  %v3956_v57 = vadd.f32 %v3931_v10, %v12226_v22 }
 0x76b   :  { %v3957_v61 = vadd.f32 %v3912_v6, %v12228_v23  ;;  %v3959_v7 = vadd.f32 %v3911_v63, %v12224_v19  ;;  %v12705_v18 = vadd.f32 %v12682_v46, %v3955_v12  ;;  %v3997_v19 = vrot.slane %v12698_v20, 1 }
 0x76c   :  { %v3934_v15 = vrot.slane %v3913_v21, 1  ;;  %v3958_v47 = vadd.f32 %v3932_v26, %v12236_v27  ;;  %v3960_v55 = vadd.f32 %v3933_v31, %v12230_v24  ;;  %v3961_v30 = vadd.f32 %v3913_v21, %v12232_v25 }
 0x76d   :  { %v12712_v40 = vadd.f32 %v3994_v16, %v3956_v57  ;;  %v12715_v22 = vadd.f32 %v12689_v14, %v3957_v61  ;;  %v12723_v13 = vadd.f32 %v12685_v50, %v3959_v7  ;;  %v4043_v27 = vrot.slane %v12705_v18, %v12214_v58 }
 0x76e   :  { %v12720_v23 = vadd.f32 %v3995_v17, %v3958_v47  ;;  %v3962_v24 = vadd.f32 %v3934_v15, %v12238_v28  ;;  %v12728_v25 = vadd.f32 %v3996_v56, %v3960_v55  ;;  %v12739_v43 = vadd.f32 %v12698_v20, %v3961_v30 }
 0x76f   :  { %v4047_v52 = vrot.slane %v12712_v40, %v12214_v58  ;;  %v4051_v32 = vrot.slane %v12715_v22, %v12214_v58  ;;  %v4059_v36 = vrot.slane %v12723_v13, %v12214_v58  ;;  %v11904_v6 = vmov 269488144  }
 0x770   :  { %v4055_v34 = vrot.slane %v12720_v23, %v12214_v58  ;;  %v12744_v35 = vadd.f32 %v3997_v19, %v3962_v24  ;;  %v4063_v38 = vrot.slane %v12728_v25, %v12214_v58  ;;  %v4067_v42 = vrot.slane %v12739_v43, %v12214_v58 }
 0x771   :  { %v4104_v28 = vsel %vm929_vm9, %v4047_v52, %v4043_v27  ;;  %v4132_v10 = vunpack.c.l.s4 %v11904_v6  ;;  %v11905_v12 = vmov 842150450   ;;  %v11906_v26 = vmov 1414812756  }
 0x772   :  { %v4105_v33 = vsel %vm931_vm10, %v4051_v32, %v4104_v28  ;;  %v4071_v37 = vrot.slane %v12744_v35, %v12214_v58  ;;  %v4139_v21 = vunpack.c.l.s4 %v11905_v12  ;;  %v4146_v31 = vunpack.c.l.s4 %v11906_v26 }
 0x773   :  { %v4106_v39 = vsel %vm933_vm11, %v4055_v34, %v4105_v33  ;;  %v11907_v57 = vmov 1987475062   ;;  %v4133_v47 = vunpack.c.0.s8 %v4132_v10 }
 0x774   :  { %v4107_v44 = vsel %vm935_vm12, %v4059_v36, %v4106_v39  ;;  %v4153_v61 = vunpack.c.l.s4 %v11907_v57  ;;  %v4140_v55 = vunpack.c.0.s8 %v4139_v21  ;;  %v4147_v30 = vunpack.c.0.s8 %v4146_v31 }
 0x775   :  { %v4108_v60 = vsel %vm937_vm13, %v4063_v38, %v4107_v44  ;;  %v12767_v52 = vsub.s32 %v4133_v47, %v12206_v41 }
 0x776   :  { %v4109_v62 = vsel %vm939_vm14, %v4067_v42, %v4108_v60  ;;  %v4154_v24 = vunpack.c.0.s8 %v4153_v61  ;;  %v12770_v32 = vsub.s32 %v4140_v55, %v12206_v41  ;;  %v12773_v34 = vsub.s32 %v4147_v30, %v12206_v41 }
 0x777   :  { %v4110_v48 = vsel %vm941_vm15, %v4071_v37, %v4109_v62 }
 0x778   :  { %v4120_v51 = vsel %vm347_vm2, %v4110_v48, 0.0 }
 0x779   :  { %4121 = vadd.xlane.f32.xlu0 %v4120_v51 }
 0x7f9   :  { %v3374_v54 = vpop.f32.mrb[28].mxu1 }
 0x7fa   :  { %v11091_v59 = vpop.f32.mrb[29].mxu1 }
 0x7fd   :  { %v3447_v63 = vpop.f32.mrb[34].mxu0 }
 0x7fe   :  { %v11096_v7 = vpop.f32.mrb[35].mxu0  ;;  %11110 = vmatmul.mubr.msk.f32.vlgmr.msra.gmra.mrb[32].mxu1 %vm2015_vm6, %v3447_v63 }
 0x7ff   :  { %11113 = vmatpush3.msra.mxu1 %v12623_v9  ;;  %11114 = vmatprep.mubr.msk.f32.mxu1 %vm11903_vm5, %v11902_v45  ;;  %v12776_v9 = vsub.s32 %v4154_v24, %v12206_v41 }
 0x800   :  { %11117 = vmatprep.subr.mxu1 %v11902_v45 }
 0x801   :  { %v3520_v15 = vpop.f32.mrb[30].mxu1 }
 0x802   :  { %v11101_v27 = vpop.f32.mrb[31].mxu1 }
 0x805   :  { %v3593_v28 = vpop.f32.mrb[36].mxu0 }
 0x806   :  { %v4122_v36 = vpop.xlane.xlu0 %4121  ;;  %v11106_v33 = vpop.f32.mrb[37].mxu0  ;;  %11115 = vmatmul.mubr.msk.f32.vlgmr.msra.gmra.mrb[32].mxu1 %vm2015_vm6, %v3374_v54 }
 0x807   :  { %v4127_v38 = vmul.f32 0.03125, %v4122_v36  ;;  %11118 = vmatpush3.msra.mxu1 %v12640_v53  ;;  %11119 = vmatprep.mubr.msk.f32.mxu1 %vm11903_vm5, %v11902_v45 }
 0x808   :  { %11122 = vmatprep.subr.mxu1 %v11902_v45 }
 0x809   :  { %v4137_v39 = vrot.slane %v4127_v38, %v12767_v52  ;;  %v4144_v42 = vrot.slane %v4127_v38, %v12770_v32  ;;  %v4151_v41 = vrot.slane %v4127_v38, %v12773_v34  ;;  %v4158_v44 = vrot.slane %v4127_v38, %v12776_v9 }
 0x80b   :  { %v4187_v37 = vrot.slane %v4137_v39, 1  ;;  %v4188_v60 = vrot.slane %v4144_v42, 1  ;;  %v4189_v62 = vrot.slane %v4151_v41, 1  ;;  %v4190_v48 = vrot.slane %v4158_v44, 1 }
 0x80c   :  { %v12788_v51 = vsub.f32 %v12705_v18, %v4137_v39  ;;  %v12791_v53 = vsub.f32 %v12715_v22, %v4144_v42  ;;  %v12794_v54 = vsub.f32 %v12723_v13, %v4151_v41  ;;  %v12806_v10 = vsub.f32 %v12739_v43, %v4158_v44 }
 0x80d   :  { %v12797_v59 = vsub.f32 %v12712_v40, %v4187_v37  ;;  %v12800_v63 = vsub.f32 %v12720_v23, %v4188_v60  ;;  %v12803_v6 = vsub.f32 %v12728_v25, %v4189_v62  ;;  %v4218_v13 = vsub.f32 %v12744_v35, %v4190_v48  ;;  %v10356_v37 = vld [vmem:[%s14559_s12 + $0x3] ss:$0 sm:$0xff] }
 0x80e   :  { %v4227_v18 = vmul.f32 %v12788_v51, %v12788_v51  ;;  %v4229_v22 = vmul.f32 %v12791_v53, %v12791_v53  ;;  %11120 = vmatmul.mubr.msk.f32.vlgmr.msra.gmra.mrb[32].mxu1 %vm2015_vm6, %v3520_v15  ;;  %v4231_v25 = vmul.f32 %v12794_v54, %v12794_v54  ;;  %v4504_v48 = vcombine.high %v10356_v37, %v10356_v37 }
 0x80f   :  { %v4228_v40 = vmul.f32 %v12797_v59, %v12797_v59  ;;  %v4230_v23 = vmul.f32 %v12800_v63, %v12800_v63  ;;  %11123 = vmatpush3.msra.mxu1 %v12647_v29  ;;  %11124 = vmatprep.mubr.msk.f32.mxu1 %vm11903_vm5, %v11902_v45  ;;  %v4232_v21 = vmul.f32 %v12803_v6, %v12803_v6 }
 0x810   :  { %v4262_v43 = vrot.slane %v4227_v18, %v12214_v58  ;;  %v4270_v26 = vrot.slane %v4229_v22, %v12214_v58  ;;  %v4233_v29 = vmul.f32 %v12806_v10, %v12806_v10  ;;  %v4234_v31 = vmul.f32 %v4218_v13, %v4218_v13 }
 0x811   :  { %v4266_v12 = vrot.slane %v4228_v40, %v12214_v58  ;;  %v4274_v57 = vrot.slane %v4230_v23, %v12214_v58  ;;  %v4278_v61 = vrot.slane %v4231_v25, %v12214_v58  ;;  %v4282_v15 = vrot.slane %v4232_v21, %v12214_v58 }
 0x812   :  { %v4286_v55 = vrot.slane %v4233_v29, %v12214_v58  ;;  %v4290_v24 = vrot.slane %v4234_v31, %v12214_v58  ;;  %v12857_v18 = vrot.slane %v10356_v37, %v12209_v49  ;;  %v12868_v23 = vrot.slane %v4504_v48, %v12209_v49 }
 0x813   :  { %v4323_v35 = vsel %vm929_vm9, %v4266_v12, %v4262_v43 }
 0x814   :  { %v4324_v7 = vsel %vm931_vm10, %v4270_v26, %v4323_v35  ;;  %v12872_v25 = vcombine.high %v12857_v18, %v12857_v18 }
 0x815   :  { %v4325_v47 = vsel %vm933_vm11, %v4274_v57, %v4324_v7  ;;  %v12884_v7 = vcombine.high %v12868_v23, %v12868_v23 }
 0x816   :  { %11125 = vmatmul.mubr.msk.f32.vlgmr.msra.gmra.mrb[32].mxu1 %vm2015_vm6, %v3593_v28  ;;  %v4326_v30 = vsel %vm935_vm12, %v4278_v61, %v4325_v47  ;;  %v10355_v28 = vld [vmem:[%s14559_s12 + $0x2] ss:$0 sm:$0xff]  ;;  %v4522_v47 = vrot.slane %v12872_v25, 1 }
 0x817   :  { %v4327_v27 = vsel %vm937_vm13, %v4282_v15, %v4326_v30  ;;  %v4454_v44 = vcombine.high %v10355_v28, %v10355_v28  ;;  %v12851_v60 = vrot.slane %v10355_v28, %v12209_v49  ;;  %v4521_v15 = vrot.slane %v12857_v18, 1 }
 0x818   :  { %v4328_v36 = vsel %vm939_vm14, %v4286_v55, %v4327_v27 }
 0x819   :  { %v4329_v33 = vsel %vm941_vm15, %v4290_v24, %v4328_v36  ;;  %v12854_v62 = vrot.slane %v4454_v44, %v12209_v49  ;;  %v12861_v22 = vcombine.high %v12851_v60, %v12851_v60  ;;  %v4471_v12 = vrot.slane %v12851_v60, 1 }
 0x81a   :  { %v4339_v38 = vsel %vm347_vm2, %v4329_v33, 0.0 }
 0x81b   :  { %4340 = vadd.xlane.f32.xlu0 %v4339_v38  ;;  %v12865_v40 = vcombine.high %v12854_v62, %v12854_v62  ;;  %v4472_v21 = vrot.slane %v12861_v22, 1  ;;  %v4473_v26 = vrot.slane %v12854_v62, 1 }
 0x81d   :  { %v4474_v61 = vrot.slane %v12865_v40, 1 }
 0x8a8   :  { %v4341_v39 = vpop.xlane.xlu0 %4340 }
 0x8a9   :  { %v4345_v42 = vmul.f32 0.03125, %v4341_v39 }
 0x8ab   :  { %v4347_v41 = vadd.f32 1e-05, %v4345_v42 }
 0x8ad   :  { %11821 = vrsqrt.f32 %v4347_v41 }
 0x8b7   :  { %v11822_v43 = vpop.eup %11821 }
 0x8b8   :  { %v4359_v29 = vrot.slane %v11822_v43, %v12767_v52  ;;  %v4366_v31 = vrot.slane %v11822_v43, %v12770_v32  ;;  %v4373_v57 = vrot.slane %v11822_v43, %v12773_v34  ;;  %v4380_v35 = vrot.slane %v11822_v43, %v12776_v9 }
 0x8ba   :  { %v4409_v55 = vrot.slane %v4359_v29, 1  ;;  %v4410_v30 = vrot.slane %v4366_v31, 1  ;;  %v4411_v24 = vrot.slane %v4373_v57, 1  ;;  %v4412_v27 = vrot.slane %v4380_v35, 1 }
 0x8bb   :  { %v4433_v36 = vmul.f32 %v4359_v29, %v12788_v51  ;;  %v4435_v33 = vmul.f32 %v4366_v31, %v12791_v53  ;;  %v4437_v38 = vmul.f32 %v4373_v57, %v12794_v54  ;;  %v4439_v39 = vmul.f32 %v4380_v35, %v12806_v10 }
 0x8bc   :  { %v4434_v42 = vmul.f32 %v4409_v55, %v12797_v59  ;;  %v4436_v28 = vmul.f32 %v4410_v30, %v12800_v63  ;;  %v4438_v41 = vmul.f32 %v4411_v24, %v12803_v6  ;;  %v4440_v44 = vmul.f32 %v4412_v27, %v4218_v13 }
 0x8bd   :  { %v4483_v37 = vmul.f32 %v12851_v60, %v4433_v36  ;;  %v4485_v48 = vmul.f32 %v12861_v22, %v4435_v33  ;;  %v4487_v43 = vmul.f32 %v12854_v62, %v4437_v38  ;;  %v4523_v59 = vrot.slane %v12868_v23, 1 }
 0x8be   :  { %v4484_v51 = vmul.f32 %v4471_v12, %v4434_v42  ;;  %v4486_v53 = vmul.f32 %v4472_v21, %v4436_v28  ;;  %v4488_v54 = vmul.f32 %v4473_v26, %v4438_v41  ;;  %v4489_v63 = vmul.f32 %v12865_v40, %v4439_v39 }
 0x8bf   :  { %v12907_v6 = vadd.f32 %v12857_v18, %v4483_v37  ;;  %v12910_v10 = vadd.f32 %v12872_v25, %v4485_v48  ;;  %v4490_v13 = vmul.f32 %v4474_v61, %v4440_v44  ;;  %v4524_v29 = vrot.slane %v12884_v7, 1 }
 0x8c0   :  { %v12917_v31 = vadd.f32 %v4521_v15, %v4484_v51  ;;  %v12921_v57 = vadd.f32 %v4522_v47, %v4486_v53  ;;  %v12924_v35 = vadd.f32 %v12868_v23, %v4487_v43  ;;  %v12928_v55 = vadd.f32 %v4523_v59, %v4488_v54 }
 0x8c1   :  { %v4579_v30 = vrot.slane %v12907_v6, %v12214_v58  ;;  %v12935_v27 = vadd.f32 %v12884_v7, %v4489_v63  ;;  %v4587_v36 = vrot.slane %v12910_v10, %v12214_v58  ;;  %v12941_v33 = vadd.f32 %v4524_v29, %v4490_v13 }
 0x8c2   :  { %v4583_v24 = vrot.slane %v12917_v31, %v12214_v58  ;;  %v4591_v38 = vrot.slane %v12921_v57, %v12214_v58  ;;  %v4595_v42 = vrot.slane %v12924_v35, %v12214_v58  ;;  %v4599_v41 = vrot.slane %v12928_v55, %v12214_v58 }
 0x8c3   :  { %v4603_v37 = vrot.slane %v12935_v27, %v12214_v58  ;;  %v4607_v43 = vrot.slane %v12941_v33, %v12214_v58 }
 0x8c4   :  { %v4640_v39 = vsel %vm929_vm9, %v4583_v24, %v4579_v30 }
 0x8c5   :  { %v4641_v28 = vsel %vm931_vm10, %v4587_v36, %v4640_v39 }
 0x8c6   :  { %v4642_v44 = vsel %vm933_vm11, %v4591_v38, %v4641_v28 }
 0x8c7   :  { %v4643_v48 = vsel %vm935_vm12, %v4595_v42, %v4642_v44 }
 0x8c8   :  { %v4644_v51 = vsel %vm937_vm13, %v4599_v41, %v4643_v48 }
 0x8c9   :  { %v4645_v53 = vsel %vm939_vm14, %v4603_v37, %v4644_v51 }
 0x8ca   :  { %v4646_v54 = vsel %vm941_vm15, %v4607_v43, %v4645_v53 }
 0x8cb   :  { %11135 = vmatprep.mubr.msk.f32.mxu0 %vm347_vm2, %v4646_v54 }
 0x8e9   :  { %v3890_v63 = vpop.f32.mrb[32].mxu1 }
 0x8ea   :  { %v3914_v13 = vcombine.high %v3890_v63, %v3890_v63  ;;  %v3921_v30 = vrot.slane %v3890_v63, %v12209_v49  ;;  %v11126_v24 = vpop.f32.mrb[33].mxu1 }
 0x8ec   :  { %v3928_v36 = vrot.slane %v3914_v13, %v12209_v49  ;;  %v3929_v38 = vcombine.high %v3921_v30, %v3921_v30  ;;  %v3935_v39 = vrot.slane %v3921_v30, 1  ;;  %v3963_v42 = vadd.f32 %v3921_v30, %v12267_v0 }
 0x8ee   :  { %v3930_v28 = vcombine.high %v3928_v36, %v3928_v36  ;;  %v3936_v44 = vrot.slane %v3929_v38, 1  ;;  %v3937_v41 = vrot.slane %v3928_v36, 1  ;;  %v3964_v37 = vadd.f32 %v3935_v39, %v12269_v1 }
 0x8ef   :  { %v3965_v48 = vadd.f32 %v3929_v38, %v12271_v2  ;;  %v3967_v43 = vadd.f32 %v3928_v36, %v12275_v4  ;;  %v4014_v51 = vadd.f32 %v12682_v46, %v3963_v42 }
 0x8f0   :  { %v3938_v53 = vrot.slane %v3930_v28, 1  ;;  %v3966_v54 = vadd.f32 %v3936_v44, %v12273_v3  ;;  %v3968_v63 = vadd.f32 %v3937_v41, %v12279_v5  ;;  %v3969_v13 = vadd.f32 %v3930_v28, %v12287_v8 }
 0x8f1   :  { %v4015_v0 = vadd.f32 %v3994_v16, %v3964_v37  ;;  %v4016_v30 = vadd.f32 %v12689_v14, %v3965_v48  ;;  %v4018_v2 = vadd.f32 %v12685_v50, %v3967_v43  ;;  %v4075_v3 = vrot.slane %v4014_v51, %v12214_v58 }
 0x8f2   :  { %v4017_v1 = vadd.f32 %v3995_v17, %v3966_v54  ;;  %v3970_v4 = vadd.f32 %v3938_v53, %v12293_v11  ;;  %v4019_v24 = vadd.f32 %v3996_v56, %v3968_v63  ;;  %v4020_v16 = vadd.f32 %v12698_v20, %v3969_v13 }
 0x8f3   :  { %v4079_v5 = vrot.slane %v4015_v0, %v12214_v58  ;;  %v4083_v8 = vrot.slane %v4016_v30, %v12214_v58  ;;  %v4091_v11 = vrot.slane %v4018_v2, %v12214_v58 }
 0x8f4   :  { %v4087_v46 = vrot.slane %v4017_v1, %v12214_v58  ;;  %v4021_v17 = vadd.f32 %v3997_v19, %v3970_v4  ;;  %v4095_v56 = vrot.slane %v4019_v24, %v12214_v58  ;;  %v4099_v38 = vrot.slane %v4020_v16, %v12214_v58 }
 0x8f5   :  { %v4111_v14 = vsel %vm929_vm9, %v4079_v5, %v4075_v3 }
 0x8f6   :  { %v4112_v50 = vsel %vm931_vm10, %v4083_v8, %v4111_v14  ;;  %v4103_v42 = vrot.slane %v4021_v17, %v12214_v58 }
 0x8f7   :  { %v4113_v36 = vsel %vm933_vm11, %v4087_v46, %v4112_v50 }
 0x8f8   :  { %v4114_v39 = vsel %vm935_vm12, %v4091_v11, %v4113_v36 }
 0x8f9   :  { %v4115_v28 = vsel %vm937_vm13, %v4095_v56, %v4114_v39 }
 0x8fa   :  { %v4116_v44 = vsel %vm939_vm14, %v4099_v38, %v4115_v28 }
 0x8fb   :  { %v4117_v20 = vsel %vm941_vm15, %v4103_v42, %v4116_v44 }
 0x8fc   :  { %v4123_v19 = vsel %vm347_vm2, %v4117_v20, 0.0 }
 0x8fd   :  { %4124 = vadd.xlane.f32.xlu1 %v4123_v19 }
 0x98a   :  { %v4125_v41 = vpop.xlane.xlu1 %4124 }
 0x98b   :  { %v4128_v37 = vmul.f32 0.03125, %v4125_v41 }
 0x98d   :  { %v4165_v48 = vrot.slane %v4128_v37, %v12767_v52  ;;  %v4172_v43 = vrot.slane %v4128_v37, %v12770_v32  ;;  %v4179_v53 = vrot.slane %v4128_v37, %v12773_v34  ;;  %v4186_v54 = vrot.slane %v4128_v37, %v12776_v9 }
 0x98f   :  { %v4191_v63 = vrot.slane %v4165_v48, 1  ;;  %v4192_v13 = vrot.slane %v4172_v43, 1  ;;  %v4193_v4 = vrot.slane %v4179_v53, 1  ;;  %v4194_v3 = vrot.slane %v4186_v54, 1 }
 0x990   :  { %v4219_v5 = vsub.f32 %v4014_v51, %v4165_v48  ;;  %v4221_v8 = vsub.f32 %v4016_v30, %v4172_v43  ;;  %v4223_v46 = vsub.f32 %v4018_v2, %v4179_v53  ;;  %v4225_v56 = vsub.f32 %v4020_v16, %v4186_v54 }
 0x991   :  { %v4220_v14 = vsub.f32 %v4015_v0, %v4191_v63  ;;  %v4222_v11 = vsub.f32 %v4017_v1, %v4192_v13  ;;  %v4224_v50 = vsub.f32 %v4019_v24, %v4193_v4  ;;  %v4226_v28 = vsub.f32 %v4021_v17, %v4194_v3  ;;  %v4549_v3 = vld [vmem:[%s14512_s14] sm:$0xff] }
 0x992   :  { %v4235_v36 = vmul.f32 %v4219_v5, %v4219_v5  ;;  %v4237_v38 = vmul.f32 %v4221_v8, %v4221_v8  ;;  %v4239_v44 = vmul.f32 %v4223_v46, %v4223_v46  ;;  %v4241_v51 = vmul.f32 %v4225_v56, %v4225_v56 }
 0x993   :  { %v4236_v39 = vmul.f32 %v4220_v14, %v4220_v14  ;;  %v4238_v42 = vmul.f32 %v4222_v11, %v4222_v11  ;;  %v4240_v41 = vmul.f32 %v4224_v50, %v4224_v50  ;;  %v4242_v30 = vmul.f32 %v4226_v28, %v4226_v28 }
 0x994   :  { %v4294_v20 = vrot.slane %v4235_v36, %v12214_v58  ;;  %v4302_v37 = vrot.slane %v4237_v38, %v12214_v58  ;;  %v4310_v2 = vrot.slane %v4239_v44, %v12214_v58  ;;  %v4318_v48 = vrot.slane %v4241_v51, %v12214_v58  ;;  %v4550_v36 = vld [vmem:[%s14512_s14 + $0x8] sm:$0xff]  ;;  %v4551_v38 = vld [vmem:[%s14512_s14 + $0x10] sm:$0xff] }
 0x995   :  { %v4298_v19 = vrot.slane %v4236_v39, %v12214_v58  ;;  %v4306_v0 = vrot.slane %v4238_v42, %v12214_v58  ;;  %v4314_v16 = vrot.slane %v4240_v41, %v12214_v58  ;;  %v4322_v53 = vrot.slane %v4242_v30, %v12214_v58  ;;  %v4552_v42 = vld [vmem:[%s14512_s14 + $0x18] sm:$0xff] }
 0x996   :  { %v11592_v39 = vpack.c.bf16 %v4550_v36, %v4549_v3  ;;  %v11596_v44 = vpack.c.bf16 %v4552_v42, %v4551_v38 }
 0x997   :  { %v4330_v1 = vsel %vm929_vm9, %v4298_v19, %v4294_v20 }
 0x998   :  { %v4331_v24 = vsel %vm931_vm10, %v4302_v37, %v4330_v1  ;;  %11593 = vmatprep.subr.bf16.mxu0 %v11592_v39 }
 0x999   :  { %v4332_v17 = vsel %vm933_vm11, %v4306_v0, %v4331_v24  ;;  %11595 = vmatpush3.bf16.msra.mxu0 %v11592_v39 }
 0x99a   :  { %v4333_v43 = vsel %vm935_vm12, %v4310_v2, %v4332_v17  ;;  %11597 = vmatprep.subr.bf16.mxu0 %v11596_v44 }
 0x99b   :  { %v4334_v54 = vsel %vm937_vm13, %v4314_v16, %v4333_v43 }
 0x99c   :  { %v4335_v63 = vsel %vm939_vm14, %v4318_v48, %v4334_v54 }
 0x99d   :  { %v4336_v13 = vsel %vm941_vm15, %v4322_v53, %v4335_v63  ;;  %11599 = vmatpush3.bf16.msra.mxu0 %v11596_v44 }
 0x99e   :  { %v4342_v4 = vsel %vm347_vm2, %v4336_v13, 0.0 }
 0x99f   :  { %4343 = vadd.xlane.f32.xlu1 %v4342_v4 }
 0xa2c   :  { %v4344_v20 = vpop.xlane.xlu1 %4343 }
 0xa2d   :  { %v4346_v19 = vmul.f32 0.03125, %v4344_v20 }
 0xa2f   :  { %v4348_v41 = vadd.f32 1e-05, %v4346_v19 }
 0xa31   :  { %11823 = vrsqrt.f32 %v4348_v41  ;;  %v4751_v41 = vld [vmem:[%s14514_s16] sm:$0xff] }
 0xa3b   :  { %v11824_v37 = vpop.eup %11823 }
 0xa3c   :  { %v4387_v51 = vrot.slane %v11824_v37, %v12767_v52  ;;  %v4394_v30 = vrot.slane %v11824_v37, %v12770_v32  ;;  %v4401_v0 = vrot.slane %v11824_v37, %v12773_v34  ;;  %v4408_v1 = vrot.slane %v11824_v37, %v12776_v9  ;;  %v4752_v37 = vld [vmem:[%s14514_s16 + $0x8] sm:$0xff] }
 0xa3e   :  { %v4413_v2 = vrot.slane %v4387_v51, 1  ;;  %v4414_v24 = vrot.slane %v4394_v30, 1  ;;  %v4415_v16 = vrot.slane %v4401_v0, 1  ;;  %v4416_v17 = vrot.slane %v4408_v1, 1 }
 0xa3f   :  { %v4441_v48 = vmul.f32 %v4387_v51, %v4219_v5  ;;  %v4443_v43 = vmul.f32 %v4394_v30, %v4221_v8  ;;  %v4445_v53 = vmul.f32 %v4401_v0, %v4223_v46  ;;  %v4447_v54 = vmul.f32 %v4408_v1, %v4225_v56  ;;  %v4753_v51 = vld [vmem:[%s14514_s16 + $0x10] sm:$0xff]  ;;  %v4754_v0 = vld [vmem:[%s14514_s16 + $0x18] sm:$0xff] }
 0xa40   :  { %v4442_v63 = vmul.f32 %v4413_v2, %v4220_v14  ;;  %v4444_v13 = vmul.f32 %v4414_v24, %v4222_v11  ;;  %v4446_v4 = vmul.f32 %v4415_v16, %v4224_v50  ;;  %v4448_v3 = vmul.f32 %v4416_v17, %v4226_v28  ;;  %v4755_v2 = vld [vmem:[%s14514_s16 + $0x20] sm:$0xff]  ;;  %v4756_v24 = vld [vmem:[%s14514_s16 + $0x28] sm:$0xff]  ;;  %v4757_v17 = vld [vmem:[%s14514_s16 + $0x30] sm:$0xff] }
 0xa41   :  { %v4491_v36 = vmul.f32 %v12851_v60, %v4441_v48  ;;  %v4493_v38 = vmul.f32 %v12861_v22, %v4443_v43  ;;  %v4495_v39 = vmul.f32 %v12854_v62, %v4445_v53  ;;  %v4497_v8 = vmul.f32 %v12865_v40, %v4447_v54  ;;  %v4758_v48 = vld [vmem:[%s14514_s16 + $0x38] sm:$0xff]  ;;  %v10357_v53 = vld [vmem:[%s14513_s15] ss:$0 sm:$0xff] }
 0xa42   :  { %v4492_v42 = vmul.f32 %v4471_v12, %v4442_v63  ;;  %v4494_v44 = vmul.f32 %v4472_v21, %v4444_v13  ;;  %v4496_v5 = vmul.f32 %v4473_v26, %v4446_v4  ;;  %v4498_v11 = vmul.f32 %v4474_v61, %v4448_v3 }
 0xa43   :  { %v13046_v46 = vadd.f32 %v12857_v18, %v4491_v36  ;;  %v13049_v14 = vadd.f32 %v12872_v25, %v4493_v38  ;;  %v13062_v62 = vadd.f32 %v12868_v23, %v4495_v39  ;;  %v13073_v18 = vadd.f32 %v12884_v7, %v4497_v8 }
 0xa44   :  { %v13055_v60 = vadd.f32 %v4521_v15, %v4492_v42  ;;  %v13059_v22 = vadd.f32 %v4522_v47, %v4494_v44  ;;  %v13066_v12 = vadd.f32 %v4523_v59, %v4496_v5  ;;  %v13079_v26 = vadd.f32 %v4524_v29, %v4498_v11 }
 0xa45   :  { %v4611_v21 = vrot.slane %v13046_v46, %v12214_v58  ;;  %v4619_v25 = vrot.slane %v13049_v14, %v12214_v58  ;;  %v4627_v15 = vrot.slane %v13062_v62, %v12214_v58  ;;  %v4635_v7 = vrot.slane %v13073_v18, %v12214_v58 }
 0xa46   :  { %v4615_v40 = vrot.slane %v13055_v60, %v12214_v58  ;;  %v4623_v23 = vrot.slane %v13059_v22, %v12214_v58  ;;  %v4631_v59 = vrot.slane %v13066_v12, %v12214_v58  ;;  %v4639_v56 = vrot.slane %v13079_v26, %v12214_v58 }
 0xa47   :  { %v11600_v30 = vpack.c.bf16 %v4752_v37, %v4751_v41  ;;  %v11604_v1 = vpack.c.bf16 %v4754_v0, %v4753_v51  ;;  %v11608_v16 = vpack.c.bf16 %v4756_v24, %v4755_v2  ;;  %v11612_v43 = vpack.c.bf16 %v4758_v48, %v4757_v17 }
 0xa48   :  { %v4647_v61 = vsel %vm929_vm9, %v4615_v40, %v4611_v21 }
 0xa49   :  { %v4648_v47 = vsel %vm931_vm10, %v4619_v25, %v4647_v61  ;;  %11601 = vmatprep.subr.bf16.mxu0 %v11600_v30 }
 0xa4a   :  { %v4649_v50 = vsel %vm933_vm11, %v4623_v23, %v4648_v47 }
 0xa4b   :  { %v4650_v29 = vsel %vm935_vm12, %v4627_v15, %v4649_v50 }
 0xa4c   :  { %v4651_v28 = vsel %vm937_vm13, %v4631_v59, %v4650_v29 }
 0xa4d   :  { %v4652_v20 = vsel %vm939_vm14, %v4635_v7, %v4651_v28  ;;  %v10360_v7 = vld [vmem:[%s14559_s12 + $0x4] ss:$0 sm:$0xff] }
 0xa4e   :  { %v4653_v19 = vsel %vm941_vm15, %v4639_v56, %v4652_v20 }
 0xa4f   :  { %11136 = vmatmul.mubr.msk.f32.vlgmr.msra.gmra.mrb[38].mxu0 %vm347_vm2, %v4653_v19 }
 0xa50   :  { %11603 = vmatpush3.bf16.msra.mxu0 %v11600_v30 }
 0xa51   :  { %11605 = vmatprep.subr.bf16.mxu0 %v11604_v1 }
 0xa54   :  { %11607 = vmatpush3.bf16.msra.mxu0 %v11604_v1 }
 0xa55   :  { %11609 = vmatprep.subr.bf16.mxu0 %v11608_v16 }
 0xa58   :  { %11611 = vmatpush3.bf16.msra.mxu0 %v11608_v16 }
 0xa59   :  { %11613 = vmatprep.subr.bf16.mxu0 %v11612_v43 }
 0xa5c   :  { %11615 = vmatpush3.bf16.msra.mxu0 %v11612_v43 }
 0xb22   :  { %v11137_v54 = vpop.f32.mrb[38].mxu0 }
 0xb23   :  { %v4730_v63 = vadd.f32 %v11137_v54, %v10357_v53  ;;  %v4724_v13 = vpop.f32.mrb[39].mxu0 }
 0xb24   :  { %v4725_v4 = vadd.f32 %v10357_v53, %v4724_v13 }
 0xb25   :  { %v4736_v3 = vmul.f32 0.044715, %v4730_v63  ;;  %v4734_v47 = vmul.f32 0.5, %v4730_v63 }
 0xb26   :  { %v4735_v36 = vmul.f32 0.044715, %v4725_v4  ;;  %v4733_v61 = vmul.f32 0.5, %v4725_v4 }
 0xb27   :  { %v4738_v38 = vmul.f32 %v4736_v3, %v4730_v63 }
 0xb28   :  { %v4737_v39 = vmul.f32 %v4735_v36, %v4725_v4 }
 0xb29   :  { %v4740_v42 = vmul.f32 %v4738_v38, %v4730_v63 }
 0xb2a   :  { %v4739_v44 = vmul.f32 %v4737_v39, %v4725_v4 }
 0xb2b   :  { %v4742_v5 = vadd.f32 %v4740_v42, %v4730_v63 }
 0xb2c   :  { %v4741_v8 = vadd.f32 %v4739_v44, %v4725_v4 }
 0xb2d   :  { %v4744_v11 = vmul.f32 0.7978846, %v4742_v5 }
 0xb2e   :  { %v4743_v21 = vmul.f32 0.7978846, %v4741_v8 }
 0xb2f   :  { %11825 = vtanh.f32 %v4744_v11 }
 0xb30   :  { %11827 = vtanh.f32 %v4743_v21 }
 0xb39   :  { %v11826_v40 = vpop.eup %11825 }
 0xb3a   :  { %v11828_v25 = vpop.eup %11827  ;;  %v4748_v23 = vadd.f32 1.0, %v11826_v40 }
 0xb3b   :  { %v4747_v15 = vadd.f32 1.0, %v11828_v25 }
 0xb3c   :  { %v4750_v50 = vmul.f32 %v4748_v23, %v4734_v47 }
 0xb3d   :  { %v4749_v59 = vmul.f32 %v4747_v15, %v4733_v61 }
 0xb3f   :  { %11154 = vmatprep.mubr.msk.f32.mxu0 %vm4764_vm7, %v4749_v59 }
 0xb40   :  { %11155 = vmatmul.mubr.msk.f32.vlgmr.msra.gmra.mrb[40].mxu0 %vm4764_vm7, %v4750_v50 }
 0xb41   :  { %11198 = vmatprep.mubr.msk.f32.mxu0 %vm11903_vm5, %v11902_v45 }
 0xc13   :  { %v11156_v29 = vpop.f32.mrb[40].mxu0 }
 0xc14   :  { %v4843_v56 = vadd.f32 %v11156_v29, %v10360_v7  ;;  %v4837_v28 = vpop.f32.mrb[41].mxu0 }
 0xc15   :  { %v4838_v20 = vadd.f32 %v10360_v7, %v4837_v28 }
 0xc16   :  { %v4865_v19 = vcombine.high %v4843_v56, %v4843_v56  ;;  %v4872_v41 = vrot.slane %v4843_v56, %v12209_v49 }
 0xc17   :  { %v4848_v37 = vcombine.high %v4838_v20, %v4838_v20  ;;  %v4855_v51 = vrot.slane %v4838_v20, %v12209_v49 }
 0xc18   :  { %v4879_v30 = vrot.slane %v4865_v19, %v12209_v49  ;;  %v4880_v0 = vcombine.high %v4872_v41, %v4872_v41  ;;  %v4886_v1 = vrot.slane %v4872_v41, 1  ;;  %v13137_v2 = vadd.f32 %v4872_v41, %v13046_v46 }
 0xc19   :  { %v4862_v24 = vrot.slane %v4848_v37, %v12209_v49  ;;  %v4863_v16 = vcombine.high %v4855_v51, %v4855_v51  ;;  %v4882_v17 = vrot.slane %v4855_v51, 1  ;;  %v13141_v48 = vadd.f32 %v4855_v51, %v12907_v6 }
 0xc1a   :  { %v4881_v43 = vcombine.high %v4879_v30, %v4879_v30  ;;  %v4887_v53 = vrot.slane %v4880_v0, 1  ;;  %v4888_v54 = vrot.slane %v4879_v30, 1  ;;  %v13144_v63 = vadd.f32 %v4886_v1, %v13055_v60 }
 0xc1b   :  { %v13147_v13 = vadd.f32 %v4880_v0, %v13049_v14  ;;  %v13150_v4 = vadd.f32 %v4879_v30, %v13062_v62  ;;  %v4975_v46 = vrot.slane %v13137_v2, %v12214_v58  ;;  %v4864_v3 = vcombine.high %v4862_v24, %v4862_v24 }
 0xc1c   :  { %v4917_v36 = vadd.f32 %v4887_v53, %v13059_v22  ;;  %v13156_v6 = vadd.f32 %v4888_v54, %v13066_v12  ;;  %v4979_v38 = vrot.slane %v13144_v63, %v12214_v58  ;;  %v4883_v60 = vrot.slane %v4863_v16, 1 }
 0xc1d   :  { %v4983_v14 = vrot.slane %v13147_v13, %v12214_v58  ;;  %v4991_v62 = vrot.slane %v13150_v4, %v12214_v58  ;;  %v4884_v39 = vrot.slane %v4862_v24, 1  ;;  %v13165_v42 = vadd.f32 %v4882_v17, %v12917_v31 }
 0xc1e   :  { %v4987_v44 = vrot.slane %v4917_v36, %v12214_v58  ;;  %v5011_v22 = vsel %vm929_vm9, %v4979_v38, %v4975_v46  ;;  %v13170_v12 = vadd.f32 %v4863_v16, %v12910_v10  ;;  %v13173_v5 = vadd.f32 %v4883_v60, %v12921_v57 }
 0xc1f   :  { %v13176_v8 = vadd.f32 %v4862_v24, %v12924_v35  ;;  %v13179_v11 = vadd.f32 %v4884_v39, %v12928_v55  ;;  %v4943_v31 = vrot.slane %v13141_v48, %v12214_v58  ;;  %v4947_v21 = vrot.slane %v13165_v42, %v12214_v58 }
 0xc20   :  { %v4951_v40 = vrot.slane %v13170_v12, %v12214_v58  ;;  %v4955_v10 = vrot.slane %v13173_v5, %v12214_v58  ;;  %v4889_v57 = vrot.slane %v4881_v43, 1  ;;  %v4920_v25 = vadd.f32 %v4881_v43, %v13073_v18 }
 0xc21   :  { %v4959_v35 = vrot.slane %v13176_v8, %v12214_v58  ;;  %v5004_v55 = vsel %vm929_vm9, %v4947_v21, %v4943_v31  ;;  %v4995_v23 = vrot.slane %v13156_v6, %v12214_v58  ;;  %v5012_v61 = vsel %vm931_vm10, %v4983_v14, %v5011_v22 }
 0xc22   :  { %v13197_v15 = vadd.f32 %v4889_v57, %v13079_v26  ;;  %v4999_v47 = vrot.slane %v4920_v25, %v12214_v58  ;;  %v5013_v59 = vsel %vm933_vm11, %v4987_v44, %v5012_v61  ;;  %v4885_v50 = vrot.slane %v4864_v3, 1 }
 0xc23   :  { %v5014_v18 = vsel %vm935_vm12, %v4991_v62, %v5013_v59  ;;  %v13203_v7 = vadd.f32 %v4864_v3, %v12935_v27  ;;  %v4963_v29 = vrot.slane %v13179_v11, %v12214_v58  ;;  %v5005_v56 = vsel %vm931_vm10, %v4951_v40, %v5004_v55 }
 0xc24   :  { %v5003_v28 = vrot.slane %v13197_v15, %v12214_v58  ;;  %v5015_v26 = vsel %vm937_vm13, %v4995_v23, %v5014_v18  ;;  %v13212_v20 = vadd.f32 %v4885_v50, %v12941_v33  ;;  %v5006_v19 = vsel %vm933_vm11, %v4955_v10, %v5005_v56 }
 0xc25   :  { %v5016_v41 = vsel %vm939_vm14, %v4999_v47, %v5015_v26  ;;  %v4967_v27 = vrot.slane %v13203_v7, %v12214_v58  ;;  %v5007_v37 = vsel %vm935_vm12, %v4959_v35, %v5006_v19 }
 0xc26   :  { %v5017_v51 = vsel %vm941_vm15, %v5003_v28, %v5016_v41  ;;  %v4971_v30 = vrot.slane %v13212_v20, %v12214_v58  ;;  %v5008_v0 = vsel %vm937_vm13, %v4963_v29, %v5007_v37 }
 0xc27   :  { %v5023_v1 = vsel %vm347_vm2, %v5017_v51, 0.0  ;;  %v5009_v33 = vsel %vm939_vm14, %v4967_v27, %v5008_v0 }
 0xc28   :  { %5024 = vadd.xlane.f32.xlu1 %v5023_v1  ;;  %v5010_v24 = vsel %vm941_vm15, %v4971_v30, %v5009_v33 }
 0xc29   :  { %v5020_v16 = vsel %vm347_vm2, %v5010_v24, 0.0 }
 0xc2a   :  { %5021 = vadd.xlane.f32.xlu0 %v5020_v16 }
 0xcb5   :  { %v5025_v17 = vpop.xlane.xlu1 %5024 }
 0xcb6   :  { %v5027_v43 = vmul.f32 0.03125, %v5025_v17 }
 0xcb7   :  { %v5022_v53 = vpop.xlane.xlu0 %5021 }
 0xcb8   :  { %v5064_v54 = vrot.slane %v5027_v43, %v12767_v52  ;;  %v5071_v46 = vrot.slane %v5027_v43, %v12770_v32  ;;  %v5078_v3 = vrot.slane %v5027_v43, %v12773_v34  ;;  %v5085_v38 = vrot.slane %v5027_v43, %v12776_v9 }
 0xcb9   :  { %v5026_v60 = vmul.f32 0.03125, %v5022_v53 }
 0xcba   :  { %v5090_v14 = vrot.slane %v5064_v54, 1  ;;  %v5091_v62 = vrot.slane %v5071_v46, 1  ;;  %v5092_v39 = vrot.slane %v5078_v3, 1  ;;  %v13232_v44 = vsub.f32 %v13137_v2, %v5064_v54 }
 0xcbb   :  { %v13235_v22 = vsub.f32 %v13147_v13, %v5071_v46  ;;  %v13243_v40 = vsub.f32 %v13150_v4, %v5078_v3  ;;  %v5036_v10 = vrot.slane %v5026_v60, %v12767_v52  ;;  %v5093_v57 = vrot.slane %v5085_v38, 1 }
 0xcbc   :  { %v13238_v31 = vsub.f32 %v13144_v63, %v5090_v14  ;;  %v13240_v21 = vsub.f32 %v4917_v36, %v5091_v62  ;;  %v13246_v35 = vsub.f32 %v4920_v25, %v5085_v38  ;;  %v5043_v55 = vrot.slane %v5026_v60, %v12770_v32 }
 0xcbd   :  { %v13250_v2 = vsub.f32 %v13156_v6, %v5092_v39  ;;  %v5134_v13 = vmul.f32 %v13232_v44, %v13232_v44  ;;  %v5050_v36 = vrot.slane %v5026_v60, %v12773_v34  ;;  %v5136_v4 = vmul.f32 %v13235_v22, %v13235_v22 }
 0xcbe   :  { %v5135_v63 = vmul.f32 %v13238_v31, %v13238_v31  ;;  %v5057_v23 = vrot.slane %v5026_v60, %v12776_v9  ;;  %v5086_v25 = vrot.slane %v5036_v10, 1  ;;  %v5087_v61 = vrot.slane %v5043_v55, 1 }
 0xcbf   :  { %v5137_v47 = vmul.f32 %v13240_v21, %v13240_v21  ;;  %v5138_v6 = vmul.f32 %v13243_v40, %v13243_v40  ;;  %v5088_v59 = vrot.slane %v5050_v36, 1  ;;  %v13265_v50 = vsub.f32 %v13141_v48, %v5036_v10 }
 0xcc0   :  { %v13268_v18 = vsub.f32 %v13165_v42, %v5086_v25  ;;  %v13271_v29 = vsub.f32 %v13170_v12, %v5043_v55  ;;  %v13274_v56 = vsub.f32 %v13173_v5, %v5087_v61  ;;  %v13277_v28 = vsub.f32 %v13176_v8, %v5050_v36 }
 0xcc1   :  { %v5193_v26 = vrot.slane %v5134_v13, %v12214_v58  ;;  %v5197_v19 = vrot.slane %v5135_v63, %v12214_v58  ;;  %v5126_v48 = vmul.f32 %v13265_v50, %v13265_v50  ;;  %v13284_v41 = vsub.f32 %v13197_v15, %v5093_v57 }
 0xcc2   :  { %v5089_v42 = vrot.slane %v5057_v23, 1  ;;  %v13287_v12 = vsub.f32 %v13179_v11, %v5088_v59  ;;  %v5127_v5 = vmul.f32 %v13268_v18, %v13268_v18  ;;  %v5128_v8 = vmul.f32 %v13271_v29, %v13271_v29 }
 0xcc3   :  { %v5201_v27 = vrot.slane %v5136_v4, %v12214_v58  ;;  %v13295_v37 = vsub.f32 %v13203_v7, %v5057_v23  ;;  %v5129_v51 = vmul.f32 %v13274_v56, %v13274_v56  ;;  %v5139_v15 = vmul.f32 %v13250_v2, %v13250_v2 }
 0xcc4   :  { %v5130_v11 = vmul.f32 %v13277_v28, %v13277_v28  ;;  %v5161_v30 = vrot.slane %v5126_v48, %v12214_v58  ;;  %v5165_v0 = vrot.slane %v5127_v5, %v12214_v58  ;;  %v5140_v1 = vmul.f32 %v13246_v35, %v13246_v35  ;;  %v10366_v5 = vld [vmem:[%s14515_s17 + $0x28] sm:$0xff] }
 0xcc5   :  { %v5169_v33 = vrot.slane %v5128_v8, %v12214_v58  ;;  %v5141_v7 = vmul.f32 %v13284_v41, %v13284_v41  ;;  %v5205_v24 = vrot.slane %v5137_v47, %v12214_v58  ;;  %v5229_v16 = vsel %vm929_vm9, %v5197_v19, %v5193_v26  ;;  %v10367_v8 = vld [vmem:[%s14515_s17 + $0x30] sm:$0xff] }
 0xcc6   :  { %v5209_v17 = vrot.slane %v5138_v6, %v12214_v58  ;;  %v5230_v43 = vsel %vm931_vm10, %v5201_v27, %v5229_v16  ;;  %v13315_v53 = vsub.f32 %v13212_v20, %v5089_v42  ;;  %v5131_v54 = vmul.f32 %v13287_v12, %v13287_v12  ;;  %v10365_v42 = vld [vmem:[%s14515_s17 + $0x20] sm:$0xff] }
 0xcc7   :  { %v5213_v46 = vrot.slane %v5139_v15, %v12214_v58  ;;  %v5231_v3 = vsel %vm933_vm11, %v5205_v24, %v5230_v43  ;;  %v5132_v38 = vmul.f32 %v13295_v37, %v13295_v37  ;;  %v5222_v60 = vsel %vm929_vm9, %v5165_v0, %v5161_v30  ;;  %v5563_v30 = vld [vmem:[%s14515_s17 + $0x8] sm:$0xff]  ;;  %v10364_v24 = vld [vmem:[%s14559_s12 + $0x6] ss:$0 sm:$0xff] }
 0xcc8   :  { %v5217_v14 = vrot.slane %v5140_v1, %v12214_v58  ;;  %v5232_v62 = vsel %vm935_vm12, %v5209_v17, %v5231_v3  ;;  %v5133_v20 = vmul.f32 %v13315_v53, %v13315_v53  ;;  %v5173_v39 = vrot.slane %v5129_v51, %v12214_v58  ;;  %v10368_v51 = vld [vmem:[%s14515_s17 + $0x38] sm:$0xff] }
 0xcc9   :  { %v5221_v10 = vrot.slane %v5141_v7, %v12214_v58  ;;  %v5233_v57 = vsel %vm937_vm13, %v5213_v46, %v5232_v62  ;;  %v5177_v55 = vrot.slane %v5130_v11, %v12214_v58  ;;  %v5223_v13 = vsel %vm931_vm10, %v5169_v33, %v5222_v60  ;;  %v5562_v11 = vld [vmem:[%s14515_s17] sm:$0xff] }
 0xcca   :  { %v5234_v63 = vsel %vm939_vm14, %v5217_v14, %v5233_v57  ;;  %v5181_v36 = vrot.slane %v5131_v54, %v12214_v58  ;;  %v5224_v4 = vsel %vm933_vm11, %v5173_v39, %v5223_v13  ;;  %v5185_v25 = vrot.slane %v5132_v38, %v12214_v58  ;;  %v10363_v33 = vld [vmem:[%s14559_s12 + $0x5] ss:$0 sm:$0xff] }
 0xccb   :  { %v5235_v23 = vsel %vm941_vm15, %v5221_v10, %v5234_v63  ;;  %v5225_v61 = vsel %vm935_vm12, %v5177_v55, %v5224_v4  ;;  %v5189_v6 = vrot.slane %v5133_v20, %v12214_v58  ;;  %v11616_v27 = vpack.c.bf16 %v10366_v5, %v10365_v42 }
 0xccc   :  { %v5241_v47 = vsel %vm347_vm2, %v5235_v23, 0.0  ;;  %v5226_v59 = vsel %vm937_vm13, %v5181_v36, %v5225_v61  ;;  %v11620_v15 = vpack.c.bf16 %v10368_v51, %v10367_v8  ;;  %v13363_v0 = vpack.c.bf16 %v5563_v30, %v5562_v11 }
 0xccd   :  { %5242 = vadd.xlane.f32.xlu1 %v5241_v47  ;;  %v5227_v26 = vsel %vm939_vm14, %v5185_v25, %v5226_v59  ;;  %11617 = vmatprep.subr.bf16.mxu1 %v11616_v27  ;;  %v5353_v43 = vcombine.high %v10363_v33, %v10363_v33  ;;  %v5403_v46 = vcombine.high %v10364_v24, %v10364_v24 }
 0xcce   :  { %v5228_v19 = vsel %vm941_vm15, %v5189_v6, %v5227_v26  ;;  %11619 = vmatpush3.bf16.msra.mxu1 %v11616_v27  ;;  %v13373_v38 = vrot.slane %v10363_v33, %v12209_v49  ;;  %v13379_v14 = vrot.slane %v10364_v24, %v12209_v49 }
 0xccf   :  { %v5238_v48 = vsel %vm347_vm2, %v5228_v19, 0.0  ;;  %11621 = vmatprep.subr.bf16.mxu1 %v11620_v15  ;;  %v13376_v60 = vrot.slane %v5353_v43, %v12209_v49  ;;  %v13382_v62 = vrot.slane %v5403_v46, %v12209_v49 }
 0xcd0   :  { %5239 = vadd.xlane.f32.xlu0 %v5238_v48  ;;  %v13386_v20 = vcombine.high %v13373_v38, %v13373_v38  ;;  %v13394_v10 = vcombine.high %v13379_v14, %v13379_v14  ;;  %v5370_v13 = vrot.slane %v13373_v38, 1  ;;  %v5420_v6 = vrot.slane %v13379_v14, 1 }
 0xcd1   :  { %v13390_v39 = vcombine.high %v13376_v60, %v13376_v60  ;;  %v13398_v57 = vcombine.high %v13382_v62, %v13382_v62  ;;  %v5372_v36 = vrot.slane %v13376_v60, 1  ;;  %v5422_v26 = vrot.slane %v13382_v62, 1 }
 0xcd2   :  { %11623 = vmatpush3.bf16.msra.mxu1 %v11620_v15  ;;  %v5371_v63 = vrot.slane %v13386_v20, 1  ;;  %v5421_v59 = vrot.slane %v13394_v10, 1 }
 0xcd3   :  { %11625 = vmatprep.subr.bf16.mxu1 %v13363_v0  ;;  %v5373_v4 = vrot.slane %v13390_v39, 1  ;;  %v5423_v19 = vrot.slane %v13398_v57, 1 }
 0xd5a   :  { %v5243_v1 = vpop.xlane.xlu1 %5242 }
 0xd5b   :  { %v5245_v7 = vmul.f32 0.03125, %v5243_v1 }
 0xd5d   :  { %v5247_v16 = vadd.f32 1e-05, %v5245_v7  ;;  %v5240_v17 = vpop.xlane.xlu0 %5239 }
 0xd5e   :  { %v5244_v54 = vmul.f32 0.03125, %v5240_v17 }
 0xd5f   :  { %11829 = vrsqrt.f32 %v5247_v16 }
 0xd60   :  { %v5246_v3 = vadd.f32 1e-05, %v5244_v54 }
 0xd62   :  { %11831 = vrsqrt.f32 %v5246_v3 }
 0xd69   :  { %v11830_v55 = vpop.eup %11829 }
 0xd6a   :  { %v5286_v23 = vrot.slane %v11830_v55, %v12767_v52  ;;  %v5293_v25 = vrot.slane %v11830_v55, %v12770_v32  ;;  %v5300_v61 = vrot.slane %v11830_v55, %v12773_v34  ;;  %v5307_v47 = vrot.slane %v11830_v55, %v12776_v9 }
 0xd6c   :  { %v11832_v48 = vpop.eup %11831  ;;  %v5312_v42 = vrot.slane %v5286_v23, 1  ;;  %v5313_v5 = vrot.slane %v5293_v25, 1  ;;  %v5314_v8 = vrot.slane %v5300_v61, 1  ;;  %v5315_v27 = vrot.slane %v5307_v47, 1 }
 0xd6d   :  { %v5258_v51 = vrot.slane %v11832_v48, %v12767_v52  ;;  %v5265_v15 = vrot.slane %v11832_v48, %v12770_v32  ;;  %v5272_v11 = vrot.slane %v11832_v48, %v12773_v34  ;;  %v5279_v30 = vrot.slane %v11832_v48, %v12776_v9 }
 0xd6e   :  { %v5340_v1 = vmul.f32 %v5286_v23, %v13232_v44  ;;  %v5341_v33 = vmul.f32 %v5312_v42, %v13238_v31  ;;  %v5342_v7 = vmul.f32 %v5293_v25, %v13235_v22  ;;  %v5343_v24 = vmul.f32 %v5313_v5, %v13240_v21 }
 0xd6f   :  { %v5308_v16 = vrot.slane %v5258_v51, 1  ;;  %v5309_v17 = vrot.slane %v5265_v15, 1  ;;  %v5310_v43 = vrot.slane %v5272_v11, 1  ;;  %v5311_v54 = vrot.slane %v5279_v30, 1 }
 0xd70   :  { %v5332_v46 = vmul.f32 %v5258_v51, %v13265_v50  ;;  %v5334_v3 = vmul.f32 %v5265_v15, %v13271_v29  ;;  %v5336_v55 = vmul.f32 %v5272_v11, %v13277_v28  ;;  %v5338_v48 = vmul.f32 %v5279_v30, %v13295_v37 }
 0xd71   :  { %v5333_v44 = vmul.f32 %v5308_v16, %v13268_v18  ;;  %v5335_v31 = vmul.f32 %v5309_v17, %v13274_v56  ;;  %v5337_v22 = vmul.f32 %v5310_v43, %v13287_v12  ;;  %v5339_v21 = vmul.f32 %v5311_v54, %v13315_v53 }
 0xd72   :  { %v5382_v23 = vmul.f32 %v13373_v38, %v5332_v46  ;;  %v5384_v25 = vmul.f32 %v13386_v20, %v5334_v3  ;;  %v5386_v50 = vmul.f32 %v13376_v60, %v5336_v55  ;;  %v5388_v29 = vmul.f32 %v13390_v39, %v5338_v48 }
 0xd73   :  { %v5383_v28 = vmul.f32 %v5370_v13, %v5333_v44  ;;  %v5385_v18 = vmul.f32 %v5371_v63, %v5335_v31  ;;  %v5387_v56 = vmul.f32 %v5372_v36, %v5337_v22  ;;  %v5389_v12 = vmul.f32 %v5373_v4, %v5339_v21 }
 0xd74   :  { %v5432_v37 = vadd.f32 %v13379_v14, %v5382_v23  ;;  %v5434_v53 = vadd.f32 %v13394_v10, %v5384_v25  ;;  %v5436_v42 = vadd.f32 %v13382_v62, %v5386_v50  ;;  %v5438_v5 = vadd.f32 %v13398_v57, %v5388_v29 }
 0xd75   :  { %v5433_v51 = vadd.f32 %v5420_v6, %v5383_v28  ;;  %v5435_v15 = vadd.f32 %v5421_v59, %v5385_v18  ;;  %v5437_v11 = vadd.f32 %v5422_v26, %v5387_v56  ;;  %v13452_v30 = vadd.f32 %v5423_v19, %v5389_v12 }
 0xd76   :  { %v13455_v16 = vrot.slane %v5432_v37, %v12214_v58  ;;  %v5473_v17 = vrot.slane %v5434_v53, %v12214_v58  ;;  %v5481_v43 = vrot.slane %v5436_v42, %v12214_v58  ;;  %v13460_v54 = vrot.slane %v5438_v5, %v12214_v58  ;;  %v5564_v53 = vld [vmem:[%s14515_s17 + $0x10] sm:$0xff]  ;;  %v5565_v42 = vld [vmem:[%s14515_s17 + $0x18] sm:$0xff] }
 0xd77   :  { %v5469_v46 = vrot.slane %v5433_v51, %v12214_v58  ;;  %v5477_v3 = vrot.slane %v5435_v15, %v12214_v58  ;;  %v13465_v55 = vrot.slane %v5437_v11, %v12214_v58  ;;  %v13469_v48 = vrot.slane %v13452_v30, %v12214_v58 }
 0xd78   :  { %v5344_v44 = vmul.f32 %v5300_v61, %v13243_v40  ;;  %v5345_v31 = vmul.f32 %v5314_v8, %v13250_v2  ;;  %v5346_v22 = vmul.f32 %v5307_v47, %v13246_v35  ;;  %v5347_v21 = vmul.f32 %v5315_v27, %v13284_v41 }
 0xd79   :  { %v5571_v23 = vsel %vm929_vm9, %v5469_v46, %v13455_v16  ;;  %v5390_v25 = vmul.f32 %v13373_v38, %v5340_v1  ;;  %v5391_v50 = vmul.f32 %v5370_v13, %v5341_v33  ;;  %v5392_v29 = vmul.f32 %v13386_v20, %v5342_v7 }
 0xd7a   :  { %v5572_v28 = vsel %vm931_vm10, %v5473_v17, %v5571_v23  ;;  %v5393_v40 = vmul.f32 %v5371_v63, %v5343_v24  ;;  %v5394_v2 = vmul.f32 %v13376_v60, %v5344_v44  ;;  %v5395_v35 = vmul.f32 %v5372_v36, %v5345_v31 }
 0xd7b   :  { %v5573_v41 = vsel %vm933_vm11, %v5477_v3, %v5572_v28  ;;  %v5396_v61 = vmul.f32 %v13390_v39, %v5346_v22  ;;  %v5397_v38 = vmul.f32 %v5373_v4, %v5347_v21  ;;  %v5440_v13 = vadd.f32 %v13379_v14, %v5390_v25  ;;  %v10373_v28 = vld [vmem:[%s14515_s17 + $0x40] sm:$0xff] }
 0xd7c   :  { %v5574_v47 = vsel %vm935_vm12, %v5481_v43, %v5573_v41  ;;  %v5441_v20 = vadd.f32 %v5420_v6, %v5391_v50  ;;  %v5442_v63 = vadd.f32 %v13394_v10, %v5392_v29  ;;  %v5443_v60 = vadd.f32 %v5421_v59, %v5393_v40 }
 0xd7d   :  { %v5575_v36 = vsel %vm937_vm13, %v13465_v55, %v5574_v47  ;;  %v5444_v8 = vadd.f32 %v13382_v62, %v5394_v2  ;;  %v5445_v39 = vadd.f32 %v5422_v26, %v5395_v35  ;;  %v5446_v4 = vadd.f32 %v13398_v57, %v5396_v61 }
 0xd7e   :  { %v5576_v27 = vsel %vm939_vm14, %v13460_v54, %v5575_v36  ;;  %v13507_v14 = vrot.slane %v5440_v13, %v12214_v58  ;;  %v5497_v6 = vrot.slane %v5441_v20, %v12214_v58  ;;  %v5447_v59 = vadd.f32 %v5423_v19, %v5397_v38  ;;  %v10375_v13 = vld [vmem:[%s14515_s17 + $0x50] sm:$0xff] }
 0xd7f   :  { %v5577_v10 = vsel %vm941_vm15, %v13469_v48, %v5576_v27  ;;  %v5501_v1 = vrot.slane %v5442_v63, %v12214_v58  ;;  %v5505_v62 = vrot.slane %v5443_v60, %v12214_v58  ;;  %v5509_v26 = vrot.slane %v5444_v8, %v12214_v58  ;;  %v10396_v27 = vld [vmem:[%s14516_s18 + $0x40] sm:$0xff] }
 0xd80   :  { %11165 = vmatprep.mubr.msk.f32.mxu1 %vm347_vm2, %v5577_v10  ;;  %v5513_v33 = vrot.slane %v5445_v39, %v12214_v58  ;;  %v5517_v7 = vrot.slane %v5446_v4, %v12214_v58  ;;  %v5578_v24 = vsel %vm929_vm9, %v5497_v6, %v13507_v14  ;;  %v5518_v57 = vsel %vm931_vm10, %v5469_v46, %v13455_v16  ;;  %v5939_v4 = vld [vmem:[%s14516_s18 + $0x8] sm:$0xff]  ;;  %v5940_v10 = vld [vmem:[%s14516_s18 + $0x10] sm:$0xff] }
 0xd81   :  { %v5579_v18 = vsel %vm931_vm10, %v5501_v1, %v5578_v24  ;;  %v5524_v19 = vsel %vm931_vm10, %v5497_v6, %v13507_v14  ;;  %v5544_v56 = vsel %vm929_vm9, %v5473_v17, %v5469_v46  ;;  %v5519_v37 = vsel %vm933_vm11, %v5473_v17, %v5518_v57 }
 0xd82   :  { %v5580_v12 = vsel %vm933_vm11, %v5505_v62, %v5579_v18  ;;  %v5525_v5 = vsel %vm933_vm11, %v5501_v1, %v5524_v19  ;;  %v5545_v51 = vsel %vm931_vm10, %v5477_v3, %v5544_v56  ;;  %v5520_v11 = vsel %vm935_vm12, %v5477_v3, %v5519_v37  ;;  %v10379_v18 = vld [vmem:[%s14559_s12 + $0x7] ss:$0 sm:$0xff] }
 0xd83   :  { %v5581_v15 = vsel %vm935_vm12, %v5509_v26, %v5580_v12  ;;  %v5526_v46 = vsel %vm935_vm12, %v5505_v62, %v5525_v5  ;;  %v5546_v17 = vsel %vm933_vm11, %v5481_v43, %v5545_v51  ;;  %v5543_v44 = vrot.slane %v5447_v59, %v12214_v58 }
 0xd84   :  { %v5582_v31 = vsel %vm937_vm13, %v5513_v33, %v5581_v15  ;;  %v5521_v22 = vsel %vm937_vm13, %v5481_v43, %v5520_v11  ;;  %v11628_v25 = vpack.c.bf16 %v5565_v42, %v5564_v53  ;;  %v5527_v50 = vsel %vm937_vm13, %v5509_v26, %v5526_v46  ;;  %v10374_v43 = vld [vmem:[%s14515_s17 + $0x48] sm:$0xff] }
 0xd85   :  { %v5583_v21 = vsel %vm939_vm14, %v5517_v7, %v5582_v31  ;;  %v5522_v23 = vsel %vm939_vm14, %v13465_v55, %v5521_v22  ;;  %v5547_v40 = vsel %vm935_vm12, %v13465_v55, %v5546_v17  ;;  %v5550_v35 = vsel %vm929_vm9, %v5501_v1, %v5497_v6 }
 0xd86   :  { %v5584_v3 = vsel %vm941_vm15, %v5543_v44, %v5583_v21  ;;  %v5523_v29 = vsel %vm941_vm15, %v13460_v54, %v5522_v23  ;;  %v5528_v41 = vsel %vm939_vm14, %v5513_v33, %v5527_v50  ;;  %v5551_v61 = vsel %vm931_vm10, %v5505_v62, %v5550_v35 }
 0xd87   :  { %11166 = vmatmul.mubr.msk.f32.vlgmr.msra.gmra.mrb[34].mxu1 %vm347_vm2, %v5584_v3  ;;  %v5532_v2 = vsel %vm316_vm3, %v13452_v30, %v5523_v29  ;;  %v11632_v38 = vpack.c.bf16 %v10374_v43, %v10373_v28  ;;  %v5548_v55 = vsel %vm937_vm13, %v13460_v54, %v5547_v40  ;;  %v10376_v30 = vld [vmem:[%s14515_s17 + $0x58] sm:$0xff]  ;;  %v5529_v47 = vsel %vm941_vm15, %v5517_v7, %v5528_v41 }
 0xd88   :  { %11627 = vmatpush3.bf16.msra.mxu1 %v13363_v0  ;;  %11176 = vmatprep.mubr.msk.f32.mxu1 %vm347_vm2, %v5532_v2  ;;  %v5552_v0 = vsel %vm933_vm11, %v5509_v26, %v5551_v61  ;;  %v5549_v20 = vsel %vm939_vm14, %v13469_v48, %v5548_v55  ;;  %v11636_v63 = vpack.c.bf16 %v10376_v30, %v10375_v13  ;;  %v11908_v1 = vmov 0.0|0.0   ;;  %v10398_v26 = vld [vmem:[%s14516_s18 + $0x50] sm:$0xff] }
 0xd89   :  { %11629 = vmatprep.subr.bf16.mxu1 %v11628_v25  ;;  %v5553_v54 = vsel %vm935_vm12, %v5513_v33, %v5552_v0  ;;  %v5533_v60 = vsel %vm316_vm3, %v5447_v59, %v5529_v47  ;;  %v5560_v36 = vsel %vm325_vm4, %v5549_v20, %v13455_v16  ;;  %v5938_v16 = vld [vmem:[%s14516_s18] sm:$0xff]  ;;  %v5941_v59 = vld [vmem:[%s14516_s18 + $0x18] sm:$0xff]  ;;  %11640 = vmatprep.subr.bf16.mxu0 %v11908_v1 }
 0xd8a   :  { %v5554_v8 = vsel %vm937_vm13, %v5517_v7, %v5553_v54  ;;  %v11641_v6 = vpack.c.bf16 %v5939_v4, %v5938_v16  ;;  %v10399_v33 = vld [vmem:[%s14516_s18 + $0x58] sm:$0xff]  ;;  %v11644_v7 = vpack.c.bf16 %v5941_v59, %v5940_v10 }
 0xd8b   :  { %v5555_v39 = vsel %vm939_vm14, %v5543_v44, %v5554_v8  ;;  %v11656_v24 = vpack.c.bf16 %v10399_v33, %v10398_v26  ;;  %v10391_v26 = vld [vmem:[%s14516_s18 + $0x20] sm:$0xff] }
 0xd8c   :  { %11631 = vmatpush3.bf16.msra.mxu1 %v11628_v25  ;;  %v5561_v48 = vsel %vm325_vm4, %v5555_v39, %v13507_v14  ;;  %v10397_v14 = vld [vmem:[%s14516_s18 + $0x48] sm:$0xff]  ;;  %11642 = vmatpush3.bf16.msra.mxu0 %v11641_v6 }
 0xd8d   :  { %11633 = vmatprep.subr.bf16.mxu1 %v11632_v38  ;;  %v11653_v62 = vpack.c.bf16 %v10397_v14, %v10396_v27  ;;  %11643 = vmatprep.subr.bf16.mxu0 %v11908_v1 }
 0xd8f   :  { %11177 = vmatmul.mubr.msk.f32.vlgmr.msra.gmra.mrb[34].mxu1 %vm347_vm2, %v5533_v60 }
 0xd90   :  { %11635 = vmatpush3.bf16.msra.mxu1 %v11632_v38  ;;  %11187 = vmatprep.mubr.msk.f32.mxu1 %vm347_vm2, %v5560_v36 }
 0xd91   :  { %11637 = vmatprep.subr.bf16.mxu1 %v11636_v63  ;;  %11645 = vmatpush3.bf16.msra.mxu0 %v11644_v7 }
 0xd92   :  { %11646 = vmatprep.subr.bf16.mxu0 %v11908_v1 }
 0xd94   :  { %11639 = vmatpush3.bf16.msra.mxu1 %v11636_v63 }
 0xd95   :  { %11652 = vmatprep.subr.bf16.mxu1 %v11908_v1 }
 0xd97   :  { %11188 = vmatmul.mubr.msk.f32.vlgmr.msra.gmra.mrb[34].mxu1 %vm347_vm2, %v5561_v48 }
 0xd98   :  { %11220 = vmatprep.mubr.msk.f32.mxu1 %vm11903_vm5, %v11902_v45  ;;  %11654 = vmatpush3.bf16.msra.mxu1 %v11653_v62 }
 0xd99   :  { %11655 = vmatprep.subr.bf16.mxu1 %v11908_v1 }
 0xd9c   :  { %11657 = vmatpush3.bf16.msra.mxu1 %v11656_v24  ;;  %v10392_v24 = vld [vmem:[%s14516_s18 + $0x28] sm:$0xff] }
 0xd9d   :  { %11664 = vmatprep.subr.bf16.mxu1 %v11908_v1 }
 0xe6a   :  { %v11189_v57 = vpop.f32.mrb[34].mxu1 }
 0xe6b   :  { %v5839_v19 = vadd.f32 %v11189_v57, %v10379_v18  ;;  %v5822_v56 = vpop.f32.mrb[35].mxu1  ;;  %v6319_v57 = vld [vmem:[%s14518_s20 + $0x8] sm:$0xff] }
 0xe6c   :  { %v5838_v12 = vadd.f32 %v10379_v18, %v5822_v56  ;;  %v6318_v18 = vld [vmem:[%s14518_s20] sm:$0xff] }
 0xe6d   :  { %v5843_v37 = vmin.f32 %v5839_v19, 0.0  ;;  %vm5841_vm4 = vcmp.gt.f32.partialorder %v5839_v19, 0.0 }
 0xe6e   :  { %v5842_v53 = vmin.f32 %v5838_v12, 0.0  ;;  %vm5840_vm8 = vcmp.gt.f32.partialorder %v5838_v12, 0.0 }
 0xe6f   :  { %v5846_v42 = vmul.f32 1.442695, %v5843_v37 }
 0xe70   :  { %v5844_v5 = vmul.f32 1.442695, %v5842_v53 }
 0xe71   :  { %11833 = vpow2.f32 %v5846_v42 }
 0xe72   :  { %11835 = vpow2.f32 %v5844_v5  ;;  %v11647_v5 = vpack.c.bf16 %v10392_v24, %v10391_v26  ;;  %v10436_v26 = vld [vmem:[%s14520_s22 + $0x40] sm:$0xff] }
 0xe7b   :  { %v11834_v51 = vpop.eup %11833 }
 0xe7c   :  { %v11836_v15 = vpop.eup %11835  ;;  %v10381_v11 = vadd.f32 -1.0, %v11834_v51  ;;  %v11665_v51 = vpack.c.bf16 %v6319_v57, %v6318_v18  ;;  %v10423_v18 = vld [vmem:[%s14518_s20 + $0x70] sm:$0xff]  ;;  %v10424_v57 = vld [vmem:[%s14518_s20 + $0x78] sm:$0xff] }
 0xe7d   :  { %v10380_v46 = vadd.f32 -1.0, %v11836_v15  ;;  %v10393_v15 = vld [vmem:[%s14516_s18 + $0x30] sm:$0xff] }
 0xe7e   :  { %v5851_v17 = vsel %vm5841_vm4, %v5839_v19, %v10381_v11 }
 0xe7f   :  { %v5855_v44 = vrot.slane %v5851_v17, 7  ;;  %v5850_v31 = vsel %vm5840_vm8, %v5838_v12, %v10380_v46  ;;  %v10394_v46 = vld [vmem:[%s14516_s18 + $0x38] sm:$0xff] }
 0xe80   :  { %v5854_v22 = vrot.slane %v5850_v31, 7 }
 0xe81   :  { %v5859_v21 = vsel %vm316_vm3, -inf, %v5855_v44  ;;  %v6321_v44 = vld [vmem:[%s14518_s20 + $0x18] sm:$0xff] }
 0xe82   :  { %v5861_v23 = vmax.f32 %v5851_v17, %v5859_v21  ;;  %v5858_v25 = vsel %vm316_vm3, -inf, %v5854_v22  ;;  %v6320_v17 = vld [vmem:[%s14518_s20 + $0x10] sm:$0xff]  ;;  %v11650_v22 = vpack.c.bf16 %v10394_v46, %v10393_v15  ;;  %v10434_v15 = vld [vmem:[%s14520_s22 + $0x38] sm:$0xff]  ;;  %v10441_v46 = vld [vmem:[%s14520_s22 + $0x60] sm:$0xff]  ;;  %vm7284_vm3 = vcmask 27648  }
 0xe83   :  { %v5860_v50 = vmax.f32 %v5850_v31, %v5858_v25  ;;  %v11668_v21 = vpack.c.bf16 %v6321_v44, %v6320_v17  ;;  %v10402_v25 = vld [vmem:[%s14516_s18 + $0x68] sm:$0xff] }
 0xe84   :  { %v5881_v3 = vcombine.high %v5861_v23, %v5861_v23  ;;  %v5888_v29 = vrot.slane %v5861_v23, %v12209_v49  ;;  %v10401_v23 = vld [vmem:[%s14516_s18 + $0x60] sm:$0xff]  ;;  %v10442_v17 = vld [vmem:[%s14520_s22 + $0x68] sm:$0xff] }
 0xe85   :  { %v5864_v28 = vcombine.high %v5860_v50, %v5860_v50  ;;  %v5871_v43 = vrot.slane %v5860_v50, %v12209_v49  ;;  %v10416_v50 = vld [vmem:[%s14518_s20 + $0x40] sm:$0xff]  ;;  %v11707_v44 = vpack.c.bf16 %v10442_v17, %v10441_v46 }
 0xe86   :  { %v5895_v40 = vrot.slane %v5881_v3, %v12209_v49  ;;  %v5896_v2 = vcombine.high %v5888_v29, %v5888_v29  ;;  %v10386_v55 = vrot.slane %v5888_v29, 9  ;;  %v10417_v3 = vld [vmem:[%s14518_s20 + $0x48] sm:$0xff] }
 0xe87   :  { %v5878_v35 = vrot.slane %v5864_v28, %v12209_v49  ;;  %v5879_v41 = vcombine.high %v5871_v43, %v5871_v43  ;;  %v10382_v61 = vrot.slane %v5871_v43, 9  ;;  %v11677_v28 = vpack.c.bf16 %v10417_v3, %v10416_v50 }
 0xe88   :  { %v5897_v38 = vcombine.high %v5895_v40, %v5895_v40  ;;  %v10387_v13 = vrot.slane %v5896_v2, 9  ;;  %v10388_v63 = vrot.slane %v5895_v40, 9  ;;  %v13638_v39 = vmax.f32 %v5888_v29, %v10386_v55  ;;  %v10412_v55 = vld [vmem:[%s14518_s20 + $0x28] sm:$0xff] }
 0xe89   :  { %v5880_v30 = vcombine.high %v5878_v35, %v5878_v35  ;;  %v10383_v0 = vrot.slane %v5879_v41, 9  ;;  %v10384_v47 = vrot.slane %v5878_v35, 9  ;;  %v13632_v20 = vmax.f32 %v5871_v43, %v10382_v61  ;;  %v10403_v43 = vld [vmem:[%s14516_s18 + $0x70] sm:$0xff] }
 0xe8a   :  { %v10389_v54 = vrot.slane %v5897_v38, 9  ;;  %v13640_v48 = vmax.f32 %v5896_v2, %v10387_v13  ;;  %v13650_v14 = vmax.f32 %v5895_v40, %v10388_v63  ;;  %v5969_v33 = vrot.slane %v13638_v39, %v12214_v58  ;;  %v10404_v40 = vld [vmem:[%s14516_s18 + $0x78] sm:$0xff]  ;;  %v10418_v2 = vld [vmem:[%s14518_s20 + $0x50] sm:$0xff]  ;;  %v6649_v13 = vld [vmem:[%s14520_s22] sm:$0xff] }
 0xe8b   :  { %v10385_v60 = vrot.slane %v5880_v30, 9  ;;  %v13634_v36 = vmax.f32 %v5879_v41, %v10383_v0  ;;  %v13636_v8 = vmax.f32 %v5878_v35, %v10384_v47  ;;  %v5953_v4 = vrot.slane %v13632_v20, %v12214_v58  ;;  %v10419_v35 = vld [vmem:[%s14518_s20 + $0x58] sm:$0xff]  ;;  %v10413_v63 = vld [vmem:[%s14518_s20 + $0x30] sm:$0xff] }
 0xe8c   :  { %v13652_v10 = vmax.f32 %v5897_v38, %v10389_v54  ;;  %v5973_v19 = vrot.slane %v13640_v48, %v12214_v58  ;;  %v5977_v12 = vrot.slane %v13650_v14, %v12214_v58  ;;  %v11659_v29 = vpack.c.bf16 %v10402_v25, %v10401_v23  ;;  %v10411_v38 = vld [vmem:[%s14518_s20 + $0x20] sm:$0xff]  ;;  %v10414_v54 = vld [vmem:[%s14518_s20 + $0x38] sm:$0xff] }
 0xe8d   :  { %v13642_v16 = vmax.f32 %v5880_v30, %v10385_v60  ;;  %v5957_v27 = vrot.slane %v13634_v36, %v12214_v58  ;;  %v5961_v6 = vrot.slane %v13636_v8, %v12214_v58  ;;  %v11662_v41 = vpack.c.bf16 %v10404_v40, %v10403_v43  ;;  %v6650_v30 = vld [vmem:[%s14520_s22 + $0x8] sm:$0xff]  ;;  %v6651_v60 = vld [vmem:[%s14520_s22 + $0x10] sm:$0xff] }
 0xe8e   :  { %v5981_v53 = vrot.slane %v13652_v10, %v12214_v58  ;;  %v11680_v61 = vpack.c.bf16 %v10419_v35, %v10418_v2  ;;  %v11671_v0 = vpack.c.bf16 %v10412_v55, %v10411_v38  ;;  %v11689_v47 = vpack.c.bf16 %v6650_v30, %v6649_v13  ;;  %v10406_v2 = vld [vmem:[%s14517_s19] ss:$0 sm:$0xff]  ;;  %v10428_v38 = vld [vmem:[%s14519_s21 + $0x2] ss:$0 sm:$0xff] }
 0xe8f   :  { %v5965_v59 = vrot.slane %v13642_v16, %v12214_v58  ;;  %v5982_v62 = vsel %vm929_vm9, %v5957_v27, %v5953_v4  ;;  %v6652_v4 = vld [vmem:[%s14520_s22 + $0x18] sm:$0xff]  ;;  %v11674_v27 = vpack.c.bf16 %v10414_v54, %v10413_v63  ;;  %v10408_v30 = vld [vmem:[%s14517_s19 + $0x2] ss:$0 sm:$0xff] }
 0xe90   :  { %v5983_v7 = vsel %vm931_vm10, %v5961_v6, %v5982_v62  ;;  %v11692_v6 = vpack.c.bf16 %v6652_v4, %v6651_v60  ;;  %v10422_v62 = vld [vmem:[%s14518_s20 + $0x68] sm:$0xff]  ;;  %v10427_v60 = vld [vmem:[%s14519_s21 + $0x1] ss:$0 sm:$0xff]  ;;  %v10446_v4 = vld [vmem:[%s14521_s23] ss:$0 sm:$0xff] }
 0xe91   :  { %v5984_v56 = vsel %vm933_vm11, %v5965_v59, %v5983_v7  ;;  %v10421_v59 = vld [vmem:[%s14518_s20 + $0x60] sm:$0xff] }
 0xe92   :  { %v5985_v37 = vsel %vm935_vm12, %v5969_v33, %v5984_v56  ;;  %v10437_v33 = vld [vmem:[%s14520_s22 + $0x48] sm:$0xff]  ;;  %v11683_v7 = vpack.c.bf16 %v10422_v62, %v10421_v59  ;;  %v10439_v56 = vld [vmem:[%s14520_s22 + $0x58] sm:$0xff]  ;;  %v10407_v59 = vld [vmem:[%s14517_s19 + $0x1] ss:$0 sm:$0xff] }
 0xe93   :  { %v5986_v42 = vsel %vm937_vm13, %v5973_v19, %v5985_v37  ;;  %v11701_v24 = vpack.c.bf16 %v10437_v33, %v10436_v26  ;;  %v10438_v19 = vld [vmem:[%s14520_s22 + $0x50] sm:$0xff] }
 0xe94   :  { %v5987_v11 = vsel %vm939_vm14, %v5977_v12, %v5986_v42  ;;  %v11686_v12 = vpack.c.bf16 %v10424_v57, %v10423_v18  ;;  %v11704_v37 = vpack.c.bf16 %v10439_v56, %v10438_v19  ;;  %v10432_v42 = vld [vmem:[%s14520_s22 + $0x28] sm:$0xff]  ;;  %v10429_v18 = vld [vmem:[%s14519_s21 + $0x3] ss:$0 sm:$0xff] }
 0xe95   :  { %v13695_v31 = vsel %vm941_vm15, %v5981_v53, %v5987_v11  ;;  %v10431_v53 = vld [vmem:[%s14520_s22 + $0x20] sm:$0xff] }
 0xe96   :  { %11199 = vmatmul.mubr.msk.f32.vlgmr.msra.gmra.mrb[42].mxu0 %vm347_vm2, %v13695_v31  ;;  %11221 = vmatmul.mubr.msk.f32.vlgmr.msra.gmra.mrb[36].mxu1 %vm347_vm2, %v13695_v31  ;;  %v10409_v56 = vld [vmem:[%s14517_s19 + $0x3] ss:$0 sm:$0xff] }
 0xe97   :  { %11648 = vmatpush3.bf16.msra.mxu0 %v11647_v5  ;;  %11666 = vmatpush3.bf16.msra.mxu1 %v11665_v51  ;;  %v11695_v5 = vpack.c.bf16 %v10432_v42, %v10431_v53  ;;  %v10433_v51 = vld [vmem:[%s14520_s22 + $0x30] sm:$0xff] }
 0xe98   :  { %11649 = vmatprep.subr.bf16.mxu0 %v11908_v1  ;;  %11667 = vmatprep.subr.bf16.mxu1 %v11908_v1  ;;  %v11698_v11 = vpack.c.bf16 %v10434_v15, %v10433_v51 }
 0xe99   :  { %11209 = vmatprep.mubr.msk.f32.mxu0 %vm11903_vm5, %v11902_v45  ;;  %11242 = vmatprep.mubr.msk.f32.mxu1 %vm11903_vm5, %v11902_v45 }
 0xe9b   :  { %11651 = vmatpush3.bf16.msra.mxu0 %v11650_v22  ;;  %11669 = vmatpush3.bf16.msra.mxu1 %v11668_v21  ;;  %v10443_v22 = vld [vmem:[%s14520_s22 + $0x70] sm:$0xff]  ;;  %v10444_v21 = vld [vmem:[%s14520_s22 + $0x78] sm:$0xff] }
 0xe9c   :  { %11658 = vmatprep.subr.bf16.mxu0 %v11908_v1  ;;  %11676 = vmatprep.subr.bf16.mxu1 %v11908_v1  ;;  %v11710_v23 = vpack.c.bf16 %v10444_v21, %v10443_v22 }
 0xe9e   :  { %11210 = vmatmul.mubr.msk.f32.vlgmr.msra.gmra.mrb[44].mxu0 %vm347_vm2, %v13695_v31  ;;  %11243 = vmatmul.mubr.msk.f32.vlgmr.msra.gmra.mrb[38].mxu1 %vm347_vm2, %v13695_v31 }
 0xe9f   :  { %11660 = vmatpush3.bf16.msra.mxu0 %v11659_v29  ;;  %11678 = vmatpush3.bf16.msra.mxu1 %v11677_v28  ;;  %v10426_v28 = vld [vmem:[%s14519_s21] ss:$0 sm:$0xff] }
 0xea0   :  { %11661 = vmatprep.subr.bf16.mxu0 %v11908_v1  ;;  %11679 = vmatprep.subr.bf16.mxu1 %v11908_v1 }
 0xea1   :  { %11231 = vmatprep.mubr.msk.f32.mxu0 %vm11903_vm5, %v11902_v45  ;;  %11264 = vmatprep.mubr.msk.f32.mxu1 %vm11903_vm5, %v11902_v45 }
 0xea3   :  { %11663 = vmatpush3.bf16.msra.mxu0 %v11662_v41  ;;  %11681 = vmatpush3.bf16.msra.mxu1 %v11680_v61 }
 0xea4   :  { %11670 = vmatprep.subr.bf16.mxu0 %v11908_v1  ;;  %11688 = vmatprep.subr.bf16.mxu1 %v11908_v1 }
 0xea6   :  { %11232 = vmatmul.mubr.msk.f32.vlgmr.msra.gmra.mrb[46].mxu0 %vm347_vm2, %v13695_v31  ;;  %11265 = vmatmul.mubr.msk.f32.vlgmr.msra.gmra.mrb[40].mxu1 %vm347_vm2, %v13695_v31 }
 0xea7   :  { %11672 = vmatpush3.bf16.msra.mxu0 %v11671_v0  ;;  %11690 = vmatpush3.bf16.msra.mxu1 %v11689_v47 }
 0xea8   :  { %11673 = vmatprep.subr.bf16.mxu0 %v11908_v1  ;;  %11691 = vmatprep.subr.bf16.mxu1 %v11908_v1 }
 0xea9   :  { %11253 = vmatprep.mubr.msk.f32.mxu0 %vm11903_vm5, %v11902_v45  ;;  %11286 = vmatprep.mubr.msk.f32.mxu1 %vm11903_vm5, %v11902_v45 }
 0xeab   :  { %11675 = vmatpush3.bf16.msra.mxu0 %v11674_v27  ;;  %11693 = vmatpush3.bf16.msra.mxu1 %v11692_v6 }
 0xeac   :  { %11682 = vmatprep.subr.bf16.mxu0 %v11908_v1  ;;  %11700 = vmatprep.subr.bf16.mxu1 %v11908_v1 }
 0xeae   :  { %11254 = vmatmul.mubr.msk.f32.vlgmr.msra.gmra.mrb[48].mxu0 %vm347_vm2, %v13695_v31  ;;  %11287 = vmatmul.mubr.msk.f32.vlgmr.msra.gmra.mrb[42].mxu1 %vm347_vm2, %v13695_v31 }
 0xeaf   :  { %11684 = vmatpush3.bf16.msra.mxu0 %v11683_v7  ;;  %11702 = vmatpush3.bf16.msra.mxu1 %v11701_v24 }
 0xeb0   :  { %11685 = vmatprep.subr.bf16.mxu0 %v11908_v1  ;;  %11703 = vmatprep.subr.bf16.mxu1 %v11908_v1 }
 0xeb1   :  { %11275 = vmatprep.mubr.msk.f32.mxu0 %vm11903_vm5, %v11902_v45  ;;  %11308 = vmatprep.mubr.msk.f32.mxu1 %vm11903_vm5, %v11902_v45 }
 0xeb3   :  { %11687 = vmatpush3.bf16.msra.mxu0 %v11686_v12  ;;  %11705 = vmatpush3.bf16.msra.mxu1 %v11704_v37 }
 0xeb4   :  { %11694 = vmatprep.subr.bf16.mxu0 %v11908_v1  ;;  %11322 = vmatprep.subr.mxu1 %v11902_v45 }
 0xeb6   :  { %11276 = vmatmul.mubr.msk.f32.vlgmr.msra.gmra.mrb[50].mxu0 %vm347_vm2, %v13695_v31  ;;  %11309 = vmatmul.mubr.msk.f32.vlgmr.msra.gmra.mrb[44].mxu1 %vm347_vm2, %v13695_v31 }
 0xeb7   :  { %11696 = vmatpush3.bf16.msra.mxu0 %v11695_v5  ;;  %11297 = vmatprep.mubr.msk.f32.mxu0 %vm11903_vm5, %v11902_v45  ;;  %v10447_v5 = vld [vmem:[%s14521_s23 + $0x1] ss:$0 sm:$0xff] }
 0xeb8   :  { %11697 = vmatprep.subr.bf16.mxu0 %v11908_v1  ;;  %11324 = vmatprep.mubr.msk.f32.mxu1 %vm11903_vm5, %v11902_v45 }
 0xebb   :  { %11699 = vmatpush3.bf16.msra.mxu0 %v11698_v11 }
 0xebc   :  { %11706 = vmatprep.subr.bf16.mxu0 %v11908_v1 }
 0xebe   :  { %11298 = vmatmul.mubr.msk.f32.vlgmr.msra.gmra.mrb[52].mxu0 %vm347_vm2, %v13695_v31 }
 0xebf   :  { %11708 = vmatpush3.bf16.msra.mxu0 %v11707_v44  ;;  %11319 = vmatprep.mubr.msk.f32.mxu0 %vm11903_vm5, %v11902_v45 }
 0xec0   :  { %11709 = vmatprep.subr.bf16.mxu0 %v11908_v1 }
 0xec3   :  { %11711 = vmatpush3.bf16.msra.mxu0 %v11710_v23 }
 0xec4   :  { %11327 = vmatprep.subr.mxu0 %v11902_v45 }
 0xec6   :  { %11320 = vmatmul.mubr.msk.f32.vlgmr.msra.gmra.mrb[54].mxu0 %vm347_vm2, %v13695_v31 }
 0xec7   :  { %11329 = vmatprep.mubr.msk.f32.mxu0 %vm11903_vm5, %v11902_v45 }
 0xf69   :  { %v6057_v25 = vpop.f32.mrb[42].mxu0  ;;  %v6207_v50 = vpop.f32.mrb[36].mxu1 }
 0xf6a   :  { %v11200_v3 = vpop.f32.mrb[43].mxu0  ;;  %v11222_v29 = vpop.f32.mrb[37].mxu1  ;;  %v13871_v61 = vadd.f32 %v10406_v2, %v6057_v25  ;;  %v13888_v54 = vadd.f32 %v10408_v30, %v6207_v50 }
 0xf71   :  { %v6132_v43 = vpop.f32.mrb[44].mxu0  ;;  %v6388_v40 = vpop.f32.mrb[38].mxu1 }
 0xf72   :  { %v13867_v35 = vadd.f32 %v10426_v28, %v6388_v40  ;;  %v11211_v31 = vpop.f32.mrb[45].mxu0  ;;  %v11244_v41 = vpop.f32.mrb[39].mxu1  ;;  %v13912_v24 = vadd.f32 %v10407_v59, %v6132_v43 }
 0xf74   :  { %11323 = vmatpush3.xpose.msk.msra.mxu1 %vm2015_vm6, %v13867_v35 }
 0xf75   :  { %11332 = vmatprep.subr.mxu1 %v11902_v45 }
 0xf77   :  { %11325 = vmatmul.mubr.msk.f32.vlgmr.msra.gmra.mrb[46].mxu1 %vm2015_vm6, %v13871_v61 }
 0xf78   :  { %11334 = vmatprep.mubr.msk.f32.mxu1 %vm11903_vm5, %v11902_v45 }
 0xf79   :  { %v6282_v55 = vpop.f32.mrb[46].mxu0  ;;  %v6538_v13 = vpop.f32.mrb[40].mxu1 }
 0xf7a   :  { %v13884_v0 = vadd.f32 %v10428_v38, %v6538_v13  ;;  %v11233_v47 = vpop.f32.mrb[47].mxu0  ;;  %v11266_v63 = vpop.f32.mrb[41].mxu1  ;;  %v13932_v42 = vadd.f32 %v10409_v56, %v6282_v55 }
 0xf7c   :  { %11333 = vmatpush3.xpose.msk.msra.mxu1 %vm2015_vm6, %v13884_v0 }
 0xf7d   :  { %11342 = vmatprep.subr.mxu1 %v11902_v45 }
 0xf7f   :  { %11335 = vmatmul.mubr.msk.f32.vlgmr.msra.gmra.mrb[48].mxu1 %vm2015_vm6, %v13888_v54 }
 0xf80   :  { %11344 = vmatprep.mubr.msk.f32.mxu1 %vm11903_vm5, %v11902_v45 }
 0xf81   :  { %v6463_v27 = vpop.f32.mrb[48].mxu0  ;;  %v6719_v6 = vpop.f32.mrb[42].mxu1 }
 0xf82   :  { %v13904_v62 = vadd.f32 %v10427_v60, %v6463_v27  ;;  %v13906_v26 = vadd.f32 %v10446_v4, %v6719_v6  ;;  %v11255_v33 = vpop.f32.mrb[49].mxu0  ;;  %v11288_v7 = vpop.f32.mrb[43].mxu1 }
 0xf84   :  { %11328 = vmatpush3.xpose.msk.msra.mxu0 %vm2015_vm6, %v13904_v62  ;;  %11343 = vmatpush3.msk.msra.mxu1 %vm113_vm0, %v13906_v26 }
 0xf85   :  { %11337 = vmatprep.subr.mxu0 %v11902_v45  ;;  %11352 = vmatprep.subr.mxu1 %v11902_v45 }
 0xf87   :  { %11330 = vmatmul.mubr.msk.f32.vlgmr.msra.gmra.mrb[56].mxu0 %vm2015_vm6, %v13912_v24 }
 0xf88   :  { %11339 = vmatprep.mubr.msk.f32.mxu0 %vm11903_vm5, %v11902_v45 }
 0xf89   :  { %v6613_v57 = vpop.f32.mrb[50].mxu0  ;;  %v13923_v19 = vpop.f32.mrb[44].mxu1 }
 0xf8a   :  { %v13928_v12 = vadd.f32 %v10429_v18, %v6613_v57  ;;  %v11277_v37 = vpop.f32.mrb[51].mxu0  ;;  %v11310_v53 = vpop.f32.mrb[45].mxu1  ;;  %v10449_v18 = vld [vmem:[%s14521_s23 + $0x3] ss:$0 sm:$0xff] }
 0xf8c   :  { %11338 = vmatpush3.xpose.msk.msra.mxu0 %vm2015_vm6, %v13928_v12 }
 0xf8d   :  { %11347 = vmatprep.subr.mxu0 %v11902_v45 }
 0xf8f   :  { %11340 = vmatmul.mubr.msk.f32.vlgmr.msra.gmra.mrb[58].mxu0 %vm2015_vm6, %v13932_v42 }
 0xf90   :  { %11349 = vmatprep.mubr.msk.f32.mxu0 %vm11903_vm5, %v11902_v45 }
 0xf91   :  { %v6794_v51 = vpop.f32.mrb[52].mxu0 }
 0xf92   :  { %v13942_v15 = vadd.f32 %v10447_v5, %v6794_v51  ;;  %v11299_v11 = vpop.f32.mrb[53].mxu0 }
 0xf94   :  { %11348 = vmatpush3.msk.msra.mxu0 %vm113_vm0, %v13942_v15 }
 0xf95   :  { %11357 = vmatprep.subr.mxu0 %v11902_v45 }
 0xf99   :  { %v6944_v46 = vpop.f32.mrb[54].mxu0 }
 0xf9a   :  { %v11321_v17 = vpop.f32.mrb[55].mxu0  ;;  %v13956_v53 = vadd.f32 %v10449_v18, %v6944_v46  ;;  %v7935_v46 = vrot.slane %v13867_v35, 4  ;;  %v14032_v18 = vld [vmem:[%s14522_s24] sm:$0xff] }
0x104a   :  { %v7052_v44 = vpop.f32.mrb[46].mxu1 }
0x104b   :  { %v11326_v22 = vpop.f32.mrb[47].mxu1  ;;  %v7285_v47 = vsel %vm7284_vm3, %v7052_v44, -inf }
0x1052   :  { %v7204_v21 = vpop.f32.mrb[48].mxu1 }
0x1053   :  { %v11336_v23 = vpop.f32.mrb[49].mxu1  ;;  %v7291_v4 = vsel %vm7284_vm3, %v7204_v21, -inf }
0x1054   :  { %v8011_v23 = vrot.slane %v13904_v62, 4  ;;  %v8086_v62 = vrot.slane %v13888_v54, 4 }
0x105a   :  { %v7128_v25 = vpop.f32.mrb[56].mxu0 }
0x105b   :  { %v11331_v50 = vpop.f32.mrb[57].mxu0  ;;  %v7288_v3 = vsel %vm7284_vm3, %v7128_v25, -inf }
0x105c   :  { %7289 = vmax.xlane.f32.xlu0 %v7288_v3  ;;  %v8010_v50 = vrot.slane %v13912_v24, 4  ;;  %v8163_v3 = vrot.slane %v13928_v12, 4  ;;  %v8358_v24 = vrot.slane %v13942_v15, 4 }
0x1062   :  { %v7280_v29 = vpop.f32.mrb[58].mxu0 }
0x1063   :  { %v11341_v28 = vpop.f32.mrb[59].mxu0  ;;  %v7294_v43 = vsel %vm7284_vm3, %v7280_v29, -inf }
0x1064   :  { %7295 = vmax.xlane.f32.xlu1 %v7294_v43 }
0x10e9   :  { %v7290_v40 = vpop.xlane.xlu0 %7289 }
0x10ea   :  { %v7298_v2 = vsub.f32 %v7128_v25, %v7290_v40 }
0x10ec   :  { %v7303_v31 = vmul.f32 1.442695, %v7298_v2  ;;  %v14015_v2 = vld [vmem:[%s14522_s24 + $0x8] sm:$0xff] }
0x10ee   :  { %11837 = vpow2.f32 %v7303_v31 }
0x10f1   :  { %v7296_v41 = vpop.xlane.xlu1 %7295 }
0x10f2   :  { %v7300_v38 = vsub.f32 %v7280_v29, %v7296_v41 }
0x10f4   :  { %v7307_v55 = vmul.f32 1.442695, %v7300_v38 }
0x10f6   :  { %11839 = vpow2.f32 %v7307_v55 }
0x10f8   :  { %v11838_v13 = vpop.eup %11837 }
0x10f9   :  { %v7312_v30 = vsel %vm7284_vm3, %v11838_v13, 0.0 }
0x10fa   :  { %7313 = vadd.xlane.f32.xlu0 %v7312_v30 }
0x10fe   :  { %7286 = vmax.xlane.f32.xlu0 %v7285_v47 }
0x1100   :  { %v11840_v63 = vpop.eup %11839 }
0x1101   :  { %v7318_v60 = vsel %vm7284_vm3, %v11840_v63, 0.0 }
0x1102   :  { %7319 = vadd.xlane.f32.xlu1 %v7318_v60 }
0x1106   :  { %7292 = vmax.xlane.f32.xlu1 %v7291_v4 }
0x1187   :  { %v7314_v27 = vpop.xlane.xlu0 %7313 }
0x1188   :  { %11841 = vrcp.f32 %v7314_v27 }
0x118b   :  { %v7287_v6 = vpop.xlane.xlu0 %7286 }
0x118c   :  { %v7297_v59 = vsub.f32 %v7052_v44, %v7287_v6 }
0x118e   :  { %v7301_v33 = vmul.f32 1.442695, %v7297_v59 }
0x118f   :  { %v7320_v7 = vpop.xlane.xlu1 %7319 }
0x1190   :  { %11843 = vpow2.f32 %v7301_v33 }
0x1191   :  { %11845 = vrcp.f32 %v7320_v7 }
0x1192   :  { %v11842_v57 = vpop.eup %11841 }
0x1193   :  { %v7326_v56 = vmul.f32 %v11842_v57, %v11838_v13  ;;  %v7293_v37 = vpop.xlane.xlu1 %7292 }
0x1194   :  { %v7299_v5 = vsub.f32 %v7204_v21, %v7293_v37  ;;  %v7934_v21 = vrot.slane %v13871_v61, 4  ;;  %v8087_v61 = vrot.slane %v13884_v0, 4  ;;  %v8162_v0 = vrot.slane %v13932_v42, 4  ;;  %v10448_v42 = vld [vmem:[%s14521_s23 + $0x2] ss:$0 sm:$0xff] }
0x1195   :  { %11350 = vmatmul.mubr.msk.f32.vlgmr.msra.gmra.mrb[60].mxu0 %vm100_vm1, %v7326_v56  ;;  %v14004_v15 = vadd.f32 %v10448_v42, %v13923_v19  ;;  %v8282_v42 = vrot.slane %v13906_v26, 4 }
0x1196   :  { %v7305_v51 = vmul.f32 1.442695, %v7299_v5  ;;  %11358 = vmatpush3.msk.msra.mxu0 %vm113_vm0, %v13956_v53  ;;  %11359 = vmatprep.mubr.msk.f32.mxu0 %vm11903_vm5, %v11902_v45 }
0x1197   :  { %11382 = vmatprep.subr.mxu0 %v11902_v45 }
0x1198   :  { %11847 = vpow2.f32 %v7305_v51 }
0x119a   :  { %v11844_v11 = vpop.eup %11843 }
0x119b   :  { %v11846_v17 = vpop.eup %11845  ;;  %v7309_v44 = vsel %vm7284_vm3, %v11844_v11, 0.0 }
0x119c   :  { %v7328_v22 = vmul.f32 %v11846_v17, %v11840_v63  ;;  %7310 = vadd.xlane.f32.xlu0 %v7309_v44 }
0x119e   :  { %11360 = vmatmul.mubr.msk.f32.vlgmr.msra.gmra.mrb[62].mxu0 %vm100_vm1, %v7328_v22 }
0x119f   :  { %11383 = vmatpush3.xpose.msk.msra.mxu0 %vm2015_vm6, %v7935_v46  ;;  %11384 = vmatprep.mubr.msk.f32.mxu0 %vm11903_vm5, %v11902_v45 }
0x11a0   :  { %11387 = vmatprep.subr.mxu0 %v11902_v45 }
0x11a2   :  { %v11848_v25 = vpop.eup %11847  ;;  %11385 = vmatmul.mubr.msk.f32.vlgmr.msra.gmra.mrb[64].mxu0 %vm2015_vm6, %v7934_v21 }
0x11a3   :  { %11388 = vmatpush3.xpose.msk.msra.mxu0 %vm2015_vm6, %v8011_v23  ;;  %11389 = vmatprep.mubr.msk.f32.mxu0 %vm11903_vm5, %v11902_v45  ;;  %v7315_v35 = vsel %vm7284_vm3, %v11848_v25, 0.0 }
0x11a4   :  { %11392 = vmatprep.subr.mxu0 %v11902_v45  ;;  %7316 = vadd.xlane.f32.xlu1 %v7315_v35 }
0x11a6   :  { %11390 = vmatmul.mubr.msk.f32.vlgmr.msra.gmra.mrb[66].mxu0 %vm2015_vm6, %v8010_v50  ;;  %v14049_v50 = vld [vmem:[%s14522_s24 + $0x18] sm:$0xff] }
0x11a7   :  { %11393 = vmatpush3.xpose.msk.msra.mxu0 %vm2015_vm6, %v8087_v61  ;;  %11394 = vmatprep.mubr.msk.f32.mxu0 %vm11903_vm5, %v11902_v45 }
0x11a8   :  { %11397 = vmatprep.subr.mxu0 %v11902_v45 }
0x11aa   :  { %11395 = vmatmul.mubr.msk.f32.vlgmr.msra.gmra.mrb[68].mxu0 %vm2015_vm6, %v8086_v62 }
0x11ab   :  { %11398 = vmatpush3.xpose.msk.msra.mxu0 %vm2015_vm6, %v8163_v3  ;;  %11399 = vmatprep.mubr.msk.f32.mxu0 %vm11903_vm5, %v11902_v45 }
0x11ac   :  { %11407 = vmatprep.subr.mxu0 %v11902_v45 }
0x11ae   :  { %11400 = vmatmul.mubr.msk.f32.vlgmr.msra.gmra.mrb[70].mxu0 %vm2015_vm6, %v8162_v0 }
0x11af   :  { %11408 = vmatpush3.msk.msra.mxu0 %vm113_vm0, %v8358_v24  ;;  %11409 = vmatprep.mubr.msk.f32.mxu0 %vm11903_vm5, %v11902_v45 }
0x11b0   :  { %11417 = vmatprep.subr.mxu0 %v11902_v45 }
0x1229   :  { %v7311_v54 = vpop.xlane.xlu0 %7310 }
0x122a   :  { %11849 = vrcp.f32 %v7311_v54 }
0x1231   :  { %v7317_v12 = vpop.xlane.xlu1 %7316 }
0x1232   :  { %11851 = vrcp.f32 %v7317_v12 }
0x1234   :  { %v11850_v29 = vpop.eup %11849 }
0x1235   :  { %v7325_v28 = vmul.f32 %v11850_v29, %v11844_v11  ;;  %v14039_v11 = vld [vmem:[%s14522_s24 + $0x10] sm:$0xff] }
0x1237   :  { %11345 = vmatmul.mubr.msk.f32.vlgmr.msra.gmra.mrb[50].mxu1 %vm100_vm1, %v7325_v28 }
0x1238   :  { %11353 = vmatpush3.msk.msra.mxu1 %vm113_vm0, %v14004_v15  ;;  %11354 = vmatprep.mubr.msk.f32.mxu1 %vm11903_vm5, %v11902_v45 }
0x1239   :  { %11362 = vmatprep.subr.mxu1 %v11902_v45 }
0x123c   :  { %v11852_v43 = vpop.eup %11851 }
0x123d   :  { %v7327_v40 = vmul.f32 %v11852_v43, %v11848_v25 }
0x123f   :  { %11355 = vmatmul.mubr.msk.f32.vlgmr.msra.gmra.mrb[52].mxu1 %vm100_vm1, %v7327_v40 }
0x1240   :  { %11363 = vmatpush3.msra.mxu1 %v14015_v2  ;;  %11364 = vmatprep.mubr.msk.f32.mxu1 %vm11903_vm5, %v11902_v45 }
0x1241   :  { %11367 = vmatprep.subr.mxu1 %v11902_v45 }
0x1268   :  { %v7477_v19 = vpop.f32.mrb[60].mxu0 }
0x1269   :  { %v11351_v31 = vpop.f32.mrb[61].mxu0  ;;  %11365 = vmatmul.mubr.msk.f32.vlgmr.msra.gmra.mrb[54].mxu1 %vm2015_vm6, %v7477_v19 }
0x126a   :  { %11369 = vmatprep.mubr.msk.f32.mxu1 %vm11903_vm5, %v11902_v45  ;;  %11368 = vmatpush3.msra.mxu1 %v14032_v18 }
0x126b   :  { %11372 = vmatprep.subr.mxu1 %v11902_v45 }
0x1271   :  { %v7629_v41 = vpop.f32.mrb[62].mxu0 }
0x1272   :  { %v11361_v38 = vpop.f32.mrb[63].mxu0 }
0x1275   :  { %v8006_v55 = vpop.f32.mrb[64].mxu0 }
0x1276   :  { %v11386_v13 = vpop.f32.mrb[65].mxu0  ;;  %v8238_v30 = vsel %vm7284_vm3, %v8006_v55, -inf }
0x1277   :  { %8239 = vmax.xlane.f32.xlu1 %v8238_v30  ;;  %v8434_v13 = vrot.slane %v14004_v15, 4 }
0x1279   :  { %v8082_v47 = vpop.f32.mrb[66].mxu0 }
0x127a   :  { %v11391_v63 = vpop.f32.mrb[67].mxu0  ;;  %v8241_v60 = vsel %vm7284_vm3, %v8082_v47, -inf }
0x127b   :  { %8242 = vmax.xlane.f32.xlu0 %v8241_v60  ;;  %v8510_v63 = vrot.slane %v13956_v53, 4 }
0x127d   :  { %v8158_v4 = vpop.f32.mrb[68].mxu0 }
0x127e   :  { %v11396_v27 = vpop.f32.mrb[69].mxu0  ;;  %v8244_v6 = vsel %vm7284_vm3, %v8158_v4, -inf }
0x127f   :  { %8245 = vmax.xlane.f32.xlu0 %v8244_v6 }
0x1281   :  { %v8234_v59 = vpop.f32.mrb[70].mxu0 }
0x1282   :  { %v11401_v33 = vpop.f32.mrb[71].mxu0  ;;  %v8247_v7 = vsel %vm7284_vm3, %v8234_v59, -inf }
0x1283   :  { %8248 = vmax.xlane.f32.xlu1 %v8247_v7 }
0x1304   :  { %v8240_v57 = vpop.xlane.xlu1 %8239 }
0x1305   :  { %v8250_v56 = vsub.f32 %v8006_v55, %v8240_v57 }
0x1307   :  { %v8254_v37 = vmul.f32 1.442695, %v8250_v56 }
0x1308   :  { %v8243_v5 = vpop.xlane.xlu0 %8242 }
0x1309   :  { %11853 = vpow2.f32 %v8254_v37  ;;  %v8251_v51 = vsub.f32 %v8082_v47, %v8243_v5 }
0x130a   :  { %v7401_v17 = vpop.f32.mrb[50].mxu1 }
0x130b   :  { %v8256_v44 = vmul.f32 1.442695, %v8251_v51  ;;  %v11346_v22 = vpop.f32.mrb[51].mxu1  ;;  %11370 = vmatmul.mubr.msk.f32.vlgmr.msra.gmra.mrb[54].mxu1 %vm2015_vm6, %v7401_v17 }
0x130c   :  { %v8246_v46 = vpop.xlane.xlu0 %8245  ;;  %11373 = vmatpush3.msra.mxu1 %v14039_v11  ;;  %11374 = vmatprep.mubr.msk.f32.mxu1 %vm11903_vm5, %v11902_v45 }
0x130d   :  { %11855 = vpow2.f32 %v8256_v44  ;;  %v8252_v21 = vsub.f32 %v8158_v4, %v8246_v46  ;;  %11377 = vmatprep.subr.mxu1 %v11902_v45 }
0x130f   :  { %v8258_v23 = vmul.f32 1.442695, %v8252_v21 }
0x1310   :  { %v8249_v25 = vpop.xlane.xlu1 %8248 }
0x1311   :  { %11857 = vpow2.f32 %v8258_v23  ;;  %v8253_v35 = vsub.f32 %v8234_v59, %v8249_v25 }
0x1312   :  { %v7553_v61 = vpop.f32.mrb[52].mxu1 }
0x1313   :  { %v11854_v62 = vpop.eup %11853  ;;  %v8260_v3 = vmul.f32 1.442695, %v8253_v35  ;;  %v11356_v0 = vpop.f32.mrb[53].mxu1  ;;  %11375 = vmatmul.mubr.msk.f32.vlgmr.msra.gmra.mrb[54].mxu1 %vm2015_vm6, %v7553_v61 }
0x1314   :  { %v8262_v24 = vsel %vm7284_vm3, %v11854_v62, 0.0  ;;  %11378 = vmatpush3.msra.mxu1 %v14049_v50  ;;  %11379 = vmatprep.mubr.msk.f32.mxu1 %vm11903_vm5, %v11902_v45 }
0x1315   :  { %11859 = vpow2.f32 %v8260_v3  ;;  %8263 = vadd.xlane.f32.xlu1 %v8262_v24  ;;  %11402 = vmatprep.subr.mxu1 %v11902_v45 }
0x1317   :  { %v11856_v54 = vpop.eup %11855 }
0x1318   :  { %v8265_v12 = vsel %vm7284_vm3, %v11856_v54, 0.0 }
0x1319   :  { %8266 = vadd.xlane.f32.xlu0 %v8265_v12 }
0x131b   :  { %v11858_v29 = vpop.eup %11857  ;;  %11380 = vmatmul.mubr.msk.f32.vlgmr.msra.gmra.mrb[54].mxu1 %vm2015_vm6, %v7629_v41 }
0x131c   :  { %11403 = vmatpush3.msk.msra.mxu1 %vm113_vm0, %v8282_v42  ;;  %v8268_v28 = vsel %vm7284_vm3, %v11858_v29, 0.0  ;;  %11404 = vmatprep.mubr.msk.f32.mxu1 %vm11903_vm5, %v11902_v45 }
0x131d   :  { %8269 = vadd.xlane.f32.xlu0 %v8268_v28  ;;  %11412 = vmatprep.subr.mxu1 %v11902_v45 }
0x131f   :  { %v11860_v43 = vpop.eup %11859 }
0x1320   :  { %v8271_v40 = vsel %vm7284_vm3, %v11860_v43, 0.0 }
0x1321   :  { %8272 = vadd.xlane.f32.xlu1 %v8271_v40 }
0x13a2   :  { %v8264_v19 = vpop.xlane.xlu1 %8263 }
0x13a3   :  { %11861 = vrcp.f32 %v8264_v19 }
0x13a6   :  { %v8267_v26 = vpop.xlane.xlu0 %8266 }
0x13a7   :  { %11863 = vrcp.f32 %v8267_v26 }
0x13aa   :  { %v8270_v31 = vpop.xlane.xlu0 %8269 }
0x13ab   :  { %11865 = vrcp.f32 %v8270_v31 }
0x13ad   :  { %v11862_v41 = vpop.eup %11861 }
0x13ae   :  { %v8278_v38 = vmul.f32 %v11862_v41, %v11854_v62  ;;  %v8273_v55 = vpop.xlane.xlu1 %8272 }
0x13af   :  { %11867 = vrcp.f32 %v8273_v55 }
0x13b0   :  { %11405 = vmatmul.mubr.msk.f32.vlgmr.msra.gmra.mrb[56].mxu1 %vm100_vm1, %v8278_v38 }
0x13b1   :  { %v11864_v30 = vpop.eup %11863  ;;  %11413 = vmatpush3.msk.msra.mxu1 %vm113_vm0, %v8434_v13  ;;  %11414 = vmatprep.mubr.msk.f32.mxu1 %vm11903_vm5, %v11902_v45 }
0x13b2   :  { %v8279_v47 = vmul.f32 %v11864_v30, %v11856_v54  ;;  %11422 = vmatprep.subr.mxu1 %v11902_v45 }
0x13b4   :  { %11410 = vmatmul.mubr.msk.f32.vlgmr.msra.gmra.mrb[72].mxu0 %vm100_vm1, %v8279_v47 }
0x13b5   :  { %v11866_v60 = vpop.eup %11865  ;;  %11418 = vmatpush3.msk.msra.mxu0 %vm113_vm0, %v8510_v63  ;;  %11419 = vmatprep.mubr.msk.f32.mxu0 %vm11903_vm5, %v11902_v45 }
0x13b6   :  { %v8280_v15 = vmul.f32 %v11866_v60, %v11858_v29  ;;  %11712 = vmatprep.subr.bf16.mxu0 %v11908_v1 }
0x13b8   :  { %11415 = vmatmul.mubr.msk.f32.vlgmr.msra.gmra.mrb[58].mxu1 %vm100_vm1, %v8280_v15 }
0x13b9   :  { %v11868_v4 = vpop.eup %11867  ;;  %11423 = vmatpush3.msra.mxu1 %v14015_v2  ;;  %11424 = vmatprep.mubr.msk.f32.mxu1 %vm11903_vm5, %v11902_v45 }
0x13ba   :  { %v8281_v53 = vmul.f32 %v11868_v4, %v11860_v43  ;;  %11427 = vmatprep.subr.mxu1 %v11902_v45 }
0x13bc   :  { %11420 = vmatmul.mubr.msk.f32.vlgmr.msra.gmra.mrb[74].mxu0 %vm100_vm1, %v8281_v53 }
0x13bd   :  { %11450 = vmatprep.mubr.msk.f32.mxu0 %vm11903_vm5, %v11902_v45 }
0x13ee   :  { %v7929_v27 = vpop.f32.mrb[54].mxu1 }
0x13ef   :  { %v11381_v6 = vpop.f32.mrb[55].mxu1 }
0x1483   :  { %v8354_v59 = vpop.f32.mrb[56].mxu1 }
0x1484   :  { %v11406_v33 = vpop.f32.mrb[57].mxu1 }
0x1487   :  { %v8430_v7 = vpop.f32.mrb[72].mxu0 }
0x1488   :  { %v11411_v57 = vpop.f32.mrb[73].mxu0  ;;  %11425 = vmatmul.mubr.msk.f32.vlgmr.msra.gmra.mrb[60].mxu1 %vm2015_vm6, %v8430_v7 }
0x1489   :  { %11428 = vmatpush3.msra.mxu1 %v14032_v18  ;;  %11429 = vmatprep.mubr.msk.f32.mxu1 %vm11903_vm5, %v11902_v45  ;;  %v10496_v18 = vld [vmem:[%s14559_s12 + $0x8] ss:$0 sm:$0xff] }
0x148a   :  { %11432 = vmatprep.subr.mxu1 %v11902_v45  ;;  %v8932_v51 = vcombine.high %v10496_v18, %v10496_v18 }
0x148b   :  { %v8506_v2 = vpop.f32.mrb[58].mxu1 }
0x148c   :  { %v11416_v56 = vpop.f32.mrb[59].mxu1  ;;  %v8946_v22 = vrot.slane %v8932_v51, %v12209_v49 }
0x148e   :  { %v8948_v61 = vcombine.high %v8946_v22, %v8946_v22  ;;  %v8951_v12 = vrot.slane %v8946_v22, 1 }
0x148f   :  { %v8582_v37 = vpop.f32.mrb[74].mxu0 }
0x1490   :  { %v11421_v5 = vpop.f32.mrb[75].mxu0  ;;  %11430 = vmatmul.mubr.msk.f32.vlgmr.msra.gmra.mrb[60].mxu1 %vm2015_vm6, %v8354_v59  ;;  %v8952_v31 = vrot.slane %v8948_v61, 1 }
0x1491   :  { %11433 = vmatpush3.msra.mxu1 %v14039_v11  ;;  %11434 = vmatprep.mubr.msk.f32.mxu1 %vm11903_vm5, %v11902_v45  ;;  %v8939_v11 = vrot.slane %v10496_v18, %v12209_v49 }
0x1492   :  { %11437 = vmatprep.subr.mxu1 %v11902_v45 }
0x1493   :  { %v8947_v23 = vcombine.high %v8939_v11, %v8939_v11 }
0x1495   :  { %v8950_v54 = vrot.slane %v8947_v23, 1 }
0x1498   :  { %11435 = vmatmul.mubr.msk.f32.vlgmr.msra.gmra.mrb[60].mxu1 %vm2015_vm6, %v8506_v2 }
0x1499   :  { %11438 = vmatpush3.msra.mxu1 %v14049_v50  ;;  %11439 = vmatprep.mubr.msk.f32.mxu1 %vm11903_vm5, %v11902_v45  ;;  %v8949_v50 = vrot.slane %v8939_v11, 1 }
0x14a0   :  { %11440 = vmatmul.mubr.msk.f32.vlgmr.msra.gmra.mrb[60].mxu1 %vm2015_vm6, %v8582_v37 }
0x1573   :  { %v8879_v17 = vpop.f32.mrb[60].mxu1 }
0x1574   :  { %v8885_v44 = vrot.slane %v8879_v17, 4  ;;  %v11441_v46 = vpop.f32.mrb[61].mxu1 }
0x1576   :  { %v8887_v21 = vsel %vm113_vm0, %v7929_v27, %v8885_v44  ;;  %vm10174_vm0 = vcmask 257024  }
0x1577   :  { %v8889_v25 = vcombine.high %v8887_v21, %v8887_v21  ;;  %v8896_v35 = vrot.slane %v8887_v21, %v12209_v49 }
0x1579   :  { %v8903_v62 = vrot.slane %v8889_v25, %v12209_v49  ;;  %v8904_v3 = vcombine.high %v8896_v35, %v8896_v35  ;;  %v8906_v0 = vrot.slane %v8896_v35, 1  ;;  %v8918_v24 = vadd.f32 %v8896_v35, %v13632_v20 }
0x157b   :  { %v8905_v42 = vcombine.high %v8903_v62, %v8903_v62  ;;  %v8907_v29 = vrot.slane %v8904_v3, 1  ;;  %v8908_v28 = vrot.slane %v8903_v62, 1  ;;  %v8919_v43 = vadd.f32 %v8906_v0, %v13634_v36 }
0x157c   :  { %v8920_v40 = vadd.f32 %v8904_v3, %v13636_v8  ;;  %v8922_v19 = vadd.f32 %v8903_v62, %v13638_v39  ;;  %v8961_v26 = vadd.f32 %v8939_v11, %v8918_v24 }
0x157d   :  { %v8921_v41 = vadd.f32 %v8907_v29, %v13642_v16  ;;  %v8962_v38 = vadd.f32 %v8949_v50, %v8919_v43  ;;  %v8909_v55 = vrot.slane %v8905_v42, 1  ;;  %v8923_v13 = vadd.f32 %v8908_v28, %v13640_v48 }
0x157e   :  { %v8963_v20 = vadd.f32 %v8947_v23, %v8920_v40  ;;  %v8965_v30 = vadd.f32 %v8946_v22, %v8922_v19  ;;  %v8982_v47 = vrot.slane %v8961_v26, %v12214_v58  ;;  %v8924_v63 = vadd.f32 %v8905_v42, %v13650_v14 }
0x157f   :  { %v8964_v60 = vadd.f32 %v8950_v54, %v8921_v41  ;;  %v8986_v36 = vrot.slane %v8962_v38, %v12214_v58  ;;  %v8925_v8 = vadd.f32 %v8909_v55, %v13652_v10  ;;  %v8966_v39 = vadd.f32 %v8951_v12, %v8923_v13 }
0x1580   :  { %v8990_v15 = vrot.slane %v8963_v20, %v12214_v58  ;;  %v8967_v4 = vadd.f32 %v8948_v61, %v8924_v63  ;;  %v8998_v27 = vrot.slane %v8965_v30, %v12214_v58 }
0x1581   :  { %v8968_v16 = vadd.f32 %v8952_v31, %v8925_v8  ;;  %v8994_v53 = vrot.slane %v8964_v60, %v12214_v58  ;;  %v9011_v48 = vsel %vm929_vm9, %v8986_v36, %v8982_v47  ;;  %v9002_v14 = vrot.slane %v8966_v39, %v12214_v58 }
0x1582   :  { %v9012_v6 = vsel %vm931_vm10, %v8990_v15, %v9011_v48  ;;  %v9006_v33 = vrot.slane %v8967_v4, %v12214_v58  ;;  %v9269_v48 = vld [vmem:[%s14523_s25 + $0x10] sm:$0xff] }
0x1583   :  { %v9013_v59 = vsel %vm933_vm11, %v8994_v53, %v9012_v6  ;;  %v9010_v7 = vrot.slane %v8968_v16, %v12214_v58  ;;  %v9268_v53 = vld [vmem:[%s14523_s25 + $0x8] sm:$0xff]  ;;  %v9270_v6 = vld [vmem:[%s14523_s25 + $0x18] sm:$0xff] }
0x1584   :  { %v9014_v10 = vsel %vm935_vm12, %v8998_v27, %v9013_v59 }
0x1585   :  { %v9015_v57 = vsel %vm937_vm13, %v9002_v14, %v9014_v10  ;;  %v11716_v14 = vpack.c.bf16 %v9270_v6, %v9269_v48  ;;  %v10497_v10 = vld [vmem:[%s14559_s12 + $0x9] ss:$0 sm:$0xff] }
0x1586   :  { %v9016_v2 = vsel %vm939_vm14, %v9006_v33, %v9015_v57  ;;  %v9188_v57 = vcombine.high %v10497_v10, %v10497_v10 }
0x1587   :  { %v9017_v56 = vsel %vm941_vm15, %v9010_v7, %v9016_v2  ;;  %v10498_v2 = vld [vmem:[%s14559_s12 + $0xa] ss:$0 sm:$0xff] }
0x1588   :  { %v9019_v37 = vsel %vm347_vm2, %v9017_v56, 0.0  ;;  %v9195_v56 = vrot.slane %v10497_v10, %v12209_v49 }
0x1589   :  { %9020 = vadd.xlane.f32.xlu0 %v9019_v37  ;;  %v9202_v37 = vrot.slane %v9188_v57, %v12209_v49 }
0x1616   :  { %v9021_v5 = vpop.xlane.xlu0 %9020 }
0x1617   :  { %v9022_v18 = vmul.f32 0.03125, %v9021_v5  ;;  %v9230_v5 = vcombine.high %v10498_v2, %v10498_v2 }
0x1619   :  { %v9030_v51 = vrot.slane %v9022_v18, %v12767_v52  ;;  %v9037_v11 = vrot.slane %v9022_v18, %v12770_v32  ;;  %v9044_v17 = vrot.slane %v9022_v18, %v12773_v34  ;;  %v9051_v44 = vrot.slane %v9022_v18, %v12776_v9 }
0x161a   :  { %v9237_v18 = vrot.slane %v10498_v2, %v12209_v49 }
0x161b   :  { %v9052_v22 = vrot.slane %v9030_v51, 1  ;;  %v9053_v46 = vrot.slane %v9037_v11, 1  ;;  %v9054_v21 = vrot.slane %v9044_v17, 1  ;;  %v9055_v23 = vrot.slane %v9051_v44, 1 }
0x161c   :  { %v14137_v25 = vsub.f32 %v8961_v26, %v9030_v51  ;;  %v14139_v35 = vsub.f32 %v8963_v20, %v9037_v11  ;;  %v14141_v50 = vsub.f32 %v8965_v30, %v9044_v17  ;;  %v14149_v0 = vsub.f32 %v8967_v4, %v9051_v44 }
0x161d   :  { %v14143_v61 = vsub.f32 %v8962_v38, %v9052_v22  ;;  %v14145_v62 = vsub.f32 %v8964_v60, %v9053_v46  ;;  %v14147_v3 = vsub.f32 %v8966_v39, %v9054_v21  ;;  %v14159_v29 = vsub.f32 %v8968_v16, %v9055_v23  ;;  %v9267_v16 = vld [vmem:[%s14523_s25] sm:$0xff] }
0x161e   :  { %v9072_v24 = vmul.f32 %v14137_v25, %v14137_v25  ;;  %v9074_v54 = vmul.f32 %v14139_v35, %v14139_v35  ;;  %v9076_v28 = vmul.f32 %v14141_v50, %v14141_v50  ;;  %v9078_v31 = vmul.f32 %v14149_v0, %v14149_v0 }
0x161f   :  { %v9073_v12 = vmul.f32 %v14143_v61, %v14143_v61  ;;  %v9075_v42 = vmul.f32 %v14145_v62, %v14145_v62  ;;  %v9077_v19 = vmul.f32 %v14147_v3, %v14147_v3  ;;  %v9079_v41 = vmul.f32 %v14159_v29, %v14159_v29 }
0x1620   :  { %v9091_v43 = vrot.slane %v9072_v24, %v12214_v58  ;;  %v9099_v26 = vrot.slane %v9074_v54, %v12214_v58  ;;  %v9107_v13 = vrot.slane %v9076_v28, %v12214_v58  ;;  %v9115_v63 = vrot.slane %v9078_v31, %v12214_v58 }
0x1621   :  { %v9095_v40 = vrot.slane %v9073_v12, %v12214_v58  ;;  %v9103_v38 = vrot.slane %v9075_v42, %v12214_v58  ;;  %v9111_v30 = vrot.slane %v9077_v19, %v12214_v58  ;;  %v9119_v36 = vrot.slane %v9079_v41, %v12214_v58 }
0x1622   :  { %v11713_v27 = vpack.c.bf16 %v9268_v53, %v9267_v16  ;;  %v9203_v51 = vcombine.high %v9195_v56, %v9195_v56  ;;  %v9204_v11 = vcombine.high %v9202_v37, %v9202_v37  ;;  %v9244_v17 = vrot.slane %v9230_v5, %v12209_v49 }
0x1623   :  { %v9120_v55 = vsel %vm929_vm9, %v9095_v40, %v9091_v43  ;;  %v9245_v44 = vcombine.high %v9237_v18, %v9237_v18  ;;  %v9205_v46 = vrot.slane %v9195_v56, 1  ;;  %v9207_v23 = vrot.slane %v9202_v37, 1 }
0x1624   :  { %v9121_v20 = vsel %vm931_vm10, %v9099_v26, %v9120_v55  ;;  %11714 = vmatpush3.bf16.msra.mxu0 %v11713_v27  ;;  %v9206_v21 = vrot.slane %v9203_v51, 1  ;;  %v9208_v28 = vrot.slane %v9204_v11, 1  ;;  %v9246_v43 = vcombine.high %v9244_v17, %v9244_v17 }
0x1625   :  { %v9122_v47 = vsel %vm933_vm11, %v9103_v38, %v9121_v20  ;;  %11715 = vmatprep.subr.bf16.mxu0 %v11908_v1  ;;  %v9247_v40 = vrot.slane %v9237_v18, 1  ;;  %v9248_v19 = vrot.slane %v9245_v44, 1  ;;  %v9249_v53 = vrot.slane %v9244_v17, 1 }
0x1626   :  { %v9123_v60 = vsel %vm935_vm12, %v9107_v13, %v9122_v47 }
0x1627   :  { %v9124_v8 = vsel %vm937_vm13, %v9111_v30, %v9123_v60 }
0x1628   :  { %v9125_v39 = vsel %vm939_vm14, %v9115_v63, %v9124_v8  ;;  %11717 = vmatpush3.bf16.msra.mxu0 %v11716_v14 }
0x1629   :  { %v9126_v15 = vsel %vm941_vm15, %v9119_v36, %v9125_v39  ;;  %11718 = vmatprep.subr.bf16.mxu0 %v11908_v1 }
0x162a   :  { %v9128_v4 = vsel %vm347_vm2, %v9126_v15, 0.0 }
0x162b   :  { %9129 = vadd.xlane.f32.xlu1 %v9128_v4 }
0x16b8   :  { %v9130_v59 = vpop.xlane.xlu1 %9129 }
0x16b9   :  { %v9131_v33 = vmul.f32 0.03125, %v9130_v59 }
0x16bb   :  { %v9132_v7 = vadd.f32 1e-05, %v9131_v33 }
0x16bd   :  { %11869 = vrsqrt.f32 %v9132_v7 }
0x16c7   :  { %v11870_v22 = vpop.eup %11869 }
0x16c8   :  { %v9141_v24 = vrot.slane %v11870_v22, %v12767_v52  ;;  %v9148_v54 = vrot.slane %v11870_v22, %v12770_v32  ;;  %v9155_v12 = vrot.slane %v11870_v22, %v12773_v34  ;;  %v9162_v42 = vrot.slane %v11870_v22, %v12776_v9 }
0x16ca   :  { %v9163_v26 = vrot.slane %v9141_v24, 1  ;;  %v9164_v31 = vrot.slane %v9148_v54, 1  ;;  %v9165_v41 = vrot.slane %v9155_v12, 1  ;;  %v9166_v38 = vrot.slane %v9162_v42, 1 }
0x16cb   :  { %v9175_v55 = vmul.f32 %v9141_v24, %v14137_v25  ;;  %v9177_v13 = vmul.f32 %v9148_v54, %v14139_v35  ;;  %v9179_v20 = vmul.f32 %v9155_v12, %v14141_v50  ;;  %v9181_v30 = vmul.f32 %v9162_v42, %v14149_v0  ;;  %v9409_v54 = vld [vmem:[%s14525_s27 + $0x18] sm:$0xff]  ;;  %v9411_v42 = vld [vmem:[%s14525_s27 + $0x28] sm:$0xff] }
0x16cc   :  { %v9176_v47 = vmul.f32 %v9163_v26, %v14143_v61  ;;  %v9178_v63 = vmul.f32 %v9164_v31, %v14145_v62  ;;  %v9180_v60 = vmul.f32 %v9165_v41, %v14147_v3  ;;  %v9182_v36 = vmul.f32 %v9166_v38, %v14159_v29  ;;  %v10499_v26 = vld [vmem:[%s14524_s26] ss:$0 sm:$0xff] }
0x16cd   :  { %v9217_v8 = vmul.f32 %v9195_v56, %v9175_v55  ;;  %v9219_v39 = vmul.f32 %v9203_v51, %v9177_v13  ;;  %v9221_v15 = vmul.f32 %v9202_v37, %v9179_v20  ;;  %v9223_v35 = vmul.f32 %v9204_v11, %v9181_v30 }
0x16ce   :  { %v9218_v4 = vmul.f32 %v9205_v46, %v9176_v47  ;;  %v9220_v16 = vmul.f32 %v9206_v21, %v9178_v63  ;;  %v9222_v25 = vmul.f32 %v9207_v23, %v9180_v60  ;;  %v9224_v0 = vmul.f32 %v9208_v28, %v9182_v36  ;;  %v9406_v46 = vld [vmem:[%s14525_s27] sm:$0xff]  ;;  %v9407_v21 = vld [vmem:[%s14525_s27 + $0x8] sm:$0xff]  ;;  %v9408_v23 = vld [vmem:[%s14525_s27 + $0x10] sm:$0xff] }
0x16cf   :  { %v14221_v48 = vadd.f32 %v9237_v18, %v9217_v8  ;;  %v14223_v50 = vadd.f32 %v9245_v44, %v9219_v39  ;;  %v9250_v61 = vrot.slane %v9246_v43, 1  ;;  %v14229_v3 = vadd.f32 %v9244_v17, %v9221_v15 }
0x16d0   :  { %v14225_v27 = vadd.f32 %v9247_v40, %v9218_v4  ;;  %v14227_v62 = vadd.f32 %v9248_v19, %v9220_v16  ;;  %v14231_v29 = vadd.f32 %v9249_v53, %v9222_v25  ;;  %v14237_v59 = vadd.f32 %v9246_v43, %v9223_v35  ;;  %v9412_v43 = vld [vmem:[%s14525_s27 + $0x30] sm:$0xff]  ;;  %v9413_v40 = vld [vmem:[%s14525_s27 + $0x38] sm:$0xff] }
0x16d1   :  { %v9289_v6 = vrot.slane %v14221_v48, %v12214_v58  ;;  %v9297_v33 = vrot.slane %v14223_v50, %v12214_v58  ;;  %v14241_v10 = vadd.f32 %v9250_v61, %v9224_v0  ;;  %v9305_v2 = vrot.slane %v14229_v3, %v12214_v58 }
0x16d2   :  { %v9293_v14 = vrot.slane %v14225_v27, %v12214_v58  ;;  %v9301_v7 = vrot.slane %v14227_v62, %v12214_v58  ;;  %v9309_v37 = vrot.slane %v14231_v29, %v12214_v58  ;;  %v9313_v18 = vrot.slane %v14237_v59, %v12214_v58 }
0x16d3   :  { %v9317_v11 = vrot.slane %v14241_v10, %v12214_v58  ;;  %v11719_v24 = vpack.c.bf16 %v9407_v21, %v9406_v46  ;;  %v11722_v12 = vpack.c.bf16 %v9409_v54, %v9408_v23  ;;  %v11728_v19 = vpack.c.bf16 %v9413_v40, %v9412_v43 }
0x16d4   :  { %v9318_v57 = vsel %vm929_vm9, %v9293_v14, %v9289_v6 }
0x16d5   :  { %v9319_v56 = vsel %vm931_vm10, %v9297_v33, %v9318_v57 }
0x16d6   :  { %v9320_v5 = vsel %vm933_vm11, %v9301_v7, %v9319_v56 }
0x16d7   :  { %v9321_v51 = vsel %vm935_vm12, %v9305_v2, %v9320_v5 }
0x16d8   :  { %v9322_v17 = vsel %vm937_vm13, %v9309_v37, %v9321_v51 }
0x16d9   :  { %v9323_v44 = vsel %vm939_vm14, %v9313_v18, %v9322_v17 }
0x16da   :  { %v9324_v22 = vsel %vm941_vm15, %v9317_v11, %v9323_v44 }
0x16db   :  { %11451 = vmatmul.mubr.msk.f32.vlgmr.msra.gmra.mrb[76].mxu0 %vm347_vm2, %v9324_v22 }
0x16dc   :  { %11469 = vmatprep.mubr.msk.f32.mxu0 %vm11903_vm5, %v11902_v45  ;;  %11720 = vmatpush3.bf16.msra.mxu0 %v11719_v24  ;;  %v9410_v45 = vld [vmem:[%s14525_s27 + $0x20] sm:$0xff] }
0x16dd   :  { %11721 = vmatprep.subr.bf16.mxu0 %v11908_v1  ;;  %v11725_v28 = vpack.c.bf16 %v9411_v42, %v9410_v45 }
0x16e0   :  { %11723 = vmatpush3.bf16.msra.mxu0 %v11722_v12 }
0x16e1   :  { %11724 = vmatprep.subr.bf16.mxu0 %v11908_v1 }
0x16e4   :  { %11726 = vmatpush3.bf16.msra.mxu0 %v11725_v28 }
0x16e5   :  { %11727 = vmatprep.subr.bf16.mxu0 %v11908_v1  ;;  %v10501_v1 = vld [vmem:[%s14559_s12 + $0xb] ss:$0 sm:$0xff] }
0x16e8   :  { %11729 = vmatpush3.bf16.msra.mxu0 %v11728_v19 }
0x17ae   :  { %v9393_v31 = vpop.f32.mrb[76].mxu0 }
0x17af   :  { %v9394_v41 = vadd.f32 %v10499_v26, %v9393_v31  ;;  %v11452_v38 = vpop.f32.mrb[77].mxu0 }
0x17b1   :  { %v9398_v55 = vmul.f32 0.044715, %v9394_v41  ;;  %v9397_v60 = vmul.f32 0.5, %v9394_v41 }
0x17b3   :  { %v9399_v13 = vmul.f32 %v9398_v55, %v9394_v41 }
0x17b5   :  { %v9400_v20 = vmul.f32 %v9399_v13, %v9394_v41 }
0x17b7   :  { %v9401_v30 = vadd.f32 %v9400_v20, %v9394_v41 }
0x17b9   :  { %v9402_v47 = vmul.f32 0.7978846, %v9401_v30 }
0x17bb   :  { %11871 = vtanh.f32 %v9402_v47 }
0x17c5   :  { %v11872_v63 = vpop.eup %11871 }
0x17c6   :  { %v9404_v36 = vadd.f32 1.0, %v11872_v63 }
0x17c8   :  { %v9405_v8 = vmul.f32 %v9404_v36, %v9397_v60 }
0x17ca   :  { %11470 = vmatmul.mubr.msk.f32.vlgmr.msra.gmra.mrb[78].mxu0 %vm4764_vm7, %v9405_v8 }
0x189d   :  { %v9488_v39 = vpop.f32.mrb[78].mxu0 }
0x189e   :  { %v9489_v15 = vadd.f32 %v10501_v1, %v9488_v39  ;;  %v11471_v4 = vpop.f32.mrb[79].mxu0 }
0x18a0   :  { %v9493_v16 = vcombine.high %v9489_v15, %v9489_v15  ;;  %v9500_v25 = vrot.slane %v9489_v15, %v12209_v49 }
0x18a2   :  { %v9507_v53 = vrot.slane %v9493_v16, %v12209_v49  ;;  %v9508_v35 = vcombine.high %v9500_v25, %v9500_v25  ;;  %v9510_v0 = vrot.slane %v9500_v25, 1  ;;  %v9522_v61 = vadd.f32 %v9500_v25, %v14221_v48 }
0x18a4   :  { %v9509_v6 = vcombine.high %v9507_v53, %v9507_v53  ;;  %v9511_v14 = vrot.slane %v9508_v35, 1  ;;  %v9512_v33 = vrot.slane %v9507_v53, 1  ;;  %v9523_v7 = vadd.f32 %v9510_v0, %v14225_v27 }
0x18a5   :  { %v9524_v57 = vadd.f32 %v9508_v35, %v14223_v50  ;;  %v9526_v2 = vadd.f32 %v9507_v53, %v14229_v3  ;;  %v9543_v56 = vrot.slane %v9522_v61, %v12214_v58 }
0x18a6   :  { %v9525_v37 = vadd.f32 %v9511_v14, %v14227_v62  ;;  %v9527_v5 = vadd.f32 %v9512_v33, %v14231_v29  ;;  %v9547_v18 = vrot.slane %v9523_v7, %v12214_v58  ;;  %v9513_v51 = vrot.slane %v9509_v6, 1 }
0x18a7   :  { %v9551_v48 = vrot.slane %v9524_v57, %v12214_v58  ;;  %v9528_v11 = vadd.f32 %v9509_v6, %v14237_v59  ;;  %v9559_v3 = vrot.slane %v9526_v2, %v12214_v58 }
0x18a8   :  { %v9555_v17 = vrot.slane %v9525_v37, %v12214_v58  ;;  %v9572_v27 = vsel %vm929_vm9, %v9547_v18, %v9543_v56  ;;  %v9529_v50 = vadd.f32 %v9513_v51, %v14241_v10  ;;  %v9563_v62 = vrot.slane %v9527_v5, %v12214_v58 }
0x18a9   :  { %v9573_v44 = vsel %vm931_vm10, %v9551_v48, %v9572_v27  ;;  %v9567_v22 = vrot.slane %v9528_v11, %v12214_v58 }
0x18aa   :  { %v9574_v29 = vsel %vm933_vm11, %v9555_v17, %v9573_v44  ;;  %v9571_v59 = vrot.slane %v9529_v50, %v12214_v58  ;;  %v10503_v17 = vld [vmem:[%s14559_s12 + $0xc] ss:$0 sm:$0xff] }
0x18ab   :  { %v9575_v46 = vsel %vm935_vm12, %v9559_v3, %v9574_v29  ;;  %v10504_v3 = vld [vmem:[%s14559_s12 + $0xd] ss:$0 sm:$0xff]  ;;  %v9756_v44 = vrot.slane %v10503_v17, %v12209_v49 }
0x18ac   :  { %v9576_v21 = vsel %vm937_vm13, %v9563_v62, %v9575_v46  ;;  %v9791_v29 = vcombine.high %v10504_v3, %v10504_v3 }
0x18ad   :  { %v9577_v23 = vsel %vm939_vm14, %v9567_v22, %v9576_v21  ;;  %v9798_v22 = vrot.slane %v10504_v3, %v12209_v49  ;;  %v9764_v46 = vcombine.high %v9756_v44, %v9756_v44 }
0x18ae   :  { %v9578_v10 = vsel %vm941_vm15, %v9571_v59, %v9577_v23  ;;  %v9805_v21 = vrot.slane %v9791_v29, %v12209_v49 }
0x18af   :  { %v9580_v24 = vsel %vm347_vm2, %v9578_v10, 0.0  ;;  %v9806_v23 = vcombine.high %v9798_v22, %v9798_v22 }
0x18b0   :  { %9581 = vadd.xlane.f32.xlu0 %v9580_v24  ;;  %v9766_v24 = vrot.slane %v9756_v44, 1 }
0x193d   :  { %v9582_v54 = vpop.xlane.xlu0 %9581 }
0x193e   :  { %v9583_v12 = vmul.f32 0.03125, %v9582_v54  ;;  %v9767_v54 = vrot.slane %v9764_v46, 1 }
0x1940   :  { %v9591_v45 = vrot.slane %v9583_v12, %v12767_v52  ;;  %v9598_v42 = vrot.slane %v9583_v12, %v12770_v32  ;;  %v9605_v28 = vrot.slane %v9583_v12, %v12773_v34  ;;  %v9612_v43 = vrot.slane %v9583_v12, %v12776_v9 }
0x1942   :  { %v9613_v40 = vrot.slane %v9591_v45, 1  ;;  %v9614_v19 = vrot.slane %v9598_v42, 1  ;;  %v9615_v26 = vrot.slane %v9605_v28, 1  ;;  %v9616_v31 = vrot.slane %v9612_v43, 1 }
0x1943   :  { %v14327_v41 = vsub.f32 %v9522_v61, %v9591_v45  ;;  %v14329_v38 = vsub.f32 %v9524_v57, %v9598_v42  ;;  %v14331_v55 = vsub.f32 %v9526_v2, %v9605_v28  ;;  %v9631_v47 = vsub.f32 %v9528_v11, %v9612_v43 }
0x1944   :  { %v14333_v13 = vsub.f32 %v9523_v7, %v9613_v40  ;;  %v14335_v20 = vsub.f32 %v9525_v37, %v9614_v19  ;;  %v14337_v30 = vsub.f32 %v9527_v5, %v9615_v26  ;;  %v9632_v1 = vsub.f32 %v9529_v50, %v9616_v31 }
0x1945   :  { %v9633_v63 = vmul.f32 %v14327_v41, %v14327_v41  ;;  %v9635_v60 = vmul.f32 %v14329_v38, %v14329_v38  ;;  %v9637_v39 = vmul.f32 %v14331_v55, %v14331_v55  ;;  %v9639_v53 = vmul.f32 %v9631_v47, %v9631_v47 }
0x1946   :  { %v9634_v36 = vmul.f32 %v14333_v13, %v14333_v13  ;;  %v9636_v8 = vmul.f32 %v14335_v20, %v14335_v20  ;;  %v9638_v16 = vmul.f32 %v14337_v30, %v14337_v30  ;;  %v9640_v35 = vmul.f32 %v9632_v1, %v9632_v1 }
0x1947   :  { %v9652_v15 = vrot.slane %v9633_v63, %v12214_v58  ;;  %v9660_v25 = vrot.slane %v9635_v60, %v12214_v58  ;;  %v9668_v6 = vrot.slane %v9637_v39, %v12214_v58  ;;  %v9676_v57 = vrot.slane %v9639_v53, %v12214_v58 }
0x1948   :  { %v9656_v4 = vrot.slane %v9634_v36, %v12214_v58  ;;  %v9664_v0 = vrot.slane %v9636_v8, %v12214_v58  ;;  %v9672_v33 = vrot.slane %v9638_v16, %v12214_v58  ;;  %v9680_v56 = vrot.slane %v9640_v35, %v12214_v58 }
0x1949   :  { %v9749_v50 = vcombine.high %v10503_v17, %v10503_v17  ;;  %v9807_v19 = vcombine.high %v9805_v21, %v9805_v21  ;;  %v9808_v26 = vrot.slane %v9798_v22, 1  ;;  %v9809_v31 = vrot.slane %v9806_v23, 1 }
0x194a   :  { %v9681_v61 = vsel %vm929_vm9, %v9656_v4, %v9652_v15 }
0x194b   :  { %v9682_v14 = vsel %vm931_vm10, %v9660_v25, %v9681_v61  ;;  %v9763_v62 = vrot.slane %v9749_v50, %v12209_v49 }
0x194c   :  { %v9683_v7 = vsel %vm933_vm11, %v9664_v0, %v9682_v14 }
0x194d   :  { %v9684_v2 = vsel %vm935_vm12, %v9668_v6, %v9683_v7  ;;  %v9765_v59 = vcombine.high %v9763_v62, %v9763_v62  ;;  %v9768_v12 = vrot.slane %v9763_v62, 1 }
0x194e   :  { %v9685_v37 = vsel %vm937_vm13, %v9672_v33, %v9684_v2  ;;  %v9810_v2 = vrot.slane %v9805_v21, 1 }
0x194f   :  { %v9686_v5 = vsel %vm939_vm14, %v9676_v57, %v9685_v37  ;;  %v9769_v40 = vrot.slane %v9765_v59, 1 }
0x1950   :  { %v9687_v18 = vsel %vm941_vm15, %v9680_v56, %v9686_v5 }
0x1951   :  { %v9689_v51 = vsel %vm347_vm2, %v9687_v18, 0.0 }
0x1952   :  { %9690 = vadd.xlane.f32.xlu1 %v9689_v51 }
0x19df   :  { %v9691_v48 = vpop.xlane.xlu1 %9690 }
0x19e0   :  { %v9692_v11 = vmul.f32 0.03125, %v9691_v48 }
0x19e2   :  { %v9693_v27 = vadd.f32 1e-05, %v9692_v11 }
0x19e4   :  { %11873 = vrsqrt.f32 %v9693_v27 }
0x19ee   :  { %v11874_v10 = vpop.eup %11873 }
0x19ef   :  { %v9702_v45 = vrot.slane %v11874_v10, %v12767_v52  ;;  %v9709_v42 = vrot.slane %v11874_v10, %v12770_v32  ;;  %v9716_v28 = vrot.slane %v11874_v10, %v12773_v34  ;;  %v9723_v43 = vrot.slane %v11874_v10, %v12776_v9 }
0x19f1   :  { %v9724_v63 = vrot.slane %v9702_v45, 1  ;;  %v9725_v60 = vrot.slane %v9709_v42, 1  ;;  %v9726_v36 = vrot.slane %v9716_v28, 1  ;;  %v9727_v8 = vrot.slane %v9723_v43, 1 }
0x19f2   :  { %v9736_v39 = vmul.f32 %v9702_v45, %v14327_v41  ;;  %v9738_v15 = vmul.f32 %v9709_v42, %v14329_v38  ;;  %v9740_v4 = vmul.f32 %v9716_v28, %v14331_v55  ;;  %v9742_v16 = vmul.f32 %v9723_v43, %v9631_v47 }
0x19f3   :  { %v9737_v25 = vmul.f32 %v9724_v63, %v14333_v13  ;;  %v9739_v53 = vmul.f32 %v9725_v60, %v14335_v20  ;;  %v9741_v35 = vmul.f32 %v9726_v36, %v14337_v30  ;;  %v9743_v0 = vmul.f32 %v9727_v8, %v9632_v1 }
0x19f4   :  { %v9778_v61 = vmul.f32 %v9756_v44, %v9736_v39  ;;  %v9780_v6 = vmul.f32 %v9764_v46, %v9738_v15  ;;  %v9782_v14 = vmul.f32 %v9763_v62, %v9740_v4  ;;  %v9784_v41 = vmul.f32 %v9765_v59, %v9742_v16 }
0x19f5   :  { %v9779_v33 = vmul.f32 %v9766_v24, %v9737_v25  ;;  %v9781_v7 = vmul.f32 %v9767_v54, %v9739_v53  ;;  %v9783_v57 = vmul.f32 %v9768_v12, %v9741_v35  ;;  %v9785_v37 = vmul.f32 %v9769_v40, %v9743_v0 }
0x19f6   :  { %v9820_v56 = vadd.f32 %v9798_v22, %v9778_v61  ;;  %v9822_v38 = vadd.f32 %v9806_v23, %v9780_v6  ;;  %v9811_v55 = vrot.slane %v9807_v19, 1  ;;  %v9824_v13 = vadd.f32 %v9805_v21, %v9782_v14 }
0x19f7   :  { %v9821_v47 = vadd.f32 %v9808_v26, %v9779_v33  ;;  %v9823_v5 = vadd.f32 %v9809_v31, %v9781_v7  ;;  %v9825_v18 = vadd.f32 %v9810_v2, %v9783_v57  ;;  %v9826_v1 = vadd.f32 %v9807_v19, %v9784_v41 }
0x19f8   :  { %v9841_v20 = vrot.slane %v9820_v56, %v12214_v58  ;;  %v9849_v51 = vrot.slane %v9822_v38, %v12214_v58  ;;  %v9827_v48 = vadd.f32 %v9811_v55, %v9785_v37  ;;  %v9857_v27 = vrot.slane %v9824_v13, %v12214_v58 }
0x19f9   :  { %v9845_v30 = vrot.slane %v9821_v47, %v12214_v58  ;;  %v9853_v11 = vrot.slane %v9823_v5, %v12214_v58  ;;  %v9861_v3 = vrot.slane %v9825_v18, %v12214_v58  ;;  %v9865_v62 = vrot.slane %v9826_v1, %v12214_v58 }
0x19fa   :  { %v9869_v22 = vrot.slane %v9827_v48, %v12214_v58 }
0x19fb   :  { %v9870_v17 = vsel %vm929_vm9, %v9845_v30, %v9841_v20 }
0x19fc   :  { %v9871_v50 = vsel %vm931_vm10, %v9849_v51, %v9870_v17 }
0x19fd   :  { %v9872_v44 = vsel %vm933_vm11, %v9853_v11, %v9871_v50  ;;  %v10506_v11 = vld [vmem:[%s14559_s12 + $0xf] ss:$0 sm:$0xff] }
0x19fe   :  { %v9873_v29 = vsel %vm935_vm12, %v9857_v27, %v9872_v44  ;;  %v10089_v50 = vcombine.high %v10506_v11, %v10506_v11 }
0x19ff   :  { %v9874_v46 = vsel %vm937_vm13, %v9861_v3, %v9873_v29 }
0x1a00   :  { %v9875_v59 = vsel %vm939_vm14, %v9865_v62, %v9874_v46  ;;  %v10096_v62 = vrot.slane %v10506_v11, %v12209_v49  ;;  %v10103_v29 = vrot.slane %v10089_v50, %v12209_v49 }
0x1a01   :  { %v9876_v21 = vsel %vm941_vm15, %v9869_v22, %v9875_v59 }
0x1a02   :  { %v9878_v23 = vsel %vm347_vm2, %v9876_v21, 0.0  ;;  %v10104_v59 = vcombine.high %v10096_v62, %v10096_v62  ;;  %v10105_v21 = vcombine.high %v10103_v29, %v10103_v29 }
0x1a03   :  { %9879 = vadd.xlane.f32.xlu0 %v9878_v23 }
0x1a90   :  { %v9880_v10 = vpop.xlane.xlu0 %9879 }
0x1a91   :  { %v9881_v24 = vmul.f32 0.03125, %v9880_v10 }
0x1a93   :  { %v9889_v54 = vrot.slane %v9881_v24, %v12767_v52  ;;  %v9896_v12 = vrot.slane %v9881_v24, %v12770_v32  ;;  %v9903_v45 = vrot.slane %v9881_v24, %v12773_v34  ;;  %v9910_v42 = vrot.slane %v9881_v24, %v12776_v9 }
0x1a95   :  { %v9911_v28 = vrot.slane %v9889_v54, 1  ;;  %v9912_v43 = vrot.slane %v9896_v12, 1  ;;  %v9913_v40 = vrot.slane %v9903_v45, 1  ;;  %v9914_v19 = vrot.slane %v9910_v42, 1 }
0x1a96   :  { %v14407_v26 = vsub.f32 %v9820_v56, %v9889_v54  ;;  %v14409_v31 = vsub.f32 %v9822_v38, %v9896_v12  ;;  %v14411_v63 = vsub.f32 %v9824_v13, %v9903_v45  ;;  %v14419_v39 = vsub.f32 %v9826_v1, %v9910_v42 }
0x1a97   :  { %v14413_v60 = vsub.f32 %v9821_v47, %v9911_v28  ;;  %v14415_v36 = vsub.f32 %v9823_v5, %v9912_v43  ;;  %v14417_v8 = vsub.f32 %v9825_v18, %v9913_v40  ;;  %v9930_v53 = vsub.f32 %v9827_v48, %v9914_v19  ;;  %v10505_v48 = vld [vmem:[%s14559_s12 + $0xe] ss:$0 sm:$0xff]  ;;  %s11909_s12 = smov [#allocation2]  }
0x1a98   :  { %v9931_v15 = vmul.f32 %v14407_v26, %v14407_v26  ;;  %v9933_v4 = vmul.f32 %v14409_v31, %v14409_v31  ;;  %v9935_v35 = vmul.f32 %v14411_v63, %v14411_v63  ;;  %v9937_v33 = vmul.f32 %v14419_v39, %v14419_v39  ;;  %s10182_s7 = sshll.u32 %s11909_s12, 4  ;;  %s10183_s7 = int_to_ptr.vmem [resolvable:$true] %s10182_s7 }
0x1a99   :  { %v9932_v16 = vmul.f32 %v14413_v60, %v14413_v60  ;;  %v9934_v25 = vmul.f32 %v14415_v36, %v14415_v36  ;;  %v9936_v6 = vmul.f32 %v14417_v8, %v14417_v8  ;;  %v9938_v7 = vmul.f32 %v9930_v53, %v9930_v53  ;;  %s11877_s25 = scalar_lea.vmem %s10183_s7, 128  ;;  %p11882_p1 = scmp.lt.s32.totalorder %s10183_s7, %s10183_s7 }
0x1a9a   :  { %v9950_v0 = vrot.slane %v9931_v15, %v12214_v58  ;;  %v9958_v14 = vrot.slane %v9933_v4, %v12214_v58  ;;  %v9966_v41 = vrot.slane %v9935_v35, %v12214_v58  ;;  %v9974_v55 = vrot.slane %v9937_v33, %v12214_v58  ;;  %p11878_p0 = scmp.ne.s32.totalorder %s10183_s7, %s11877_s25  ;;  %p11883_p2 = scmp.lt.s32.totalorder %s11877_s25, %s11877_s25 }
0x1a9b   :  { %v9954_v61 = vrot.slane %v9932_v16, %v12214_v58  ;;  %v9962_v57 = vrot.slane %v9934_v25, %v12214_v58  ;;  %v9970_v38 = vrot.slane %v9936_v6, %v12214_v58  ;;  %v9978_v5 = vrot.slane %v9938_v7, %v12214_v58 }
0x1a9c   :  { %v10047_v27 = vcombine.high %v10505_v48, %v10505_v48  ;;  %v10054_v3 = vrot.slane %v10505_v48, %v12209_v49  ;;  %v10106_v12 = vrot.slane %v10096_v62, 1  ;;  %v10107_v19 = vrot.slane %v10104_v59, 1  ;;  %p11884_p3 = por %p11883_p2, %p11882_p1 }
0x1a9d   :  { %v9979_v2 = vsel %vm929_vm9, %v9954_v61, %v9950_v0  ;;  %v10109_v15 = vrot.slane %v10105_v21, 1 }
0x1a9e   :  { %v9980_v56 = vsel %vm931_vm10, %v9958_v14, %v9979_v2  ;;  %v10061_v44 = vrot.slane %v10047_v27, %v12209_v49  ;;  %v10062_v22 = vcombine.high %v10054_v3, %v10054_v3  ;;  %v10064_v10 = vrot.slane %v10054_v3, 1  ;;  %p11885_p4 = pnand %p11884_p3, %p11878_p0 }
0x1a9f   :  { %v9981_v37 = vsel %vm933_vm11, %v9962_v57, %v9980_v56  ;;  %v10108_v49 = vrot.slane %v10103_v29, 1 }
0x1aa0   :  { %v9982_v47 = vsel %vm935_vm12, %v9966_v41, %v9981_v37  ;;  %v10063_v46 = vcombine.high %v10061_v44, %v10061_v44  ;;  %v10065_v24 = vrot.slane %v10062_v22, 1  ;;  %v10066_v54 = vrot.slane %v10061_v44, 1 }
0x1aa1   :  { %v9983_v13 = vsel %vm937_vm13, %v9970_v38, %v9982_v47 }
0x1aa2   :  { %v9984_v18 = vsel %vm939_vm14, %v9974_v55, %v9983_v13  ;;  %v10067_v40 = vrot.slane %v10063_v46, 1 }
0x1aa3   :  { %v9985_v20 = vsel %vm941_vm15, %v9978_v5, %v9984_v18 }
0x1aa4   :  { %v9987_v30 = vsel %vm347_vm2, %v9985_v20, 0.0 }
0x1aa5   :  { %9988 = vadd.xlane.f32.xlu1 %v9987_v30 }
0x1b32   :  { %v9989_v1 = vpop.xlane.xlu1 %9988 }
0x1b33   :  { %v9990_v51 = vmul.f32 0.03125, %v9989_v1 }
0x1b35   :  { %v9991_v17 = vadd.f32 1e-05, %v9990_v51 }
0x1b37   :  { %11875 = vrsqrt.f32 %v9991_v17 }
0x1b41   :  { %v11876_v23 = vpop.eup %11875 }
0x1b42   :  { %v10000_v45 = vrot.slane %v11876_v23, %v12767_v52  ;;  %v10007_v42 = vrot.slane %v11876_v23, %v12770_v32  ;;  %v10014_v28 = vrot.slane %v11876_v23, %v12773_v34  ;;  %v10021_v43 = vrot.slane %v11876_v23, %v12776_v9 }
0x1b44   :  { %v10022_v4 = vrot.slane %v10000_v45, 1  ;;  %v10023_v16 = vrot.slane %v10007_v42, 1  ;;  %v10024_v25 = vrot.slane %v10014_v28, 1  ;;  %v10025_v35 = vrot.slane %v10021_v43, 1 }
0x1b45   :  { %v10034_v0 = vmul.f32 %v10000_v45, %v14407_v26  ;;  %v10036_v61 = vmul.f32 %v10007_v42, %v14409_v31  ;;  %v10038_v52 = vmul.f32 %v10014_v28, %v14411_v63  ;;  %v10040_v32 = vmul.f32 %v10021_v43, %v14419_v39 }
0x1b46   :  { %v10035_v34 = vmul.f32 %v10022_v4, %v14413_v60  ;;  %v10037_v9 = vmul.f32 %v10023_v16, %v14415_v36  ;;  %v10039_v6 = vmul.f32 %v10024_v25, %v14417_v8  ;;  %v10041_v14 = vmul.f32 %v10025_v35, %v9930_v53 }
0x1b47   :  { %v10076_v33 = vmul.f32 %v10054_v3, %v10034_v0  ;;  %v10078_v7 = vmul.f32 %v10062_v22, %v10036_v61  ;;  %v10080_v57 = vmul.f32 %v10061_v44, %v10038_v52  ;;  %v10082_v2 = vmul.f32 %v10063_v46, %v10040_v32 }
0x1b48   :  { %v10077_v41 = vmul.f32 %v10064_v10, %v10035_v34  ;;  %v10079_v56 = vmul.f32 %v10065_v24, %v10037_v9  ;;  %v10081_v26 = vmul.f32 %v10066_v54, %v10039_v6  ;;  %v10083_v38 = vmul.f32 %v10067_v40, %v10041_v14 }
0x1b49   :  { %v10118_v31 = vadd.f32 %v10096_v62, %v10076_v33  ;;  %v10120_v37 = vadd.f32 %v10104_v59, %v10078_v7  ;;  %v10122_v63 = vadd.f32 %v10103_v29, %v10080_v57  ;;  %v10124_v55 = vadd.f32 %v10105_v21, %v10082_v2 }
0x1b4a   :  { %v10119_v39 = vadd.f32 %v10106_v12, %v10077_v41  ;;  %v10121_v47 = vadd.f32 %v10107_v19, %v10079_v56  ;;  %v10123_v60 = vadd.f32 %v10108_v49, %v10081_v26  ;;  %v10125_v5 = vadd.f32 %v10109_v15, %v10083_v38 }
0x1b4b   :  { %v10137_v36 = vrot.slane %v10118_v31, %v12214_v58  ;;  %v10153_v53 = vrot.slane %v10122_v63, %v12214_v58  ;;  %v10145_v18 = vrot.slane %v10120_v37, %v12214_v58  ;;  %v10161_v20 = vrot.slane %v10124_v55, %v12214_v58 }
0x1b4c   :  { %v10141_v8 = vrot.slane %v10119_v39, %v12214_v58  ;;  %v10157_v13 = vrot.slane %v10123_v60, %v12214_v58  ;;  %v10149_v30 = vrot.slane %v10121_v47, %v12214_v58  ;;  %v10165_v1 = vrot.slane %v10125_v5, %v12214_v58 }
0x1b4e   :  { %v10166_v51 = vsel %vm929_vm9, %v10141_v8, %v10137_v36  ;;  %v10169_v48 = vsel %vm929_vm9, %v10157_v13, %v10153_v53 }
0x1b4f   :  { %v10167_v11 = vsel %vm931_vm10, %v10145_v18, %v10166_v51  ;;  %v10170_v17 = vsel %vm931_vm10, %v10161_v20, %v10169_v48 }
0x1b50   :  { %v10168_v27 = vsel %vm933_vm11, %v10149_v30, %v10167_v11  ;;  %v10171_v50 = vsel %vm933_vm11, %v10165_v1, %v10170_v17 }
0x1b51   :  { %10175 = vst.msk [vmem:[#allocation2] sm:$0xf] %vm10174_vm0, %v10168_v27  ;;  %10176 = vst.msk [vmem:[#allocation2 + $0x4] sm:$0xf] %vm10174_vm0, %v10171_v50 }
0x1b52   :  { %11888 = shalt.err (!%p11885_p4)
}
0x1b53   :  { %s11889_s29 = scalar_lea.hbm %s14526_s28, 128 }
0x1b54   :  { %p11890_p5 = scmp.ne.s32.totalorder %s14526_s28, %s11889_s29  ;;  %p11893_p6 = scmp.lt.u32.totalorder %s11889_s29, %s14526_s28 }
0x1b56   :  { %p11895_p7 = pnand %p11893_p6, %p11890_p5 }
0x1b58   :  { %11898 = shalt.err (!%p11895_p7)
}
0x1b59   :  { %s11910_s17 = smov 64   ;;  %s11911_s6 = smov 4  }
0x1b5a   :  { %10188 = dma.vmem_to_hbm [thread:$0]  %s10183_s7, 128, %s14526_s28, [#allocation3], %s11910_s17, %s11910_s17, %s11911_s6  }
0x1b5b   :  { %11899 = dma.done.wait [#allocation3], 128  }
0x1b5c   :  { %11900 = vsyncadd [#allocation3], 4294967168 }
0x1b5d   :  { %10192 = vsyncpa [#allocation3], 1 }

</bundles_post_ra>
